<compile_context>
chip_gen: v7x
topology: tpu7x:2x2x1
jax: 0.10.0
libtpu: 0.0.40
codegen_flags: <defaults>
</compile_context>

<pallas_src>
import functools

import jax
import jax.numpy as jnp
import numpy as np
from jax.experimental import pallas as pl
from jax.experimental.pallas import tpu as pltpu


def _bilinear_matrix(in_size, out_size):
    """Separable interpolation matrix for bilinear x2, align_corners=True."""
    if in_size == 1:
        return np.ones((out_size, 1), np.float32)
    scale = (in_size - 1) / (out_size - 1)
    src = np.arange(out_size, dtype=np.float64) * scale
    j0 = np.clip(np.floor(src).astype(np.int64), 0, in_size - 2)
    w1 = (src - j0).astype(np.float32)
    A = np.zeros((out_size, in_size), np.float32)
    A[np.arange(out_size), j0] += 1.0 - w1
    A[np.arange(out_size), j0 + 1] += w1
    return A


def _fused_conv_in_lrelu_kernel(x_ref, w_ref, p_ref, dest_ref, o_ref, s_ref, *,
                                c_in, wp, w2, h2, l, inv_count, eps, neg_slope):
    # x_ref   : (1, C_in, Lp)      flat, conv-padded, upsampled activation
    # w_ref   : (cout_t, 9*C_in)   3x3 taps, column block t*C_in + c, t = 3*dy+dx
    # p_ref   : (cout_t, 2)        packed [gamma, beta]
    # dest_ref: aliased concat destination in HBM (never touched here)
    # o_ref   : (1, cout_t, H2, W2) dense NCHW output block
    # s_ref   : (9*C_in, L)        VMEM scratch for the stacked tap operand
    del dest_ref

    # --- stacked 3x3-tap operand: 9 shifted lane slices of the flat slab ---
    for dy in range(3):
        for dx in range(3):
            t = dy * 3 + dx
            off = dy * wp + dx
            s_ref[pl.ds(t * c_in, c_in), :] = x_ref[0, :, pl.ds(off, l)]

    # --- single K = 9*C_in MXU matmul for the whole 3x3 conv (f32 acc) ---
    acc = jnp.dot(w_ref[...], s_ref[...],
                  preferred_element_type=jnp.float32)        # (cout_t, L)

    # --- InstanceNorm2d: single-pass masked stats (pad lanes excluded) ---
    col = jax.lax.broadcasted_iota(jnp.int32, (1, l), 1)
    mask = ((col % wp) < w2).astype(jnp.float32)              # (1, L)
    acc_m = acc * mask
    s1 = jnp.sum(acc_m, axis=1, keepdims=True)                # (cout_t, 1)
    s2 = jnp.sum(acc_m * acc, axis=1, keepdims=True)
    mean = s1 * inv_count
    var = jnp.maximum(s2 * inv_count - mean * mean, 0.0)
    gamma = p_ref[:, 0:1]
    beta = p_ref[:, 1:2]
    scale = gamma * jax.lax.rsqrt(var + eps)                  # EUP slot
    shift = beta - mean * scale

    cout_t = acc.shape[0]
    scale_b = jnp.broadcast_to(scale, (cout_t, w2))           # hoisted broadcasts
    shift_b = jnp.broadcast_to(shift, (cout_t, w2))

    # --- per-row affine + leaky_relu + dense NCHW store (drops pad lanes) ---
    for r in range(h2):
        row = acc[:, r * wp:r * wp + w2]                      # (cout_t, W2)
        y = row * scale_b + shift_b
        y = jnp.maximum(y, neg_slope * y)                     # leaky_relu
        o_ref[0, :, r, :] = y.astype(o_ref.dtype)


def _vmem_budget_bytes():
    phys = 64 << 20  # conservative default (v7x per-TC VMEM)
    try:
        info = pltpu.get_tpu_info()
        phys = int(getattr(info, "vmem_capacity_bytes", phys) or phys)
    except Exception:
        pass
    return int(phys * 0.8)


def _pick_cout_tile(c_out, budget, est_fn):
    """Largest C_out tile (divisor, <=256, sublane-legal) fitting the budget."""
    cands = sorted({d for d in range(1, c_out + 1)
                    if c_out % d == 0 and d <= 256
                    and (d == c_out or d % 8 == 0)}, reverse=True)
    if not cands:
        cands = [c_out]
    for x_bufs in (2, 1):           # fall back to single-buffered x if needed
        for ct in cands:
            if est_fn(ct, x_bufs) <= budget:
                return ct, x_bufs
    return cands[-1], 1


@functools.partial(jax.jit, static_argnames=("matmul_dtype",))
def upsample2d_forward(x, feature_map, conv_w, conv_b, gamma, beta, *,
                       matmul_dtype=jnp.bfloat16):
    """Pallas-backed equivalent of Upsample2d.forward (NCHW in/out)."""
    del conv_b  # Constant per-channel shift is removed exactly by InstanceNorm.
    N, C_in, H, W = x.shape
    C_out = conv_w.shape[0]
    C_feat = feature_map.shape[1]
    H2, W2 = 2 * H, 2 * W
    Wp = W2 + 2                    # conv-padded row width ("wide" row stride)
    Hp = H2 + 3                    # top pad + bottom pad + guard row
    Lp = Hp * Wp                   # flat padded input length per channel
    L = H2 * Wp                    # flat "wide" conv-output length per channel
    out_dtype = x.dtype
    C_tot = C_out + C_feat

    # ---- bilinear x2 (align_corners=True) with the conv zero-padding folded
    # into the interpolation matrices (XLA side, bf16 slab by default). ----
    A_hp = np.zeros((Hp, H), np.float32)
    A_hp[1:H2 + 1] = _bilinear_matrix(H, H2)
    A_wp = np.zeros((Wp, W), np.float32)
    A_wp[1:W2 + 1] = _bilinear_matrix(W, W2)
    xh = jnp.einsum('ph,nchw->ncpw', jnp.asarray(A_hp), x.astype(jnp.float32))
    x_up = jnp.einsum('qw,ncpw->ncpq', jnp.asarray(A_wp), xh)   # (N,C_in,Hp,Wp)
    x_flat = x_up.reshape(N, C_in, Lp).astype(matmul_dtype)

    # 3x3 taps as one (C_out, 9*C_in) matrix, column block t*C_in + c, t=3*dy+dx
    w9 = jnp.transpose(conv_w, (0, 2, 3, 1)).reshape(C_out, 9 * C_in)
    w9 = w9.astype(matmul_dtype)

    # Packed per-channel affine params: column 0 = gamma, column 1 = beta.
    params = jnp.stack([gamma, beta], axis=1).astype(jnp.float32)  # (C_out, 2)

    # Concat destination with feature_map pre-placed; the kernel fills
    # channels [0, C_out) in place via input_output_aliases (no concat pass).
    dest = jnp.pad(feature_map.astype(out_dtype),
                   ((0, 0), (C_out, 0), (0, 0), (0, 0)))

    isz = jnp.dtype(matmul_dtype).itemsize

    def est(ct, x_bufs):
        return int(x_bufs * C_in * Lp * isz            # activation block
                   + 2 * ct * 9 * C_in * isz           # weight block (x2)
                   + 2 * max(ct, 8) * 128 * 4          # params block (padded)
                   + 2 * ct * H2 * W2 * 4              # output block (x2)
                   + 9 * C_in * L * isz                # stacked-tap scratch
                   + 3 * ct * L * 4                    # acc + acc*mask + slack
                   + L * 4                             # mask
                   + (2 << 20))                        # headroom

    budget = _vmem_budget_bytes()
    cout_t, x_bufs = _pick_cout_tile(C_out, budget, est)
    n_j = C_out // cout_t
    vmem_limit = int(min(budget, max(32 << 20, int(est(cout_t, x_bufs) * 1.3))))

    if x_bufs == 1:
        # Activation block only changes on the outer batch axis; single
        # buffering halves its VMEM footprint at negligible pipeline cost.
        x_spec = pl.BlockSpec((1, C_in, Lp), lambda n, j: (n, 0, 0),
                              pipeline_mode=pl.Buffered(1))
    else:
        x_spec = pl.BlockSpec((1, C_in, Lp), lambda n, j: (n, 0, 0))

    kernel = functools.partial(
        _fused_conv_in_lrelu_kernel,
        c_in=C_in, wp=Wp, w2=W2, h2=H2, l=L,
        inv_count=1.0 / float(H2 * W2), eps=1e-5, neg_slope=0.01)

    out = pl.pallas_call(
        kernel,
        out_shape=jax.ShapeDtypeStruct((N, C_tot, H2, W2), out_dtype),
        grid_spec=pltpu.PrefetchScalarGridSpec(
            num_scalar_prefetch=0,
            grid=(N, n_j),
            in_specs=[
                x_spec,
                pl.BlockSpec((cout_t, 9 * C_in), lambda n, j: (j, 0)),
                pl.BlockSpec((cout_t, 2), lambda n, j: (j, 0)),
                pl.BlockSpec(memory_space=pl.ANY),      # aliased concat dest
            ],
            out_specs=pl.BlockSpec((1, cout_t, H2, W2),
                                   lambda n, j: (n, j, 0, 0)),
            scratch_shapes=[pltpu.VMEM((9 * C_in, L), matmul_dtype)],
        ),
        input_output_aliases={3: 0},
        compiler_params=pltpu.CompilerParams(
            dimension_semantics=("parallel", "arbitrary"),
            vmem_limit_bytes=vmem_limit),
    )(x_flat, w9, params, dest)
    return out


def _reference(x, feature_map, conv_w, conv_b, gamma, beta):
    """Pure-JAX reference of the same forward pass (for self-check)."""
    N, C_in, H, W = x.shape
    H2, W2 = 2 * H, 2 * W
    A_h = jnp.asarray(_bilinear_matrix(H, H2))
    A_w = jnp.asarray(_bilinear_matrix(W, W2))
    x_up = jnp.einsum('oh,nchw->ncow', A_h, x)
    x_up = jnp.einsum('pw,ncow->ncop', A_w, x_up)
    y = jax.lax.conv_general_dilated(
        x_up, conv_w, window_strides=(1, 1), padding=((1, 1), (1, 1)),
        dimension_numbers=('NCHW', 'OIHW', 'NCHW'))
    y = y + conv_b[None, :, None, None]
    mean = jnp.mean(y, axis=(2, 3), keepdims=True)
    var = jnp.mean((y - mean) ** 2, axis=(2, 3), keepdims=True)
    y = (y - mean) / jnp.sqrt(var + 1e-5)
    y = y * gamma[None, :, None, None] + beta[None, :, None, None]
    y = jnp.where(y >= 0, y, 0.01 * y)
    return jnp.concatenate([y, feature_map], axis=1)


if __name__ == "__main__":
    key = jax.random.PRNGKey(0)
    k1, k2, k3, k4, k5, k6 = jax.random.split(key, 6)

    N, C_in, C_out, H, W, C_feat = 2, 4, 4, 16, 16, 4
    x = jax.random.normal(k1, (N, C_in, H, W), jnp.float32)
    feature_map = jax.random.normal(k2, (N, C_feat, 2 * H, 2 * W), jnp.float32)

    conv_w = 0.1 * jax.random.normal(k3, (C_out, C_in, 3, 3), jnp.float32)
    conv_b = 0.1 * jax.random.normal(k4, (C_out,), jnp.float32)
    gamma = 1.0 + 0.1 * jax.random.normal(k5, (C_out,), jnp.float32)
    beta = 0.1 * jax.random.normal(k6, (C_out,), jnp.float32)

    ref = jax.block_until_ready(
        _reference(x, feature_map, conv_w, conv_b, gamma, beta))

    # f32 path: tight tolerance.
    out_f32 = jax.block_until_ready(
        upsample2d_forward(x, feature_map, conv_w, conv_b, gamma, beta,
                           matmul_dtype=jnp.float32))
    assert out_f32.shape == (N, C_out + C_feat, 2 * H, 2 * W), out_f32.shape
    np.testing.assert_allclose(np.asarray(out_f32), np.asarray(ref),
                               rtol=1e-3, atol=1e-3)

    # Default bf16 activation/weight path (halves kernel HBM bytes); f32
    # accumulation and InstanceNorm statistics -> only input-rounding error.
    out_bf16 = jax.block_until_ready(
        upsample2d_forward(x, feature_map, conv_w, conv_b, gamma, beta))
    np.testing.assert_allclose(np.asarray(out_bf16), np.asarray(ref),
                               rtol=5e-2, atol=1e-1)

    print("KERNEL_OK")
</pallas_src>

<mosaic_0001>
module attributes {stable_mosaic.version = 11 : i64} {
  func.func @_fused_conv_in_lrelu_kernel(%arg0: i32, %arg1: i32, %arg2: memref<1x4x1190xf32, #tpu.memory_space<vmem>>, %arg3: memref<4x36xf32, #tpu.memory_space<vmem>>, %arg4: memref<4x2xf32, #tpu.memory_space<vmem>>, %arg5: memref<2x8x32x32xf32, #tpu.memory_space<any>>, %arg6: memref<1x4x32x32xf32, #tpu.memory_space<vmem>>, %arg7: memref<36x1088xf32, #tpu.memory_space<vmem>>) attributes {dimension_semantics = [#tpu.dimension_semantics<parallel>, #tpu.dimension_semantics<arbitrary>], iteration_bounds = array<i64: 2, 1>, scalar_prefetch = 0 : i64, scratch_operands = 1 : i64, tpu.core_type = #tpu.core_type<tc>, window_params = [{transform_indices = @transform_0, window_bounds = array<i64: 1, 4, 1190>}, {transform_indices = @transform_1, window_bounds = array<i64: 4, 36>}, {transform_indices = @transform_2, window_bounds = array<i64: 4, 2>}, {}, {transform_indices = @transform_4, window_bounds = array<i64: 1, 4, 32, 32>}]} {
    %c0 = arith.constant 0 : index
    %c0_0 = arith.constant 0 : index
    %c0_1 = arith.constant 0 : index
    %0 = vector.load %arg2[%c0, %c0_0, %c0_1] : memref<1x4x1190xf32, #tpu.memory_space<vmem>>, vector<1x4x1088xf32>
    %1 = vector.shape_cast %0 : vector<1x4x1088xf32> to vector<4x1088xf32>
    %c0_2 = arith.constant 0 : index
    %c0_3 = arith.constant 0 : index
    %2 = vector.load %arg7[%c0_2, %c0_3] : memref<36x1088xf32, #tpu.memory_space<vmem>>, vector<4x1088xf32>
    tpu.vector_store %arg7[%c0_2, %c0_3], %1 {strides = array<i32>} : memref<36x1088xf32, #tpu.memory_space<vmem>>, vector<4x1088xf32>,
    %c0_4 = arith.constant 0 : index
    %c0_5 = arith.constant 0 : index
    %c1 = arith.constant 1 : index
    %3 = vector.load %arg2[%c0_4, %c0_5, %c1] : memref<1x4x1190xf32, #tpu.memory_space<vmem>>, vector<1x4x1088xf32>
    %4 = vector.shape_cast %3 : vector<1x4x1088xf32> to vector<4x1088xf32>
    %c4 = arith.constant 4 : index
    %c0_6 = arith.constant 0 : index
    %5 = vector.load %arg7[%c4, %c0_6] : memref<36x1088xf32, #tpu.memory_space<vmem>>, vector<4x1088xf32>
    tpu.vector_store %arg7[%c4, %c0_6], %4 {strides = array<i32>} : memref<36x1088xf32, #tpu.memory_space<vmem>>, vector<4x1088xf32>,
    %c0_7 = arith.constant 0 : index
    %c0_8 = arith.constant 0 : index
    %c2 = arith.constant 2 : index
    %6 = vector.load %arg2[%c0_7, %c0_8, %c2] : memref<1x4x1190xf32, #tpu.memory_space<vmem>>, vector<1x4x1088xf32>
    %7 = vector.shape_cast %6 : vector<1x4x1088xf32> to vector<4x1088xf32>
    %c8 = arith.constant 8 : index
    %c0_9 = arith.constant 0 : index
    %8 = vector.load %arg7[%c8, %c0_9] : memref<36x1088xf32, #tpu.memory_space<vmem>>, vector<4x1088xf32>
    tpu.vector_store %arg7[%c8, %c0_9], %7 {strides = array<i32>} : memref<36x1088xf32, #tpu.memory_space<vmem>>, vector<4x1088xf32>,
    %c0_10 = arith.constant 0 : index
    %c0_11 = arith.constant 0 : index
    %c34 = arith.constant 34 : index
    %9 = vector.load %arg2[%c0_10, %c0_11, %c34] : memref<1x4x1190xf32, #tpu.memory_space<vmem>>, vector<1x4x1088xf32>
    %10 = vector.shape_cast %9 : vector<1x4x1088xf32> to vector<4x1088xf32>
    %c12 = arith.constant 12 : index
    %c0_12 = arith.constant 0 : index
    %11 = vector.load %arg7[%c12, %c0_12] : memref<36x1088xf32, #tpu.memory_space<vmem>>, vector<4x1088xf32>
    tpu.vector_store %arg7[%c12, %c0_12], %10 {strides = array<i32>} : memref<36x1088xf32, #tpu.memory_space<vmem>>, vector<4x1088xf32>,
    %c0_13 = arith.constant 0 : index
    %c0_14 = arith.constant 0 : index
    %c35 = arith.constant 35 : index
    %12 = vector.load %arg2[%c0_13, %c0_14, %c35] : memref<1x4x1190xf32, #tpu.memory_space<vmem>>, vector<1x4x1088xf32>
    %13 = vector.shape_cast %12 : vector<1x4x1088xf32> to vector<4x1088xf32>
    %c16 = arith.constant 16 : index
    %c0_15 = arith.constant 0 : index
    %14 = vector.load %arg7[%c16, %c0_15] : memref<36x1088xf32, #tpu.memory_space<vmem>>, vector<4x1088xf32>
    tpu.vector_store %arg7[%c16, %c0_15], %13 {strides = array<i32>} : memref<36x1088xf32, #tpu.memory_space<vmem>>, vector<4x1088xf32>,
    %c0_16 = arith.constant 0 : index
    %c0_17 = arith.constant 0 : index
    %c36 = arith.constant 36 : index
    %15 = vector.load %arg2[%c0_16, %c0_17, %c36] : memref<1x4x1190xf32, #tpu.memory_space<vmem>>, vector<1x4x1088xf32>
    %16 = vector.shape_cast %15 : vector<1x4x1088xf32> to vector<4x1088xf32>
    %c20 = arith.constant 20 : index
    %c0_18 = arith.constant 0 : index
    %17 = vector.load %arg7[%c20, %c0_18] : memref<36x1088xf32, #tpu.memory_space<vmem>>, vector<4x1088xf32>
    tpu.vector_store %arg7[%c20, %c0_18], %16 {strides = array<i32>} : memref<36x1088xf32, #tpu.memory_space<vmem>>, vector<4x1088xf32>,
    %c0_19 = arith.constant 0 : index
    %c0_20 = arith.constant 0 : index
    %c68 = arith.constant 68 : index
    %18 = vector.load %arg2[%c0_19, %c0_20, %c68] : memref<1x4x1190xf32, #tpu.memory_space<vmem>>, vector<1x4x1088xf32>
    %19 = vector.shape_cast %18 : vector<1x4x1088xf32> to vector<4x1088xf32>
    %c24 = arith.constant 24 : index
    %c0_21 = arith.constant 0 : index
    %20 = vector.load %arg7[%c24, %c0_21] : memref<36x1088xf32, #tpu.memory_space<vmem>>, vector<4x1088xf32>
    tpu.vector_store %arg7[%c24, %c0_21], %19 {strides = array<i32>} : memref<36x1088xf32, #tpu.memory_space<vmem>>, vector<4x1088xf32>,
    %c0_22 = arith.constant 0 : index
    %c0_23 = arith.constant 0 : index
    %c69 = arith.constant 69 : index
    %21 = vector.load %arg2[%c0_22, %c0_23, %c69] : memref<1x4x1190xf32, #tpu.memory_space<vmem>>, vector<1x4x1088xf32>
    %22 = vector.shape_cast %21 : vector<1x4x1088xf32> to vector<4x1088xf32>
    %c28 = arith.constant 28 : index
    %c0_24 = arith.constant 0 : index
    %23 = vector.load %arg7[%c28, %c0_24] : memref<36x1088xf32, #tpu.memory_space<vmem>>, vector<4x1088xf32>
    tpu.vector_store %arg7[%c28, %c0_24], %22 {strides = array<i32>} : memref<36x1088xf32, #tpu.memory_space<vmem>>, vector<4x1088xf32>,
    %c0_25 = arith.constant 0 : index
    %c0_26 = arith.constant 0 : index
    %c70 = arith.constant 70 : index
    %24 = vector.load %arg2[%c0_25, %c0_26, %c70] : memref<1x4x1190xf32, #tpu.memory_space<vmem>>, vector<1x4x1088xf32>
    %25 = vector.shape_cast %24 : vector<1x4x1088xf32> to vector<4x1088xf32>
    %c32 = arith.constant 32 : index
    %c0_27 = arith.constant 0 : index
    %26 = vector.load %arg7[%c32, %c0_27] : memref<36x1088xf32, #tpu.memory_space<vmem>>, vector<4x1088xf32>
    tpu.vector_store %arg7[%c32, %c0_27], %25 {strides = array<i32>} : memref<36x1088xf32, #tpu.memory_space<vmem>>, vector<4x1088xf32>,
    %c0_28 = arith.constant 0 : index
    %c0_29 = arith.constant 0 : index
    %27 = vector.load %arg3[%c0_28, %c0_29] : memref<4x36xf32, #tpu.memory_space<vmem>>, vector<4x36xf32>
    %c0_30 = arith.constant 0 : index
    %c0_31 = arith.constant 0 : index
    %28 = vector.load %arg7[%c0_30, %c0_31] : memref<36x1088xf32, #tpu.memory_space<vmem>>, vector<36x1088xf32>
    %cst = arith.constant dense<0.000000e+00> : vector<4x1088xf32>
    %29 = tpu.matmul %27, %28, %cst {dimension_numbers = #tpu.dot_dimension_numbers<[1], [0], [0], [1], [0, 0, 1, 1], [], []>} : vector<4x36xf32>, vector<36x1088xf32>, vector<4x1088xf32> -> vector<4x1088xf32>
    %30 = tpu.iota {dimensions = array<i32: 1>} : vector<1x1088xi32>
    %c34_i32 = arith.constant 34 : i32
    %c0_i32 = arith.constant 0 : i32
    %31 = arith.cmpi eq, %c34_i32, %c0_i32 : i32
    %c1_i32 = arith.constant 1 : i32
    %32 = arith.select %31, %c1_i32, %c34_i32 : i32
    %33 = vector.broadcast %32 : i32 to vector<1x1088xi32>
    %34 = arith.remsi %30, %33 : vector<1x1088xi32>
    %c0_i32_32 = arith.constant 0 : i32
    %35 = vector.broadcast %c0_i32_32 : i32 to vector<1x1088xi32>
    %36 = arith.cmpi ne, %34, %35 : vector<1x1088xi32>
    %c0_i32_33 = arith.constant 0 : i32
    %37 = vector.broadcast %c0_i32_33 : i32 to vector<1x1088xi32>
    %38 = arith.cmpi slt, %34, %37 : vector<1x1088xi32>
    %c0_i32_34 = arith.constant 0 : i32
    %39 = arith.cmpi slt, %32, %c0_i32_34 : i32
    %40 = vector.broadcast %39 : i1 to vector<1x1088xi1>
    %41 = vector.broadcast %40 : vector<1x1088xi1> to vector<1x1088xi1>
    %42 = arith.xori %38, %41 : vector<1x1088xi1>
    %43 = arith.andi %42, %36 : vector<1x1088xi1>
    %44 = vector.broadcast %32 : i32 to vector<1x1088xi32>
    %45 = arith.addi %34, %44 : vector<1x1088xi32>
    %46 = arith.select %43, %45, %34 : vector<1x1088xi1>, vector<1x1088xi32>
    %c32_i32 = arith.constant 32 : i32
    %47 = vector.broadcast %c32_i32 : i32 to vector<1x1088xi32>
    %48 = arith.cmpi slt, %46, %47 : vector<1x1088xi32>
    %49 = arith.extui %48 : vector<1x1088xi1> to vector<1x1088xi32>
    %50 = arith.sitofp %49 : vector<1x1088xi32> to vector<1x1088xf32>
    %51 = vector.broadcast %50 : vector<1x1088xf32> to vector<4x1088xf32>
    %52 = arith.mulf %29, %51 : vector<4x1088xf32>
    %cst_35 = arith.constant dense<0.000000e+00> : vector<4xf32>
    %53 = vector.multi_reduction <add>, %52, %cst_35 [1] : vector<4x1088xf32> to vector<4xf32>
    %54 = vector.shape_cast %53 : vector<4xf32> to vector<4x1xf32>
    %55 = arith.mulf %52, %29 : vector<4x1088xf32>
    %cst_36 = arith.constant dense<0.000000e+00> : vector<4xf32>
    %56 = vector.multi_reduction <add>, %55, %cst_36 [1] : vector<4x1088xf32> to vector<4xf32>
    %57 = vector.shape_cast %56 : vector<4xf32> to vector<4x1xf32>
    %cst_37 = arith.constant 9.765625E-4 : f32
    %58 = vector.broadcast %cst_37 : f32 to vector<4x1xf32>
    %59 = arith.mulf %54, %58 : vector<4x1xf32>
    %cst_38 = arith.constant 9.765625E-4 : f32
    %60 = vector.broadcast %cst_38 : f32 to vector<4x1xf32>
    %61 = arith.mulf %57, %60 : vector<4x1xf32>
    %62 = arith.mulf %59, %59 : vector<4x1xf32>
    %63 = arith.subf %61, %62 : vector<4x1xf32>
    %cst_39 = arith.constant 0.000000e+00 : f32
    %64 = vector.broadcast %cst_39 : f32 to vector<4x1xf32>
    %65 = arith.maximumf %63, %64 : vector<4x1xf32>
    %c0_40 = arith.constant 0 : index
    %c0_41 = arith.constant 0 : index
    %66 = vector.load %arg4[%c0_40, %c0_41] : memref<4x2xf32, #tpu.memory_space<vmem>>, vector<4x1xf32>
    %c0_42 = arith.constant 0 : index
    %c1_43 = arith.constant 1 : index
    %67 = vector.load %arg4[%c0_42, %c1_43] : memref<4x2xf32, #tpu.memory_space<vmem>>, vector<4x1xf32>
    %cst_44 = arith.constant 9.99999974E-6 : f32
    %68 = vector.broadcast %cst_44 : f32 to vector<4x1xf32>
    %69 = arith.addf %65, %68 : vector<4x1xf32>
    %70 = math.rsqrt %69 : vector<4x1xf32>
    %71 = arith.mulf %66, %70 : vector<4x1xf32>
    %72 = arith.mulf %59, %71 : vector<4x1xf32>
    %73 = arith.subf %67, %72 : vector<4x1xf32>
    %74 = vector.shape_cast %71 : vector<4x1xf32> to vector<4x1xf32>
    %75 = vector.broadcast %74 : vector<4x1xf32> to vector<4x32xf32>
    %76 = vector.shape_cast %73 : vector<4x1xf32> to vector<4x1xf32>
    %77 = vector.broadcast %76 : vector<4x1xf32> to vector<4x32xf32>
    %78 = vector.extract_strided_slice %29 {offsets = [0, 0], sizes = [4, 32], strides = [1, 1]} : vector<4x1088xf32> to vector<4x32xf32>
    %79 = arith.mulf %78, %75 : vector<4x32xf32>
    %80 = arith.addf %79, %77 : vector<4x32xf32>
    %cst_45 = arith.constant 0.00999999977 : f32
    %81 = vector.broadcast %cst_45 : f32 to vector<4x32xf32>
    %82 = arith.mulf %81, %80 : vector<4x32xf32>
    %83 = arith.maximumf %80, %82 : vector<4x32xf32>
    %c0_46 = arith.constant 0 : index
    %c0_47 = arith.constant 0 : index
    %c0_48 = arith.constant 0 : index
    %c0_49 = arith.constant 0 : index
    %84 = vector.load %arg6[%c0_46, %c0_47, %c0_48, %c0_49] : memref<1x4x32x32xf32, #tpu.memory_space<vmem>>, vector<1x4x1x32xf32>
    %85 = vector.shape_cast %84 : vector<1x4x1x32xf32> to vector<4x32xf32>
    %86 = vector.shape_cast %83 : vector<4x32xf32> to vector<1x4x1x32xf32>
    tpu.vector_store %arg6[%c0_46, %c0_47, %c0_48, %c0_49], %86 {strides = array<i32>} : memref<1x4x32x32xf32, #tpu.memory_space<vmem>>, vector<1x4x1x32xf32>,
    %87 = vector.extract_strided_slice %29 {offsets = [0, 34], sizes = [4, 32], strides = [1, 1]} : vector<4x1088xf32> to vector<4x32xf32>
    %88 = arith.mulf %87, %75 : vector<4x32xf32>
    %89 = arith.addf %88, %77 : vector<4x32xf32>
    %cst_50 = arith.constant 0.00999999977 : f32
    %90 = vector.broadcast %cst_50 : f32 to vector<4x32xf32>
    %91 = arith.mulf %90, %89 : vector<4x32xf32>
    %92 = arith.maximumf %89, %91 : vector<4x32xf32>
    %c0_51 = arith.constant 0 : index
    %c0_52 = arith.constant 0 : index
    %c1_53 = arith.constant 1 : index
    %c0_54 = arith.constant 0 : index
    %93 = vector.load %arg6[%c0_51, %c0_52, %c1_53, %c0_54] : memref<1x4x32x32xf32, #tpu.memory_space<vmem>>, vector<1x4x1x32xf32>
    %94 = vector.shape_cast %93 : vector<1x4x1x32xf32> to vector<4x32xf32>
    %95 = vector.shape_cast %92 : vector<4x32xf32> to vector<1x4x1x32xf32>
    tpu.vector_store %arg6[%c0_51, %c0_52, %c1_53, %c0_54], %95 {strides = array<i32>} : memref<1x4x32x32xf32, #tpu.memory_space<vmem>>, vector<1x4x1x32xf32>,
    %96 = vector.extract_strided_slice %29 {offsets = [0, 68], sizes = [4, 32], strides = [1, 1]} : vector<4x1088xf32> to vector<4x32xf32>
    %97 = arith.mulf %96, %75 : vector<4x32xf32>
    %98 = arith.addf %97, %77 : vector<4x32xf32>
    %cst_55 = arith.constant 0.00999999977 : f32
    %99 = vector.broadcast %cst_55 : f32 to vector<4x32xf32>
    %100 = arith.mulf %99, %98 : vector<4x32xf32>
    %101 = arith.maximumf %98, %100 : vector<4x32xf32>
    %c0_56 = arith.constant 0 : index
    %c0_57 = arith.constant 0 : index
    %c2_58 = arith.constant 2 : index
    %c0_59 = arith.constant 0 : index
    %102 = vector.load %arg6[%c0_56, %c0_57, %c2_58, %c0_59] : memref<1x4x32x32xf32, #tpu.memory_space<vmem>>, vector<1x4x1x32xf32>
    %103 = vector.shape_cast %102 : vector<1x4x1x32xf32> to vector<4x32xf32>
    %104 = vector.shape_cast %101 : vector<4x32xf32> to vector<1x4x1x32xf32>
    tpu.vector_store %arg6[%c0_56, %c0_57, %c2_58, %c0_59], %104 {strides = array<i32>} : memref<1x4x32x32xf32, #tpu.memory_space<vmem>>, vector<1x4x1x32xf32>,
    %105 = vector.extract_strided_slice %29 {offsets = [0, 102], sizes = [4, 32], strides = [1, 1]} : vector<4x1088xf32> to vector<4x32xf32>
    %106 = arith.mulf %105, %75 : vector<4x32xf32>
    %107 = arith.addf %106, %77 : vector<4x32xf32>
    %cst_60 = arith.constant 0.00999999977 : f32
    %108 = vector.broadcast %cst_60 : f32 to vector<4x32xf32>
    %109 = arith.mulf %108, %107 : vector<4x32xf32>
    %110 = arith.maximumf %107, %109 : vector<4x32xf32>
    %c0_61 = arith.constant 0 : index
    %c0_62 = arith.constant 0 : index
    %c3 = arith.constant 3 : index
    %c0_63 = arith.constant 0 : index
    %111 = vector.load %arg6[%c0_61, %c0_62, %c3, %c0_63] : memref<1x4x32x32xf32, #tpu.memory_space<vmem>>, vector<1x4x1x32xf32>
    %112 = vector.shape_cast %111 : vector<1x4x1x32xf32> to vector<4x32xf32>
    %113 = vector.shape_cast %110 : vector<4x32xf32> to vector<1x4x1x32xf32>
    tpu.vector_store %arg6[%c0_61, %c0_62, %c3, %c0_63], %113 {strides = array<i32>} : memref<1x4x32x32xf32, #tpu.memory_space<vmem>>, vector<1x4x1x32xf32>,
    %114 = vector.extract_strided_slice %29 {offsets = [0, 136], sizes = [4, 32], strides = [1, 1]} : vector<4x1088xf32> to vector<4x32xf32>
    %115 = arith.mulf %114, %75 : vector<4x32xf32>
    %116 = arith.addf %115, %77 : vector<4x32xf32>
    %cst_64 = arith.constant 0.00999999977 : f32
    %117 = vector.broadcast %cst_64 : f32 to vector<4x32xf32>
    %118 = arith.mulf %117, %116 : vector<4x32xf32>
    %119 = arith.maximumf %116, %118 : vector<4x32xf32>
    %c0_65 = arith.constant 0 : index
    %c0_66 = arith.constant 0 : index
    %c4_67 = arith.constant 4 : index
    %c0_68 = arith.constant 0 : index
    %120 = vector.load %arg6[%c0_65, %c0_66, %c4_67, %c0_68] : memref<1x4x32x32xf32, #tpu.memory_space<vmem>>, vector<1x4x1x32xf32>
    %121 = vector.shape_cast %120 : vector<1x4x1x32xf32> to vector<4x32xf32>
    %122 = vector.shape_cast %119 : vector<4x32xf32> to vector<1x4x1x32xf32>
    tpu.vector_store %arg6[%c0_65, %c0_66, %c4_67, %c0_68], %122 {strides = array<i32>} : memref<1x4x32x32xf32, #tpu.memory_space<vmem>>, vector<1x4x1x32xf32>,
    %123 = vector.extract_strided_slice %29 {offsets = [0, 170], sizes = [4, 32], strides = [1, 1]} : vector<4x1088xf32> to vector<4x32xf32>
    %124 = arith.mulf %123, %75 : vector<4x32xf32>
    %125 = arith.addf %124, %77 : vector<4x32xf32>
    %cst_69 = arith.constant 0.00999999977 : f32
    %126 = vector.broadcast %cst_69 : f32 to vector<4x32xf32>
    %127 = arith.mulf %126, %125 : vector<4x32xf32>
    %128 = arith.maximumf %125, %127 : vector<4x32xf32>
    %c0_70 = arith.constant 0 : index
    %c0_71 = arith.constant 0 : index
    %c5 = arith.constant 5 : index
    %c0_72 = arith.constant 0 : index
    %129 = vector.load %arg6[%c0_70, %c0_71, %c5, %c0_72] : memref<1x4x32x32xf32, #tpu.memory_space<vmem>>, vector<1x4x1x32xf32>
    %130 = vector.shape_cast %129 : vector<1x4x1x32xf32> to vector<4x32xf32>
    %131 = vector.shape_cast %128 : vector<4x32xf32> to vector<1x4x1x32xf32>
    tpu.vector_store %arg6[%c0_70, %c0_71, %c5, %c0_72], %131 {strides = array<i32>} : memref<1x4x32x32xf32, #tpu.memory_space<vmem>>, vector<1x4x1x32xf32>,
    %132 = vector.extract_strided_slice %29 {offsets = [0, 204], sizes = [4, 32], strides = [1, 1]} : vector<4x1088xf32> to vector<4x32xf32>
    %133 = arith.mulf %132, %75 : vector<4x32xf32>
    %134 = arith.addf %133, %77 : vector<4x32xf32>
    %cst_73 = arith.constant 0.00999999977 : f32
    %135 = vector.broadcast %cst_73 : f32 to vector<4x32xf32>
    %136 = arith.mulf %135, %134 : vector<4x32xf32>
    %137 = arith.maximumf %134, %136 : vector<4x32xf32>
    %c0_74 = arith.constant 0 : index
    %c0_75 = arith.constant 0 : index
    %c6 = arith.constant 6 : index
    %c0_76 = arith.constant 0 : index
    %138 = vector.load %arg6[%c0_74, %c0_75, %c6, %c0_76] : memref<1x4x32x32xf32, #tpu.memory_space<vmem>>, vector<1x4x1x32xf32>
    %139 = vector.shape_cast %138 : vector<1x4x1x32xf32> to vector<4x32xf32>
    %140 = vector.shape_cast %137 : vector<4x32xf32> to vector<1x4x1x32xf32>
    tpu.vector_store %arg6[%c0_74, %c0_75, %c6, %c0_76], %140 {strides = array<i32>} : memref<1x4x32x32xf32, #tpu.memory_space<vmem>>, vector<1x4x1x32xf32>,
    %141 = vector.extract_strided_slice %29 {offsets = [0, 238], sizes = [4, 32], strides = [1, 1]} : vector<4x1088xf32> to vector<4x32xf32>
    %142 = arith.mulf %141, %75 : vector<4x32xf32>
    %143 = arith.addf %142, %77 : vector<4x32xf32>
    %cst_77 = arith.constant 0.00999999977 : f32
    %144 = vector.broadcast %cst_77 : f32 to vector<4x32xf32>
    %145 = arith.mulf %144, %143 : vector<4x32xf32>
    %146 = arith.maximumf %143, %145 : vector<4x32xf32>
    %c0_78 = arith.constant 0 : index
    %c0_79 = arith.constant 0 : index
    %c7 = arith.constant 7 : index
    %c0_80 = arith.constant 0 : index
    %147 = vector.load %arg6[%c0_78, %c0_79, %c7, %c0_80] : memref<1x4x32x32xf32, #tpu.memory_space<vmem>>, vector<1x4x1x32xf32>
    %148 = vector.shape_cast %147 : vector<1x4x1x32xf32> to vector<4x32xf32>
    %149 = vector.shape_cast %146 : vector<4x32xf32> to vector<1x4x1x32xf32>
    tpu.vector_store %arg6[%c0_78, %c0_79, %c7, %c0_80], %149 {strides = array<i32>} : memref<1x4x32x32xf32, #tpu.memory_space<vmem>>, vector<1x4x1x32xf32>,
    %150 = vector.extract_strided_slice %29 {offsets = [0, 272], sizes = [4, 32], strides = [1, 1]} : vector<4x1088xf32> to vector<4x32xf32>
    %151 = arith.mulf %150, %75 : vector<4x32xf32>
    %152 = arith.addf %151, %77 : vector<4x32xf32>
    %cst_81 = arith.constant 0.00999999977 : f32
    %153 = vector.broadcast %cst_81 : f32 to vector<4x32xf32>
    %154 = arith.mulf %153, %152 : vector<4x32xf32>
    %155 = arith.maximumf %152, %154 : vector<4x32xf32>
    %c0_82 = arith.constant 0 : index
    %c0_83 = arith.constant 0 : index
    %c8_84 = arith.constant 8 : index
    %c0_85 = arith.constant 0 : index
    %156 = vector.load %arg6[%c0_82, %c0_83, %c8_84, %c0_85] : memref<1x4x32x32xf32, #tpu.memory_space<vmem>>, vector<1x4x1x32xf32>
    %157 = vector.shape_cast %156 : vector<1x4x1x32xf32> to vector<4x32xf32>
    %158 = vector.shape_cast %155 : vector<4x32xf32> to vector<1x4x1x32xf32>
    tpu.vector_store %arg6[%c0_82, %c0_83, %c8_84, %c0_85], %158 {strides = array<i32>} : memref<1x4x32x32xf32, #tpu.memory_space<vmem>>, vector<1x4x1x32xf32>,
    %159 = vector.extract_strided_slice %29 {offsets = [0, 306], sizes = [4, 32], strides = [1, 1]} : vector<4x1088xf32> to vector<4x32xf32>
    %160 = arith.mulf %159, %75 : vector<4x32xf32>
    %161 = arith.addf %160, %77 : vector<4x32xf32>
    %cst_86 = arith.constant 0.00999999977 : f32
    %162 = vector.broadcast %cst_86 : f32 to vector<4x32xf32>
    %163 = arith.mulf %162, %161 : vector<4x32xf32>
    %164 = arith.maximumf %161, %163 : vector<4x32xf32>
    %c0_87 = arith.constant 0 : index
    %c0_88 = arith.constant 0 : index
    %c9 = arith.constant 9 : index
    %c0_89 = arith.constant 0 : index
    %165 = vector.load %arg6[%c0_87, %c0_88, %c9, %c0_89] : memref<1x4x32x32xf32, #tpu.memory_space<vmem>>, vector<1x4x1x32xf32>
    %166 = vector.shape_cast %165 : vector<1x4x1x32xf32> to vector<4x32xf32>
    %167 = vector.shape_cast %164 : vector<4x32xf32> to vector<1x4x1x32xf32>
    tpu.vector_store %arg6[%c0_87, %c0_88, %c9, %c0_89], %167 {strides = array<i32>} : memref<1x4x32x32xf32, #tpu.memory_space<vmem>>, vector<1x4x1x32xf32>,
    %168 = vector.extract_strided_slice %29 {offsets = [0, 340], sizes = [4, 32], strides = [1, 1]} : vector<4x1088xf32> to vector<4x32xf32>
    %169 = arith.mulf %168, %75 : vector<4x32xf32>
    %170 = arith.addf %169, %77 : vector<4x32xf32>
    %cst_90 = arith.constant 0.00999999977 : f32
    %171 = vector.broadcast %cst_90 : f32 to vector<4x32xf32>
    %172 = arith.mulf %171, %170 : vector<4x32xf32>
    %173 = arith.maximumf %170, %172 : vector<4x32xf32>
    %c0_91 = arith.constant 0 : index
    %c0_92 = arith.constant 0 : index
    %c10 = arith.constant 10 : index
    %c0_93 = arith.constant 0 : index
    %174 = vector.load %arg6[%c0_91, %c0_92, %c10, %c0_93] : memref<1x4x32x32xf32, #tpu.memory_space<vmem>>, vector<1x4x1x32xf32>
    %175 = vector.shape_cast %174 : vector<1x4x1x32xf32> to vector<4x32xf32>
    %176 = vector.shape_cast %173 : vector<4x32xf32> to vector<1x4x1x32xf32>
    tpu.vector_store %arg6[%c0_91, %c0_92, %c10, %c0_93], %176 {strides = array<i32>} : memref<1x4x32x32xf32, #tpu.memory_space<vmem>>, vector<1x4x1x32xf32>,
    %177 = vector.extract_strided_slice %29 {offsets = [0, 374], sizes = [4, 32], strides = [1, 1]} : vector<4x1088xf32> to vector<4x32xf32>
    %178 = arith.mulf %177, %75 : vector<4x32xf32>
    %179 = arith.addf %178, %77 : vector<4x32xf32>
    %cst_94 = arith.constant 0.00999999977 : f32
    %180 = vector.broadcast %cst_94 : f32 to vector<4x32xf32>
    %181 = arith.mulf %180, %179 : vector<4x32xf32>
    %182 = arith.maximumf %179, %181 : vector<4x32xf32>
    %c0_95 = arith.constant 0 : index
    %c0_96 = arith.constant 0 : index
    %c11 = arith.constant 11 : index
    %c0_97 = arith.constant 0 : index
    %183 = vector.load %arg6[%c0_95, %c0_96, %c11, %c0_97] : memref<1x4x32x32xf32, #tpu.memory_space<vmem>>, vector<1x4x1x32xf32>
    %184 = vector.shape_cast %183 : vector<1x4x1x32xf32> to vector<4x32xf32>
    %185 = vector.shape_cast %182 : vector<4x32xf32> to vector<1x4x1x32xf32>
    tpu.vector_store %arg6[%c0_95, %c0_96, %c11, %c0_97], %185 {strides = array<i32>} : memref<1x4x32x32xf32, #tpu.memory_space<vmem>>, vector<1x4x1x32xf32>,
    %186 = vector.extract_strided_slice %29 {offsets = [0, 408], sizes = [4, 32], strides = [1, 1]} : vector<4x1088xf32> to vector<4x32xf32>
    %187 = arith.mulf %186, %75 : vector<4x32xf32>
    %188 = arith.addf %187, %77 : vector<4x32xf32>
    %cst_98 = arith.constant 0.00999999977 : f32
    %189 = vector.broadcast %cst_98 : f32 to vector<4x32xf32>
    %190 = arith.mulf %189, %188 : vector<4x32xf32>
    %191 = arith.maximumf %188, %190 : vector<4x32xf32>
    %c0_99 = arith.constant 0 : index
    %c0_100 = arith.constant 0 : index
    %c12_101 = arith.constant 12 : index
    %c0_102 = arith.constant 0 : index
    %192 = vector.load %arg6[%c0_99, %c0_100, %c12_101, %c0_102] : memref<1x4x32x32xf32, #tpu.memory_space<vmem>>, vector<1x4x1x32xf32>
    %193 = vector.shape_cast %192 : vector<1x4x1x32xf32> to vector<4x32xf32>
    %194 = vector.shape_cast %191 : vector<4x32xf32> to vector<1x4x1x32xf32>
    tpu.vector_store %arg6[%c0_99, %c0_100, %c12_101, %c0_102], %194 {strides = array<i32>} : memref<1x4x32x32xf32, #tpu.memory_space<vmem>>, vector<1x4x1x32xf32>,
    %195 = vector.extract_strided_slice %29 {offsets = [0, 442], sizes = [4, 32], strides = [1, 1]} : vector<4x1088xf32> to vector<4x32xf32>
    %196 = arith.mulf %195, %75 : vector<4x32xf32>
    %197 = arith.addf %196, %77 : vector<4x32xf32>
    %cst_103 = arith.constant 0.00999999977 : f32
    %198 = vector.broadcast %cst_103 : f32 to vector<4x32xf32>
    %199 = arith.mulf %198, %197 : vector<4x32xf32>
    %200 = arith.maximumf %197, %199 : vector<4x32xf32>
    %c0_104 = arith.constant 0 : index
    %c0_105 = arith.constant 0 : index
    %c13 = arith.constant 13 : index
    %c0_106 = arith.constant 0 : index
    %201 = vector.load %arg6[%c0_104, %c0_105, %c13, %c0_106] : memref<1x4x32x32xf32, #tpu.memory_space<vmem>>, vector<1x4x1x32xf32>
    %202 = vector.shape_cast %201 : vector<1x4x1x32xf32> to vector<4x32xf32>
    %203 = vector.shape_cast %200 : vector<4x32xf32> to vector<1x4x1x32xf32>
    tpu.vector_store %arg6[%c0_104, %c0_105, %c13, %c0_106], %203 {strides = array<i32>} : memref<1x4x32x32xf32, #tpu.memory_space<vmem>>, vector<1x4x1x32xf32>,
    %204 = vector.extract_strided_slice %29 {offsets = [0, 476], sizes = [4, 32], strides = [1, 1]} : vector<4x1088xf32> to vector<4x32xf32>
    %205 = arith.mulf %204, %75 : vector<4x32xf32>
    %206 = arith.addf %205, %77 : vector<4x32xf32>
    %cst_107 = arith.constant 0.00999999977 : f32
    %207 = vector.broadcast %cst_107 : f32 to vector<4x32xf32>
    %208 = arith.mulf %207, %206 : vector<4x32xf32>
    %209 = arith.maximumf %206, %208 : vector<4x32xf32>
    %c0_108 = arith.constant 0 : index
    %c0_109 = arith.constant 0 : index
    %c14 = arith.constant 14 : index
    %c0_110 = arith.constant 0 : index
    %210 = vector.load %arg6[%c0_108, %c0_109, %c14, %c0_110] : memref<1x4x32x32xf32, #tpu.memory_space<vmem>>, vector<1x4x1x32xf32>
    %211 = vector.shape_cast %210 : vector<1x4x1x32xf32> to vector<4x32xf32>
    %212 = vector.shape_cast %209 : vector<4x32xf32> to vector<1x4x1x32xf32>
    tpu.vector_store %arg6[%c0_108, %c0_109, %c14, %c0_110], %212 {strides = array<i32>} : memref<1x4x32x32xf32, #tpu.memory_space<vmem>>, vector<1x4x1x32xf32>,
    %213 = vector.extract_strided_slice %29 {offsets = [0, 510], sizes = [4, 32], strides = [1, 1]} : vector<4x1088xf32> to vector<4x32xf32>
    %214 = arith.mulf %213, %75 : vector<4x32xf32>
    %215 = arith.addf %214, %77 : vector<4x32xf32>
    %cst_111 = arith.constant 0.00999999977 : f32
    %216 = vector.broadcast %cst_111 : f32 to vector<4x32xf32>
    %217 = arith.mulf %216, %215 : vector<4x32xf32>
    %218 = arith.maximumf %215, %217 : vector<4x32xf32>
    %c0_112 = arith.constant 0 : index
    %c0_113 = arith.constant 0 : index
    %c15 = arith.constant 15 : index
    %c0_114 = arith.constant 0 : index
    %219 = vector.load %arg6[%c0_112, %c0_113, %c15, %c0_114] : memref<1x4x32x32xf32, #tpu.memory_space<vmem>>, vector<1x4x1x32xf32>
    %220 = vector.shape_cast %219 : vector<1x4x1x32xf32> to vector<4x32xf32>
    %221 = vector.shape_cast %218 : vector<4x32xf32> to vector<1x4x1x32xf32>
    tpu.vector_store %arg6[%c0_112, %c0_113, %c15, %c0_114], %221 {strides = array<i32>} : memref<1x4x32x32xf32, #tpu.memory_space<vmem>>, vector<1x4x1x32xf32>,
    %222 = vector.extract_strided_slice %29 {offsets = [0, 544], sizes = [4, 32], strides = [1, 1]} : vector<4x1088xf32> to vector<4x32xf32>
    %223 = arith.mulf %222, %75 : vector<4x32xf32>
    %224 = arith.addf %223, %77 : vector<4x32xf32>
    %cst_115 = arith.constant 0.00999999977 : f32
    %225 = vector.broadcast %cst_115 : f32 to vector<4x32xf32>
    %226 = arith.mulf %225, %224 : vector<4x32xf32>
    %227 = arith.maximumf %224, %226 : vector<4x32xf32>
    %c0_116 = arith.constant 0 : index
    %c0_117 = arith.constant 0 : index
    %c16_118 = arith.constant 16 : index
    %c0_119 = arith.constant 0 : index
    %228 = vector.load %arg6[%c0_116, %c0_117, %c16_118, %c0_119] : memref<1x4x32x32xf32, #tpu.memory_space<vmem>>, vector<1x4x1x32xf32>
    %229 = vector.shape_cast %228 : vector<1x4x1x32xf32> to vector<4x32xf32>
    %230 = vector.shape_cast %227 : vector<4x32xf32> to vector<1x4x1x32xf32>
    tpu.vector_store %arg6[%c0_116, %c0_117, %c16_118, %c0_119], %230 {strides = array<i32>} : memref<1x4x32x32xf32, #tpu.memory_space<vmem>>, vector<1x4x1x32xf32>,
    %231 = vector.extract_strided_slice %29 {offsets = [0, 578], sizes = [4, 32], strides = [1, 1]} : vector<4x1088xf32> to vector<4x32xf32>
    %232 = arith.mulf %231, %75 : vector<4x32xf32>
    %233 = arith.addf %232, %77 : vector<4x32xf32>
    %cst_120 = arith.constant 0.00999999977 : f32
    %234 = vector.broadcast %cst_120 : f32 to vector<4x32xf32>
    %235 = arith.mulf %234, %233 : vector<4x32xf32>
    %236 = arith.maximumf %233, %235 : vector<4x32xf32>
    %c0_121 = arith.constant 0 : index
    %c0_122 = arith.constant 0 : index
    %c17 = arith.constant 17 : index
    %c0_123 = arith.constant 0 : index
    %237 = vector.load %arg6[%c0_121, %c0_122, %c17, %c0_123] : memref<1x4x32x32xf32, #tpu.memory_space<vmem>>, vector<1x4x1x32xf32>
    %238 = vector.shape_cast %237 : vector<1x4x1x32xf32> to vector<4x32xf32>
    %239 = vector.shape_cast %236 : vector<4x32xf32> to vector<1x4x1x32xf32>
    tpu.vector_store %arg6[%c0_121, %c0_122, %c17, %c0_123], %239 {strides = array<i32>} : memref<1x4x32x32xf32, #tpu.memory_space<vmem>>, vector<1x4x1x32xf32>,
    %240 = vector.extract_strided_slice %29 {offsets = [0, 612], sizes = [4, 32], strides = [1, 1]} : vector<4x1088xf32> to vector<4x32xf32>
    %241 = arith.mulf %240, %75 : vector<4x32xf32>
    %242 = arith.addf %241, %77 : vector<4x32xf32>
    %cst_124 = arith.constant 0.00999999977 : f32
    %243 = vector.broadcast %cst_124 : f32 to vector<4x32xf32>
    %244 = arith.mulf %243, %242 : vector<4x32xf32>
    %245 = arith.maximumf %242, %244 : vector<4x32xf32>
    %c0_125 = arith.constant 0 : index
    %c0_126 = arith.constant 0 : index
    %c18 = arith.constant 18 : index
    %c0_127 = arith.constant 0 : index
    %246 = vector.load %arg6[%c0_125, %c0_126, %c18, %c0_127] : memref<1x4x32x32xf32, #tpu.memory_space<vmem>>, vector<1x4x1x32xf32>
    %247 = vector.shape_cast %246 : vector<1x4x1x32xf32> to vector<4x32xf32>
    %248 = vector.shape_cast %245 : vector<4x32xf32> to vector<1x4x1x32xf32>
    tpu.vector_store %arg6[%c0_125, %c0_126, %c18, %c0_127], %248 {strides = array<i32>} : memref<1x4x32x32xf32, #tpu.memory_space<vmem>>, vector<1x4x1x32xf32>,
    %249 = vector.extract_strided_slice %29 {offsets = [0, 646], sizes = [4, 32], strides = [1, 1]} : vector<4x1088xf32> to vector<4x32xf32>
    %250 = arith.mulf %249, %75 : vector<4x32xf32>
    %251 = arith.addf %250, %77 : vector<4x32xf32>
    %cst_128 = arith.constant 0.00999999977 : f32
    %252 = vector.broadcast %cst_128 : f32 to vector<4x32xf32>
    %253 = arith.mulf %252, %251 : vector<4x32xf32>
    %254 = arith.maximumf %251, %253 : vector<4x32xf32>
    %c0_129 = arith.constant 0 : index
    %c0_130 = arith.constant 0 : index
    %c19 = arith.constant 19 : index
    %c0_131 = arith.constant 0 : index
    %255 = vector.load %arg6[%c0_129, %c0_130, %c19, %c0_131] : memref<1x4x32x32xf32, #tpu.memory_space<vmem>>, vector<1x4x1x32xf32>
    %256 = vector.shape_cast %255 : vector<1x4x1x32xf32> to vector<4x32xf32>
    %257 = vector.shape_cast %254 : vector<4x32xf32> to vector<1x4x1x32xf32>
    tpu.vector_store %arg6[%c0_129, %c0_130, %c19, %c0_131], %257 {strides = array<i32>} : memref<1x4x32x32xf32, #tpu.memory_space<vmem>>, vector<1x4x1x32xf32>,
    %258 = vector.extract_strided_slice %29 {offsets = [0, 680], sizes = [4, 32], strides = [1, 1]} : vector<4x1088xf32> to vector<4x32xf32>
    %259 = arith.mulf %258, %75 : vector<4x32xf32>
    %260 = arith.addf %259, %77 : vector<4x32xf32>
    %cst_132 = arith.constant 0.00999999977 : f32
    %261 = vector.broadcast %cst_132 : f32 to vector<4x32xf32>
    %262 = arith.mulf %261, %260 : vector<4x32xf32>
    %263 = arith.maximumf %260, %262 : vector<4x32xf32>
    %c0_133 = arith.constant 0 : index
    %c0_134 = arith.constant 0 : index
    %c20_135 = arith.constant 20 : index
    %c0_136 = arith.constant 0 : index
    %264 = vector.load %arg6[%c0_133, %c0_134, %c20_135, %c0_136] : memref<1x4x32x32xf32, #tpu.memory_space<vmem>>, vector<1x4x1x32xf32>
    %265 = vector.shape_cast %264 : vector<1x4x1x32xf32> to vector<4x32xf32>
    %266 = vector.shape_cast %263 : vector<4x32xf32> to vector<1x4x1x32xf32>
    tpu.vector_store %arg6[%c0_133, %c0_134, %c20_135, %c0_136], %266 {strides = array<i32>} : memref<1x4x32x32xf32, #tpu.memory_space<vmem>>, vector<1x4x1x32xf32>,
    %267 = vector.extract_strided_slice %29 {offsets = [0, 714], sizes = [4, 32], strides = [1, 1]} : vector<4x1088xf32> to vector<4x32xf32>
    %268 = arith.mulf %267, %75 : vector<4x32xf32>
    %269 = arith.addf %268, %77 : vector<4x32xf32>
    %cst_137 = arith.constant 0.00999999977 : f32
    %270 = vector.broadcast %cst_137 : f32 to vector<4x32xf32>
    %271 = arith.mulf %270, %269 : vector<4x32xf32>
    %272 = arith.maximumf %269, %271 : vector<4x32xf32>
    %c0_138 = arith.constant 0 : index
    %c0_139 = arith.constant 0 : index
    %c21 = arith.constant 21 : index
    %c0_140 = arith.constant 0 : index
    %273 = vector.load %arg6[%c0_138, %c0_139, %c21, %c0_140] : memref<1x4x32x32xf32, #tpu.memory_space<vmem>>, vector<1x4x1x32xf32>
    %274 = vector.shape_cast %273 : vector<1x4x1x32xf32> to vector<4x32xf32>
    %275 = vector.shape_cast %272 : vector<4x32xf32> to vector<1x4x1x32xf32>
    tpu.vector_store %arg6[%c0_138, %c0_139, %c21, %c0_140], %275 {strides = array<i32>} : memref<1x4x32x32xf32, #tpu.memory_space<vmem>>, vector<1x4x1x32xf32>,
    %276 = vector.extract_strided_slice %29 {offsets = [0, 748], sizes = [4, 32], strides = [1, 1]} : vector<4x1088xf32> to vector<4x32xf32>
    %277 = arith.mulf %276, %75 : vector<4x32xf32>
    %278 = arith.addf %277, %77 : vector<4x32xf32>
    %cst_141 = arith.constant 0.00999999977 : f32
    %279 = vector.broadcast %cst_141 : f32 to vector<4x32xf32>
    %280 = arith.mulf %279, %278 : vector<4x32xf32>
    %281 = arith.maximumf %278, %280 : vector<4x32xf32>
    %c0_142 = arith.constant 0 : index
    %c0_143 = arith.constant 0 : index
    %c22 = arith.constant 22 : index
    %c0_144 = arith.constant 0 : index
    %282 = vector.load %arg6[%c0_142, %c0_143, %c22, %c0_144] : memref<1x4x32x32xf32, #tpu.memory_space<vmem>>, vector<1x4x1x32xf32>
    %283 = vector.shape_cast %282 : vector<1x4x1x32xf32> to vector<4x32xf32>
    %284 = vector.shape_cast %281 : vector<4x32xf32> to vector<1x4x1x32xf32>
    tpu.vector_store %arg6[%c0_142, %c0_143, %c22, %c0_144], %284 {strides = array<i32>} : memref<1x4x32x32xf32, #tpu.memory_space<vmem>>, vector<1x4x1x32xf32>,
    %285 = vector.extract_strided_slice %29 {offsets = [0, 782], sizes = [4, 32], strides = [1, 1]} : vector<4x1088xf32> to vector<4x32xf32>
    %286 = arith.mulf %285, %75 : vector<4x32xf32>
    %287 = arith.addf %286, %77 : vector<4x32xf32>
    %cst_145 = arith.constant 0.00999999977 : f32
    %288 = vector.broadcast %cst_145 : f32 to vector<4x32xf32>
    %289 = arith.mulf %288, %287 : vector<4x32xf32>
    %290 = arith.maximumf %287, %289 : vector<4x32xf32>
    %c0_146 = arith.constant 0 : index
    %c0_147 = arith.constant 0 : index
    %c23 = arith.constant 23 : index
    %c0_148 = arith.constant 0 : index
    %291 = vector.load %arg6[%c0_146, %c0_147, %c23, %c0_148] : memref<1x4x32x32xf32, #tpu.memory_space<vmem>>, vector<1x4x1x32xf32>
    %292 = vector.shape_cast %291 : vector<1x4x1x32xf32> to vector<4x32xf32>
    %293 = vector.shape_cast %290 : vector<4x32xf32> to vector<1x4x1x32xf32>
    tpu.vector_store %arg6[%c0_146, %c0_147, %c23, %c0_148], %293 {strides = array<i32>} : memref<1x4x32x32xf32, #tpu.memory_space<vmem>>, vector<1x4x1x32xf32>,
    %294 = vector.extract_strided_slice %29 {offsets = [0, 816], sizes = [4, 32], strides = [1, 1]} : vector<4x1088xf32> to vector<4x32xf32>
    %295 = arith.mulf %294, %75 : vector<4x32xf32>
    %296 = arith.addf %295, %77 : vector<4x32xf32>
    %cst_149 = arith.constant 0.00999999977 : f32
    %297 = vector.broadcast %cst_149 : f32 to vector<4x32xf32>
    %298 = arith.mulf %297, %296 : vector<4x32xf32>
    %299 = arith.maximumf %296, %298 : vector<4x32xf32>
    %c0_150 = arith.constant 0 : index
    %c0_151 = arith.constant 0 : index
    %c24_152 = arith.constant 24 : index
    %c0_153 = arith.constant 0 : index
    %300 = vector.load %arg6[%c0_150, %c0_151, %c24_152, %c0_153] : memref<1x4x32x32xf32, #tpu.memory_space<vmem>>, vector<1x4x1x32xf32>
    %301 = vector.shape_cast %300 : vector<1x4x1x32xf32> to vector<4x32xf32>
    %302 = vector.shape_cast %299 : vector<4x32xf32> to vector<1x4x1x32xf32>
    tpu.vector_store %arg6[%c0_150, %c0_151, %c24_152, %c0_153], %302 {strides = array<i32>} : memref<1x4x32x32xf32, #tpu.memory_space<vmem>>, vector<1x4x1x32xf32>,
    %303 = vector.extract_strided_slice %29 {offsets = [0, 850], sizes = [4, 32], strides = [1, 1]} : vector<4x1088xf32> to vector<4x32xf32>
    %304 = arith.mulf %303, %75 : vector<4x32xf32>
    %305 = arith.addf %304, %77 : vector<4x32xf32>
    %cst_154 = arith.constant 0.00999999977 : f32
    %306 = vector.broadcast %cst_154 : f32 to vector<4x32xf32>
    %307 = arith.mulf %306, %305 : vector<4x32xf32>
    %308 = arith.maximumf %305, %307 : vector<4x32xf32>
    %c0_155 = arith.constant 0 : index
    %c0_156 = arith.constant 0 : index
    %c25 = arith.constant 25 : index
    %c0_157 = arith.constant 0 : index
    %309 = vector.load %arg6[%c0_155, %c0_156, %c25, %c0_157] : memref<1x4x32x32xf32, #tpu.memory_space<vmem>>, vector<1x4x1x32xf32>
    %310 = vector.shape_cast %309 : vector<1x4x1x32xf32> to vector<4x32xf32>
    %311 = vector.shape_cast %308 : vector<4x32xf32> to vector<1x4x1x32xf32>
    tpu.vector_store %arg6[%c0_155, %c0_156, %c25, %c0_157], %311 {strides = array<i32>} : memref<1x4x32x32xf32, #tpu.memory_space<vmem>>, vector<1x4x1x32xf32>,
    %312 = vector.extract_strided_slice %29 {offsets = [0, 884], sizes = [4, 32], strides = [1, 1]} : vector<4x1088xf32> to vector<4x32xf32>
    %313 = arith.mulf %312, %75 : vector<4x32xf32>
    %314 = arith.addf %313, %77 : vector<4x32xf32>
    %cst_158 = arith.constant 0.00999999977 : f32
    %315 = vector.broadcast %cst_158 : f32 to vector<4x32xf32>
    %316 = arith.mulf %315, %314 : vector<4x32xf32>
    %317 = arith.maximumf %314, %316 : vector<4x32xf32>
    %c0_159 = arith.constant 0 : index
    %c0_160 = arith.constant 0 : index
    %c26 = arith.constant 26 : index
    %c0_161 = arith.constant 0 : index
    %318 = vector.load %arg6[%c0_159, %c0_160, %c26, %c0_161] : memref<1x4x32x32xf32, #tpu.memory_space<vmem>>, vector<1x4x1x32xf32>
    %319 = vector.shape_cast %318 : vector<1x4x1x32xf32> to vector<4x32xf32>
    %320 = vector.shape_cast %317 : vector<4x32xf32> to vector<1x4x1x32xf32>
    tpu.vector_store %arg6[%c0_159, %c0_160, %c26, %c0_161], %320 {strides = array<i32>} : memref<1x4x32x32xf32, #tpu.memory_space<vmem>>, vector<1x4x1x32xf32>,
    %321 = vector.extract_strided_slice %29 {offsets = [0, 918], sizes = [4, 32], strides = [1, 1]} : vector<4x1088xf32> to vector<4x32xf32>
    %322 = arith.mulf %321, %75 : vector<4x32xf32>
    %323 = arith.addf %322, %77 : vector<4x32xf32>
    %cst_162 = arith.constant 0.00999999977 : f32
    %324 = vector.broadcast %cst_162 : f32 to vector<4x32xf32>
    %325 = arith.mulf %324, %323 : vector<4x32xf32>
    %326 = arith.maximumf %323, %325 : vector<4x32xf32>
    %c0_163 = arith.constant 0 : index
    %c0_164 = arith.constant 0 : index
    %c27 = arith.constant 27 : index
    %c0_165 = arith.constant 0 : index
    %327 = vector.load %arg6[%c0_163, %c0_164, %c27, %c0_165] : memref<1x4x32x32xf32, #tpu.memory_space<vmem>>, vector<1x4x1x32xf32>
    %328 = vector.shape_cast %327 : vector<1x4x1x32xf32> to vector<4x32xf32>
    %329 = vector.shape_cast %326 : vector<4x32xf32> to vector<1x4x1x32xf32>
    tpu.vector_store %arg6[%c0_163, %c0_164, %c27, %c0_165], %329 {strides = array<i32>} : memref<1x4x32x32xf32, #tpu.memory_space<vmem>>, vector<1x4x1x32xf32>,
    %330 = vector.extract_strided_slice %29 {offsets = [0, 952], sizes = [4, 32], strides = [1, 1]} : vector<4x1088xf32> to vector<4x32xf32>
    %331 = arith.mulf %330, %75 : vector<4x32xf32>
    %332 = arith.addf %331, %77 : vector<4x32xf32>
    %cst_166 = arith.constant 0.00999999977 : f32
    %333 = vector.broadcast %cst_166 : f32 to vector<4x32xf32>
    %334 = arith.mulf %333, %332 : vector<4x32xf32>
    %335 = arith.maximumf %332, %334 : vector<4x32xf32>
    %c0_167 = arith.constant 0 : index
    %c0_168 = arith.constant 0 : index
    %c28_169 = arith.constant 28 : index
    %c0_170 = arith.constant 0 : index
    %336 = vector.load %arg6[%c0_167, %c0_168, %c28_169, %c0_170] : memref<1x4x32x32xf32, #tpu.memory_space<vmem>>, vector<1x4x1x32xf32>
    %337 = vector.shape_cast %336 : vector<1x4x1x32xf32> to vector<4x32xf32>
    %338 = vector.shape_cast %335 : vector<4x32xf32> to vector<1x4x1x32xf32>
    tpu.vector_store %arg6[%c0_167, %c0_168, %c28_169, %c0_170], %338 {strides = array<i32>} : memref<1x4x32x32xf32, #tpu.memory_space<vmem>>, vector<1x4x1x32xf32>,
    %339 = vector.extract_strided_slice %29 {offsets = [0, 986], sizes = [4, 32], strides = [1, 1]} : vector<4x1088xf32> to vector<4x32xf32>
    %340 = arith.mulf %339, %75 : vector<4x32xf32>
    %341 = arith.addf %340, %77 : vector<4x32xf32>
    %cst_171 = arith.constant 0.00999999977 : f32
    %342 = vector.broadcast %cst_171 : f32 to vector<4x32xf32>
    %343 = arith.mulf %342, %341 : vector<4x32xf32>
    %344 = arith.maximumf %341, %343 : vector<4x32xf32>
    %c0_172 = arith.constant 0 : index
    %c0_173 = arith.constant 0 : index
    %c29 = arith.constant 29 : index
    %c0_174 = arith.constant 0 : index
    %345 = vector.load %arg6[%c0_172, %c0_173, %c29, %c0_174] : memref<1x4x32x32xf32, #tpu.memory_space<vmem>>, vector<1x4x1x32xf32>
    %346 = vector.shape_cast %345 : vector<1x4x1x32xf32> to vector<4x32xf32>
    %347 = vector.shape_cast %344 : vector<4x32xf32> to vector<1x4x1x32xf32>
    tpu.vector_store %arg6[%c0_172, %c0_173, %c29, %c0_174], %347 {strides = array<i32>} : memref<1x4x32x32xf32, #tpu.memory_space<vmem>>, vector<1x4x1x32xf32>,
    %348 = vector.extract_strided_slice %29 {offsets = [0, 1020], sizes = [4, 32], strides = [1, 1]} : vector<4x1088xf32> to vector<4x32xf32>
    %349 = arith.mulf %348, %75 : vector<4x32xf32>
    %350 = arith.addf %349, %77 : vector<4x32xf32>
    %cst_175 = arith.constant 0.00999999977 : f32
    %351 = vector.broadcast %cst_175 : f32 to vector<4x32xf32>
    %352 = arith.mulf %351, %350 : vector<4x32xf32>
    %353 = arith.maximumf %350, %352 : vector<4x32xf32>
    %c0_176 = arith.constant 0 : index
    %c0_177 = arith.constant 0 : index
    %c30 = arith.constant 30 : index
    %c0_178 = arith.constant 0 : index
    %354 = vector.load %arg6[%c0_176, %c0_177, %c30, %c0_178] : memref<1x4x32x32xf32, #tpu.memory_space<vmem>>, vector<1x4x1x32xf32>
    %355 = vector.shape_cast %354 : vector<1x4x1x32xf32> to vector<4x32xf32>
    %356 = vector.shape_cast %353 : vector<4x32xf32> to vector<1x4x1x32xf32>
    tpu.vector_store %arg6[%c0_176, %c0_177, %c30, %c0_178], %356 {strides = array<i32>} : memref<1x4x32x32xf32, #tpu.memory_space<vmem>>, vector<1x4x1x32xf32>,
    %357 = vector.extract_strided_slice %29 {offsets = [0, 1054], sizes = [4, 32], strides = [1, 1]} : vector<4x1088xf32> to vector<4x32xf32>
    %358 = arith.mulf %357, %75 : vector<4x32xf32>
    %359 = arith.addf %358, %77 : vector<4x32xf32>
    %cst_179 = arith.constant 0.00999999977 : f32
    %360 = vector.broadcast %cst_179 : f32 to vector<4x32xf32>
    %361 = arith.mulf %360, %359 : vector<4x32xf32>
    %362 = arith.maximumf %359, %361 : vector<4x32xf32>
    %c0_180 = arith.constant 0 : index
    %c0_181 = arith.constant 0 : index
    %c31 = arith.constant 31 : index
    %c0_182 = arith.constant 0 : index
    %363 = vector.load %arg6[%c0_180, %c0_181, %c31, %c0_182] : memref<1x4x32x32xf32, #tpu.memory_space<vmem>>, vector<1x4x1x32xf32>
    %364 = vector.shape_cast %363 : vector<1x4x1x32xf32> to vector<4x32xf32>
    %365 = vector.shape_cast %362 : vector<4x32xf32> to vector<1x4x1x32xf32>
    tpu.vector_store %arg6[%c0_180, %c0_181, %c31, %c0_182], %365 {strides = array<i32>} : memref<1x4x32x32xf32, #tpu.memory_space<vmem>>, vector<1x4x1x32xf32>,
    return
  }
  func.func @transform_0(%arg0: i32, %arg1: i32) -> (i32, i32, i32) {
    %c0_i32 = arith.constant 0 : i32
    %c0_i32_0 = arith.constant 0 : i32
    %c0_i32_1 = arith.constant 0 : i32
    return %arg0, %c0_i32, %c0_i32_0 : i32, i32, i32
  }
  func.func @transform_1(%arg0: i32, %arg1: i32) -> (i32, i32) {
    %c0_i32 = arith.constant 0 : i32
    %c0_i32_0 = arith.constant 0 : i32
    return %arg1, %c0_i32 : i32, i32
  }
  func.func @transform_2(%arg0: i32, %arg1: i32) -> (i32, i32) {
    %c0_i32 = arith.constant 0 : i32
    %c0_i32_0 = arith.constant 0 : i32
    return %arg1, %c0_i32 : i32, i32
  }
  func.func @transform_4(%arg0: i32, %arg1: i32) -> (i32, i32, i32, i32) {
    %c0_i32 = arith.constant 0 : i32
    %c0_i32_0 = arith.constant 0 : i32
    %c0_i32_1 = arith.constant 0 : i32
    return %arg0, %arg1, %c0_i32, %c0_i32_0 : i32, i32, i32, i32
  }
}

</mosaic_0001>

<bundles_post_ra>
// kernel: upsample2d_forward.1
= control target key start
LH: loop header
LB: loop body
LE: loop exit
PB: predicated region body
PF: predicated region fallthrough
CT: control target
= control target key end

     0   :  { %9 = vsyncpa [#allocation4], 0  ;;  %s5323_s0 = inlined_call_operand.vmem [shape: f32[2,4,1190], index: 0, kind: input, shape index: {}]   ;;  %s5324_s1 = inlined_call_operand.vmem [shape: f32[4,36], index: 1, kind: input, shape index: {}]   ;;  %s5325_s2 = inlined_call_operand.vmem [shape: f32[4,2], index: 2, kind: input, shape index: {}]   ;;  %s5326_s3 = inlined_call_operand.hbm [shape: f32[2,8,32,32], index: 3, kind: input, shape index: {}, may-alias: {3,4}]   ;;  %s5327_s4 = inlined_call_operand.hbm [shape: f32[2,8,32,32], index: 4, kind: output, shape index: {}, may-alias: {3,4}]  }
   0x1   :  { %11 = vsyncpa [#allocation4 + $0x1], 0  ;;  %s3403_s15 = smov 0   ;;  %s3405_s16 = smov 0  }
   0x2   :  { %s3407_s17 = smov 0   ;;  %s3409_s18 = smov 0  }
   0x3   :  { %s3411_s19 = smov 0   ;;  %s3413_s20 = smov 0  }
   0x4 LB: > { %s3018_s3 = sadd.s32 4294967295, %s3329_s20   ;;  %s3019_s21 = sadd.s32 4294967294, %s3329_s20   ;;  %s3329_s20 = sphi %s3413_s20, %s17_s20   ;;  %s3325_s19 = sphi %s3411_s19, %s5498_s19   ;;  %s3321_s18 = sphi %s3409_s18, %s5497_s18   ;;  %s3317_s17 = sphi %s3407_s17, %s5496_s17   ;;  %s3313_s16 = sphi %s3405_s16, %s5495_s16   ;;  %s3309_s15 = sphi %s3403_s15, %s5494_s15  }
   0x5   : > { %s29_s22 = sadd.s32 1, %s3325_s19  ;;  %s116_s23 = sadd.s32 1, %s3317_s17 }
   0x6   : > { %p31_p0 = scmp.ge.s32.totalorder %s29_s22, 2  ;;  %p126_p1 = scmp.ne.s32.totalorder %s3317_s17, %s3313_s16 }
   0x7   : > { %p127_p2 = scmp.eq.s32.totalorder %s3018_s3, 1  ;;  %p132_p3 = scmp.ne.s32.totalorder %s3313_s16, %s3309_s15 }
   0x8   : > { %s5500_s22 = smov (%p31_p0, %s29_s22), 0  ;;  %p133_p5 = scmp.eq.s32.totalorder %s3019_s21, 1 }
   0x9   : > { %p3443_p4 = por %p127_p2, %p126_p1  ;;  %s111_s25 = ssub.s32 %s3325_s19, %s5500_s22 }
   0xa   : > { %p3024_p6 = scmp.ge.s32.totalorder %s3329_s20, 1  ;;  %p114_p7 = scmp.eq.s32.totalorder %s111_s25, 0 }
   0xb   : > { %p3450_p8 = por %p133_p5, %p132_p3  ;;  %p173_p9 = scmp.lt.s32.totalorder %s3329_s20, 3 }
   0xc   : > { %s3456_s27 = scalar_select %p114_p7, %s3317_s17, %s116_s23  }
   0xd   : > { %p174_p10 = pnand %p3024_p6, %p173_p9 }
   0xf   : > { %177 = sbr.rel (%p174_p10) target bundleno = 1386 (0x56a), region = 32 }
  0x16   : > { %p205_p11 = scmp.lt.s32.totalorder %s3321_s18, 1  ;;  %s3331_s7 = smov 126   ;;  %v3339_v12 = vmov 0.0   ;;  %vm5328_vm0 = vcmask 519168   ;;  %vm339_vm1 = vcmask 1031168   ;;  %vm399_vm2 = vcmask 769024  }
  0x17   : > { %s3332_s8 = smov 127   ;;  %s3333_s9 = smov 94   ;;  %876 = vmatprep.mubr.f32.mxu0 %v3339_v12  ;;  %947 = vmatprep.mubr.f32.mxu1 %v3339_v12  ;;  %vm279_vm3 = vcmask 1039360   ;;  %vm458_vm4 = vcmask 760832   ;;  %vm518_vm5 = vcmask 752640   ;;  %vm580_vm6 = vcmask 490496  }
  0x18   : > { %s206_s28 = scalar_select %p205_p11, %s3321_s18, 1  ;;  %vm643_vm7 = vcmask 482304   ;;  %vm706_vm8 = vcmask 474112   ;;  %vm784_vm9 = vcmask 1043456   ;;  %vm780_vm10 = vcmask 293888  }
  0x19   : > { %s3334_s10 = smov 93   ;;  %s3335_s11 = smov 92   ;;  %vm305_vm11 = vcmask 523268   ;;  %vm3341_vm12 = vmmov 0  }
  0x1a   : > { %s3113_s29 = smul.u32 40, %s206_s28  ;;  %s3336_s12 = smov 60  }
  0x1b   : > { %s3337_s13 = smov 59   ;;  %s3338_s14 = smov 58  }
  0x1c   : > { %s3463_s6 = scalar_lea.vmem %s5323_s0, %s3113_s29  ;;  %s3344_s28 = smov 1  }
  0x1d   : > { %v3466_v0 = vld [vmem:[%s3463_s6 + $0x8] sm:$0xff]  ;;  %v3469_v1 = vld [vmem:[%s3463_s6] sm:$0xff]  ;;  %v3472_v2 = vld [vmem:[%s3463_s6 + $0x10] sm:$0xff]  ;;  %s5340_s29 = sand.u32 1, %s3313_s16   ;;  %s5345_s3 = smov 44  }
  0x1e   : > { %325 = vrot.lane.b32.xlu1 %v3466_v0, %s3331_s7  ;;  %v3478_v3 = vcombine.high %v3466_v0, %v3466_v0  ;;  %263 = vrot.lane.b32.xlu0 %v3469_v1, %s3332_s8  ;;  %v317_v4 = vcombine.high %v3469_v1, %v3469_v1  ;;  %v3485_v5 = vld [vmem:[%s3463_s6 + $0x18] sm:$0xff]  ;;  %236 = vst [vmem:[#allocation2] sm:$0xf] %v3469_v1  ;;  %238 = vst [vmem:[#allocation2 + $0x10] sm:$0xf] %v3466_v0  ;;  %v549_v28 = vld [vmem:[%s3463_s6 + $0x20] sm:$0xff] }
  0x1f   : > { %240 = vst [vmem:[#allocation2 + $0x20] sm:$0xf] %v3472_v2  ;;  %v3492_v6 = vcombine.high %v3472_v2, %v3472_v2  ;;  %242 = vst [vmem:[#allocation2 + $0x30] sm:$0xf] %v3485_v5  ;;  %v3497_v7 = vcombine.high %v3485_v5, %v3485_v5  ;;  %v377_v8 = vcombine.low %v3466_v0, %v3466_v0  ;;  %v223_v13 = vld [vmem:[%s3463_s6 + $0x20] sm:$0xf] }
  0x20   : > { %237 = vst [vmem:[#allocation2 + $0x8] sm:$0xf] %v317_v4  ;;  %239 = vst [vmem:[#allocation2 + $0x18] sm:$0xf] %v3478_v3  ;;  %v256_v9 = vcombine.low %v3469_v1, %v3469_v1  ;;  %v258_v10 = vcombine.low %v3472_v2, %v3472_v2  ;;  %v259_v11 = vcombine.low %v3485_v5, %v3485_v5  ;;  %v3244_v14 = vld [vmem:[%s3463_s6 + $0x20] ss:$0 sps:$4 sm:$0xff]  }
  0x21   : > { %241 = vst [vmem:[#allocation2 + $0x28] sm:$0xf] %v3492_v6  ;;  %243 = vst [vmem:[#allocation2 + $0x38] sm:$0xf] %v3497_v7  ;;  %v311_v15 = vld [vmem:[%s3463_s6 + $0x20] sm:$0xf]  ;;  %v622_v33 = vcombine.low %v549_v28, %v549_v28  ;;  %v559_v43 = vcombine.high %v549_v28, %v549_v28 }
  0x22   : > { %323 = vrot.lane.b32.xlu1 %v317_v4, %s3331_s7  ;;  %383 = vrot.lane.b32.xlu0 %v3469_v1, %s3333_s9  ;;  %245 = vst.msk [vmem:[#allocation2 + $0x40] sm:$0xf] %vm5328_vm0, %v223_v13  ;;  %v3245_v16 = vld [vmem:[%s3463_s6 + $0x20] ss:$0 sps:$4 sm:$0xff]   ;;  %s3025_s30 = sshll.u32 %s5340_s29, 7  ;;  %s5341_s21 = smov 104  }
  0x23   : > { %v430_v19 = vld [vmem:[%s3463_s6 + $0x20] sm:$0xf]  ;;  %s3980_s5 = scalar_lea.vmem [#allocation3], %s3025_s30  ;;  %s5349_s23 = smov 70  }
  0x24   : > { %v3246_v23 = vld [vmem:[%s3463_s6 + $0x20] ss:$0 sps:$4 sm:$0xff]   ;;  %s3346_s6 = smov 120   ;;  %s5351_s25 = smov 36  }
  0x25   : > { %s5357_s30 = smov 96   ;;  %s5359_s29 = smov 62  }
  0x26   : > { %385 = vrot.lane.b32.xlu1 %v377_v8, %s3333_s9  ;;  %265 = vrot.lane.b32.xlu0 %v377_v8, %s3332_s8 }
  0x2a   : > { %321 = vrot.lane.b32.xlu1 %v3469_v1, %s3331_s7  ;;  %261 = vrot.lane.b32.xlu0 %v256_v9, %s3332_s8 }
  0x2e   : > { %442 = vrot.lane.b32.xlu1 %v317_v4, %s3334_s10  ;;  %381 = vrot.lane.b32.xlu0 %v256_v9, %s3333_s9 }
  0x32   : > { %502 = vrot.lane.b32.xlu1 %v3469_v1, %s3335_s11  ;;  %444 = vrot.lane.b32.xlu0 %v3466_v0, %s3334_s10 }
  0x36   : > { %562 = vrot.lane.b32.xlu1 %v317_v4, %s3336_s12  ;;  %504 = vrot.lane.b32.xlu0 %v377_v8, %s3335_s11 }
  0x3a   : > { %625 = vrot.lane.b32.xlu1 %v3469_v1, %s3337_s13  ;;  %564 = vrot.lane.b32.xlu0 %v3466_v0, %s3336_s12 }
  0x3e   : > { %440 = vrot.lane.b32.xlu1 %v3469_v1, %s3334_s10  ;;  %627 = vrot.lane.b32.xlu0 %v377_v8, %s3337_s13 }
  0x42   : > { %560 = vrot.lane.b32.xlu1 %v3469_v1, %s3336_s12  ;;  %500 = vrot.lane.b32.xlu0 %v256_v9, %s3335_s11 }
  0x46   : > { %267 = vrot.lane.b32.xlu1 %v3466_v0, %s3332_s8  ;;  %623 = vrot.lane.b32.xlu0 %v256_v9, %s3337_s13 }
  0x4a   : > { %327 = vrot.lane.b32.xlu1 %v3478_v3, %s3331_s7  ;;  %269 = vrot.lane.b32.xlu0 %v258_v10, %s3332_s8 }
  0x4e   : > { %387 = vrot.lane.b32.xlu1 %v3466_v0, %s3333_s9  ;;  %329 = vrot.lane.b32.xlu0 %v3472_v2, %s3331_s7 }
  0x52   : > { %271 = vrot.lane.b32.xlu1 %v3472_v2, %s3332_s8  ;;  %389 = vrot.lane.b32.xlu0 %v258_v10, %s3333_s9 }
  0x56   : > { %331 = vrot.lane.b32.xlu1 %v3492_v6, %s3331_s7  ;;  %273 = vrot.lane.b32.xlu0 %v259_v11, %s3332_s8 }
  0x5a   : > { %391 = vrot.lane.b32.xlu1 %v3472_v2, %s3333_s9  ;;  %333 = vrot.lane.b32.xlu0 %v3485_v5, %s3331_s7 }
  0x5e   : > { %446 = vrot.lane.b32.xlu1 %v3478_v3, %s3334_s10  ;;  %393 = vrot.lane.b32.xlu0 %v259_v11, %s3333_s9 }
  0x62   : > { %506 = vrot.lane.b32.xlu1 %v3466_v0, %s3335_s11  ;;  %448 = vrot.lane.b32.xlu0 %v3472_v2, %s3334_s10 }
  0x66   : > { %566 = vrot.lane.b32.xlu1 %v3478_v3, %s3336_s12  ;;  %508 = vrot.lane.b32.xlu0 %v258_v10, %s3335_s11 }
  0x6a   : > { %629 = vrot.lane.b32.xlu1 %v3466_v0, %s3337_s13  ;;  %568 = vrot.lane.b32.xlu0 %v3472_v2, %s3336_s12 }
  0x6e   : > { %688 = vrot.lane.b32.xlu1 %v317_v4, %s3338_s14  ;;  %631 = vrot.lane.b32.xlu0 %v258_v10, %s3337_s13 }
  0x72   : > { %686 = vrot.lane.b32.xlu1 %v3469_v1, %s3338_s14  ;;  %690 = vrot.lane.b32.xlu0 %v3466_v0, %s3338_s14 }
  0x76   : > { %452 = vrot.lane.b32.xlu1 %v3485_v5, %s3334_s10  ;;  %450 = vrot.lane.b32.xlu0 %v3492_v6, %s3334_s10 }
  0x7a   : > { %512 = vrot.lane.b32.xlu1 %v259_v11, %s3335_s11  ;;  %510 = vrot.lane.b32.xlu0 %v3472_v2, %s3335_s11 }
  0x7e   : > { %572 = vrot.lane.b32.xlu1 %v3485_v5, %s3336_s12  ;;  %570 = vrot.lane.b32.xlu0 %v3492_v6, %s3336_s12 }
  0x82   : > { %635 = vrot.lane.b32.xlu1 %v259_v11, %s3337_s13  ;;  %633 = vrot.lane.b32.xlu0 %v3472_v2, %s3337_s13 }
  0x86   : > { %277 = vrot.lane.b32.xlu1 %v3244_v14, %s3332_s8  ;;  %275 = vrot.lane.b32.xlu0 %v3485_v5, %s3332_s8  ;;  %s3348_s8 = smov 86  }
  0x8a   : > { %337 = vrot.lane.b32.xlu1 %v311_v15, %s3331_s7  ;;  %335 = vrot.lane.b32.xlu0 %v3497_v7, %s3331_s7  ;;  %s5383_s7 = smov 26  }
  0x8e   : > { %397 = vrot.lane.b32.xlu1 %v3245_v16, %s3333_s9  ;;  %395 = vrot.lane.b32.xlu0 %v3485_v5, %s3333_s9 }
  0x90   : > { %v3606_v17 = vpop.permute.xlu1 %325  ;;  %v264_v18 = vpop.permute.xlu0 %263 }
  0x92   : > { %694 = vrot.lane.b32.xlu1 %v3472_v2, %s3338_s14  ;;  %692 = vrot.lane.b32.xlu0 %v3478_v3, %s3338_s14 }
  0x94   : > { %v324_v20 = vpop.permute.xlu1 %323  ;;  %v384_v21 = vpop.permute.xlu0 %383 }
  0x95   : > { %v341_v22 = vsel %vm339_vm1, %v324_v20, %v3606_v17 }
  0x96   : > { %358 = vst [vmem:[#allocation2 + $0x50] sm:$0xf] %v341_v22  ;;  %456 = vrot.lane.b32.xlu1 %v430_v19, %s3334_s10  ;;  %454 = vrot.lane.b32.xlu0 %v3497_v7, %s3334_s10  ;;  %s3349_s10 = smov 52  }
  0x98   : > { %v3619_v24 = vpop.permute.xlu1 %385  ;;  %v3621_v25 = vpop.permute.xlu0 %265 }
  0x99   : > { %v401_v26 = vsel %vm399_vm2, %v384_v21, %v3619_v24  ;;  %v281_v27 = vsel %vm279_vm3, %v264_v18, %v3621_v25 }
  0x9a   : > { %418 = vst [vmem:[#allocation2 + $0x50] sm:$0xf0] %v401_v26  ;;  %298 = vst [vmem:[#allocation2 + $0x8] sm:$0xf0] %v281_v27  ;;  %516 = vrot.lane.b32.xlu1 %v3246_v23, %s3335_s11  ;;  %514 = vrot.lane.b32.xlu0 %v3485_v5, %s3335_s11  ;;  %s5353_s11 = smov 112  }
  0x9c   : > { %v322_v29 = vpop.permute.xlu1 %321  ;;  %v262_v30 = vpop.permute.xlu0 %261 }
  0x9d   : > { %v340_v31 = vsel %vm339_vm1, %v322_v29, %v324_v20  ;;  %v280_v32 = vsel %vm279_vm3, %v262_v30, %v264_v18 }
  0x9e   : > { %357 = vst [vmem:[#allocation2 + $0x48] sm:$0xf] %v340_v31  ;;  %297 = vst [vmem:[#allocation2] sm:$0xf0] %v280_v32  ;;  %576 = vrot.lane.b32.xlu1 %v549_v28, %s3336_s12  ;;  %574 = vrot.lane.b32.xlu0 %v3497_v7, %s3336_s12 }
  0xa0   : > { %v443_v34 = vpop.permute.xlu1 %442  ;;  %v382_v35 = vpop.permute.xlu0 %381 }
  0xa1   : > { %v400_v36 = vsel %vm399_vm2, %v382_v35, %v384_v21  ;;  %v736_v37 = vld [vmem:[#allocation2 + $0x8] sm:$0xff]  ;;  %v745_v38 = vld [vmem:[#allocation2 + $0x50] sm:$0xff] }
  0xa2   : > { %417 = vst [vmem:[#allocation2 + $0x48] sm:$0xf0] %v400_v36  ;;  %639 = vrot.lane.b32.xlu1 %v622_v33, %s3337_s13  ;;  %637 = vrot.lane.b32.xlu0 %v3485_v5, %s3337_s13  ;;  %v3075_v39 = vpack.c.bf16 %v745_v38, %v736_v37 }
  0xa4   : > { %v503_v40 = vpop.permute.xlu1 %502  ;;  %v3640_v41 = vpop.permute.xlu0 %444  ;;  %3076 = vmatprep.subr.bf16.mxu0 %v3075_v39 }
  0xa5   : > { %v460_v42 = vsel %vm458_vm4, %v443_v34, %v3640_v41  ;;  %v735_v47 = vld [vmem:[#allocation2] sm:$0xff] }
  0xa6   : > { %477 = vst [vmem:[#allocation2 + $0x98] sm:$0xf] %v460_v42  ;;  %698 = vrot.lane.b32.xlu1 %v3485_v5, %s3338_s14  ;;  %696 = vrot.lane.b32.xlu0 %v3492_v6, %s3338_s14 }
  0xa8   : > { %v563_v44 = vpop.permute.xlu1 %562  ;;  %v3648_v45 = vpop.permute.xlu0 %504 }
  0xa9   : > { %v520_v46 = vsel %vm518_vm5, %v503_v40, %v3648_v45  ;;  %v744_v48 = vld [vmem:[#allocation2 + $0x48] sm:$0xff] }
  0xaa   : > { %537 = vst [vmem:[#allocation2 + $0x98] sm:$0xf0] %v520_v46  ;;  %641 = vrot.lane.b32.xlu1 %v549_v28, %s3337_s13  ;;  %578 = vrot.lane.b32.xlu0 %v559_v43, %s3336_s12  ;;  %v3077_v49 = vpack.c.bf16 %v744_v48, %v735_v47  ;;  %s5347_s13 = smov 78  }
  0xac   : > { %v626_v50 = vpop.permute.xlu1 %625  ;;  %v3654_v51 = vpop.permute.xlu0 %564  ;;  %3078 = vmatpush1.bf16.msra.mxu0 %v3077_v49 }
  0xad   : > { %v582_v52 = vsel %vm580_vm6, %v563_v44, %v3654_v51 }
  0xae   : > { %600 = vst [vmem:[#allocation2 + $0xe0] sm:$0xf] %v582_v52  ;;  %702 = vrot.lane.b32.xlu1 %v549_v28, %s3338_s14  ;;  %700 = vrot.lane.b32.xlu0 %v3497_v7, %s3338_s14 }
  0xb0   : > { %v441_v53 = vpop.permute.xlu1 %440  ;;  %v3661_v54 = vpop.permute.xlu0 %627 }
  0xb1   : > { %v459_v55 = vsel %vm458_vm4, %v441_v53, %v443_v34  ;;  %v645_v56 = vsel %vm643_vm7, %v626_v50, %v3661_v54  ;;  %v754_v1 = vld [vmem:[#allocation2 + $0x98] sm:$0xff] }
  0xb2   : > { %476 = vst [vmem:[#allocation2 + $0x90] sm:$0xf] %v459_v55  ;;  %663 = vst [vmem:[#allocation2 + $0xe0] sm:$0xf0] %v645_v56  ;;  %704 = vrot.lane.b32.xlu0 %v559_v43, %s3338_s14  ;;  %s5363_s14 = smov 18  }
  0xb4   : > { %v561_v57 = vpop.permute.xlu1 %560  ;;  %v501_v58 = vpop.permute.xlu0 %500 }
  0xb5   : > { %v581_v59 = vsel %vm580_vm6, %v561_v57, %v563_v44  ;;  %v519_v60 = vsel %vm518_vm5, %v501_v58, %v503_v40 }
  0xb6   : > { %599 = vst [vmem:[#allocation2 + $0xd8] sm:$0xf] %v581_v59  ;;  %536 = vst [vmem:[#allocation2 + $0x90] sm:$0xf0] %v519_v60 }
  0xb8   : > { %v268_v61 = vpop.permute.xlu1 %267  ;;  %v624_v62 = vpop.permute.xlu0 %623 }
  0xb9   : > { %v282_v63 = vsel %vm279_vm3, %v3621_v25, %v268_v61  ;;  %v644_v0 = vsel %vm643_vm7, %v624_v62, %v626_v50  ;;  %v763_v2 = vld [vmem:[#allocation2 + $0xe0] sm:$0xff] }
  0xba   : > { %299 = vst [vmem:[#allocation2 + $0x10] sm:$0xf0] %v282_v63  ;;  %662 = vst [vmem:[#allocation2 + $0xd8] sm:$0xf0] %v644_v0  ;;  %v3079_v3 = vpack.c.bf16 %v763_v2, %v754_v1 }
  0xbc   : > { %v328_v4 = vpop.permute.xlu1 %327  ;;  %v270_v5 = vpop.permute.xlu0 %269  ;;  %3080 = vmatprep.subr.bf16.mxu0 %v3079_v3 }
  0xbd   : > { %v342_v6 = vsel %vm339_vm1, %v3606_v17, %v328_v4  ;;  %v283_v7 = vsel %vm279_vm3, %v268_v61, %v270_v5  ;;  %v753_v13 = vld [vmem:[#allocation2 + $0x90] sm:$0xff] }
  0xbe   : > { %359 = vst [vmem:[#allocation2 + $0x58] sm:$0xf] %v342_v6  ;;  %300 = vst [vmem:[#allocation2 + $0x18] sm:$0xf0] %v283_v7  ;;  %v3721_v6 = vld [vmem:[%s5324_s1] sm:$0xf] }
  0xc0   : > { %v388_v8 = vpop.permute.xlu1 %387  ;;  %v330_v9 = vpop.permute.xlu0 %329 }
  0xc1   : > { %v402_v10 = vsel %vm399_vm2, %v3619_v24, %v388_v8  ;;  %v343_v11 = vsel %vm339_vm1, %v328_v4, %v330_v9  ;;  %v762_v14 = vld [vmem:[#allocation2 + $0xd8] sm:$0xff]  ;;  %v737_v32 = vld [vmem:[#allocation2 + $0x10] sm:$0xff] }
  0xc2   : > { %419 = vst [vmem:[#allocation2 + $0x58] sm:$0xf0] %v402_v10  ;;  %360 = vst [vmem:[#allocation2 + $0x60] sm:$0xf] %v343_v11  ;;  %v3081_v15 = vpack.c.bf16 %v762_v14, %v753_v13 }
  0xc4   : > { %v272_v16 = vpop.permute.xlu1 %271  ;;  %v390_v18 = vpop.permute.xlu0 %389  ;;  %3082 = vmatpush1.bf16.msra.mxu0 %v3081_v15 }
  0xc5   : > { %v284_v17 = vsel %vm279_vm3, %v270_v5, %v272_v16  ;;  %v403_v19 = vsel %vm399_vm2, %v388_v8, %v390_v18  ;;  %v738_v29 = vld [vmem:[#allocation2 + $0x18] sm:$0xff] }
  0xc6   : > { %301 = vst [vmem:[#allocation2 + $0x20] sm:$0xf0] %v284_v17  ;;  %420 = vst [vmem:[#allocation2 + $0x60] sm:$0xf0] %v403_v19 }
  0xc8   : > { %v332_v20 = vpop.permute.xlu1 %331  ;;  %v3680_v21 = vpop.permute.xlu0 %273 }
  0xc9   : > { %v344_v22 = vsel %vm339_vm1, %v330_v9, %v332_v20  ;;  %v285_v23 = vsel %vm279_vm3, %v272_v16, %v3680_v21  ;;  %v746_v26 = vld [vmem:[#allocation2 + $0x58] sm:$0xff] }
  0xca   : > { %361 = vst [vmem:[#allocation2 + $0x68] sm:$0xf] %v344_v22  ;;  %302 = vst [vmem:[#allocation2 + $0x28] sm:$0xf0] %v285_v23  ;;  %v3085_v33 = vpack.c.bf16 %v746_v26, %v737_v32 }
  0xcc   : > { %v392_v24 = vpop.permute.xlu1 %391  ;;  %v3685_v25 = vpop.permute.xlu0 %333 }
  0xcd   : > { %v404_v27 = vsel %vm399_vm2, %v390_v18, %v392_v24  ;;  %v345_v28 = vsel %vm339_vm1, %v332_v20, %v3685_v25  ;;  %v747_v30 = vld [vmem:[#allocation2 + $0x60] sm:$0xff] }
  0xce   : > { %421 = vst [vmem:[#allocation2 + $0x68] sm:$0xf0] %v404_v27  ;;  %362 = vst [vmem:[#allocation2 + $0x70] sm:$0xf] %v345_v28  ;;  %v3083_v31 = vpack.c.bf16 %v747_v30, %v738_v29  ;;  %v739_v15 = vld [vmem:[#allocation2 + $0x20] sm:$0xff] }
  0xd0   : > { %v447_v34 = vpop.permute.xlu1 %446  ;;  %v3690_v35 = vpop.permute.xlu0 %393  ;;  %3084 = vmatprep.subr.bf16.mxu1 %v3083_v31 }
  0xd1   : > { %v461_v36 = vsel %vm458_vm4, %v3640_v41, %v447_v34  ;;  %v405_v37 = vsel %vm399_vm2, %v392_v24, %v3690_v35  ;;  %3086 = vmatpush1.bf16.msra.mxu1 %v3085_v33  ;;  %v740_v13 = vld [vmem:[#allocation2 + $0x28] sm:$0xff] }
  0xd2   : > { %478 = vst [vmem:[#allocation2 + $0xa0] sm:$0xf] %v461_v36  ;;  %422 = vst [vmem:[#allocation2 + $0x70] sm:$0xf0] %v405_v37 }
  0xd4   : > { %v507_v38 = vpop.permute.xlu1 %506  ;;  %v449_v39 = vpop.permute.xlu0 %448 }
  0xd5   : > { %v521_v40 = vsel %vm518_vm5, %v3648_v45, %v507_v38  ;;  %v462_v42 = vsel %vm458_vm4, %v447_v34, %v449_v39  ;;  %v748_v7 = vld [vmem:[#allocation2 + $0x68] sm:$0xff] }
  0xd6   : > { %538 = vst [vmem:[#allocation2 + $0xa0] sm:$0xf0] %v521_v40  ;;  %479 = vst [vmem:[#allocation2 + $0xa8] sm:$0xf] %v462_v42  ;;  %v3093_v16 = vpack.c.bf16 %v748_v7, %v739_v15 }
  0xd8   : > { %v567_v43 = vpop.permute.xlu1 %566  ;;  %v509_v44 = vpop.permute.xlu0 %508 }
  0xd9   : > { %v583_v41 = vsel %vm580_vm6, %v3654_v51, %v567_v43  ;;  %v522_v46 = vsel %vm518_vm5, %v507_v38, %v509_v44  ;;  %v749_v3 = vld [vmem:[#allocation2 + $0x70] sm:$0xff] }
  0xda   : > { %601 = vst [vmem:[#allocation2 + $0xe8] sm:$0xf] %v583_v41  ;;  %539 = vst [vmem:[#allocation2 + $0xa8] sm:$0xf0] %v522_v46  ;;  %v3091_v14 = vpack.c.bf16 %v749_v3, %v740_v13 }
  0xdc   : > { %v630_v47 = vpop.permute.xlu1 %629  ;;  %v569_v48 = vpop.permute.xlu0 %568 }
  0xdd   : > { %v646_v49 = vsel %vm643_vm7, %v3661_v54, %v630_v47  ;;  %v584_v45 = vsel %vm580_vm6, %v567_v43, %v569_v48  ;;  %v755_v1 = vld [vmem:[#allocation2 + $0xa0] sm:$0xff] }
  0xde   : > { %664 = vst [vmem:[#allocation2 + $0xe8] sm:$0xf0] %v646_v49  ;;  %602 = vst [vmem:[#allocation2 + $0xf0] sm:$0xf] %v584_v45 }
  0xe0   : > { %v689_v50 = vpop.permute.xlu1 %688  ;;  %v632_v52 = vpop.permute.xlu0 %631 }
  0xe1   : > { %v647_v53 = vsel %vm643_vm7, %v630_v47, %v632_v52  ;;  %v756_v62 = vld [vmem:[#allocation2 + $0xa8] sm:$0xff] }
  0xe2   : > { %665 = vst [vmem:[#allocation2 + $0xf0] sm:$0xf0] %v647_v53 }
  0xe4   : > { %v687_v51 = vpop.permute.xlu1 %686  ;;  %v3706_v55 = vpop.permute.xlu0 %690 }
  0xe5   : > { %v707_v56 = vsel %vm706_vm8, %v687_v51, %v689_v50  ;;  %v708_v57 = vsel %vm706_vm8, %v689_v50, %v3706_v55  ;;  %v764_v59 = vld [vmem:[#allocation2 + $0xe8] sm:$0xff] }
  0xe6   : > { %725 = vst [vmem:[#allocation2 + $0x120] sm:$0xf] %v707_v56  ;;  %726 = vst [vmem:[#allocation2 + $0x128] sm:$0xf] %v708_v57  ;;  %v3089_v2 = vpack.c.bf16 %v764_v59, %v755_v1 }
  0xe8   : > { %v3711_v54 = vpop.permute.xlu1 %452  ;;  %v451_v58 = vpop.permute.xlu0 %450 }
  0xe9   : > { %v463_v60 = vsel %vm458_vm4, %v449_v39, %v451_v58  ;;  %v464_v61 = vsel %vm458_vm4, %v451_v58, %v3711_v54  ;;  %v765_v63 = vld [vmem:[#allocation2 + $0xf0] sm:$0xff] }
  0xea   : > { %480 = vst [vmem:[#allocation2 + $0xb0] sm:$0xf] %v463_v60  ;;  %481 = vst [vmem:[#allocation2 + $0xb8] sm:$0xf] %v464_v61  ;;  %v3087_v0 = vpack.c.bf16 %v765_v63, %v756_v62 }
  0xec   : > { %v3716_v4 = vpop.permute.xlu1 %512  ;;  %v511_v5 = vpop.permute.xlu0 %510  ;;  %3088 = vmatprep.subr.bf16.mxu1 %v3087_v0 }
  0xed   : > { %v523_v8 = vsel %vm518_vm5, %v509_v44, %v511_v5  ;;  %v524_v9 = vsel %vm518_vm5, %v511_v5, %v3716_v4  ;;  %3090 = vmatpush1.bf16.msra.mxu1 %v3089_v2  ;;  %v772_v10 = vld [vmem:[#allocation2 + $0x128] sm:$0xf]  ;;  %v771_v11 = vld [vmem:[#allocation2 + $0x120] sm:$0xf] }
  0xee   : > { %540 = vst [vmem:[#allocation2 + $0xb0] sm:$0xf0] %v523_v8  ;;  %541 = vst [vmem:[#allocation2 + $0xb8] sm:$0xf0] %v524_v9  ;;  %3027 = vmatprep.subr.msk.mxu0 %vm784_vm9, %v772_v10 }
  0xef   : > { %3028 = vmatpush1.msk.msra.mxu0 %vm784_vm9, %v771_v11 }
  0xf0   : > { %v3728_v18 = vpop.permute.xlu1 %572  ;;  %v571_v17 = vpop.permute.xlu0 %570  ;;  %3092 = vmatprep.subr.bf16.mxu0 %v3091_v14  ;;  %3029 = vmatmul.mubr.msk.f32.vlgmr.msra.gmra.mrb[0].mxu0 %vm780_vm10, %v3721_v6 }
  0xf1   : > { %v585_v19 = vsel %vm580_vm6, %v569_v48, %v571_v17  ;;  %v586_v20 = vsel %vm580_vm6, %v571_v17, %v3728_v18  ;;  %3094 = vmatpush1.bf16.msra.mxu0 %v3093_v16  ;;  %1018 = vmatprep.mubr.f32.mxu0 %v3339_v12 }
  0xf2   : > { %603 = vst [vmem:[#allocation2 + $0xf8] sm:$0xf] %v585_v19  ;;  %604 = vst [vmem:[#allocation2 + $0x100] sm:$0xf] %v586_v20 }
  0xf4   : > { %v3736_v22 = vpop.permute.xlu1 %635  ;;  %v634_v23 = vpop.permute.xlu0 %633 }
  0xf5   : > { %v648_v24 = vsel %vm643_vm7, %v632_v52, %v634_v23  ;;  %v649_v26 = vsel %vm643_vm7, %v634_v23, %v3736_v22  ;;  %v758_v33 = vld [vmem:[#allocation2 + $0xb8] sm:$0xff]  ;;  %v757_v38 = vld [vmem:[#allocation2 + $0xb0] sm:$0xff] }
  0xf6   : > { %666 = vst [vmem:[#allocation2 + $0xf8] sm:$0xf0] %v648_v24  ;;  %667 = vst [vmem:[#allocation2 + $0x100] sm:$0xf0] %v649_v26 }
  0xf8   : > { %v278_v27 = vpop.permute.xlu1 %277  ;;  %v276_v28 = vpop.permute.xlu0 %275 }
  0xf9   : > { %306 = vst.msk [vmem:[#allocation2 + $0x40] sm:$0xf0] %vm305_vm11, %v278_v27  ;;  %v286_v29 = vsel %vm279_vm3, %v3680_v21, %v276_v28  ;;  %v287_v30 = vsel %vm279_vm3, %v276_v28, %v278_v27 }
  0xfa   : > { %303 = vst [vmem:[#allocation2 + $0x30] sm:$0xf0] %v286_v29  ;;  %304 = vst [vmem:[#allocation2 + $0x38] sm:$0xf0] %v287_v30 }
  0xfc   : > { %v338_v31 = vpop.permute.xlu1 %337  ;;  %v336_v32 = vpop.permute.xlu0 %335 }
  0xfd   : > { %365 = vst.msk [vmem:[#allocation2 + $0x88] sm:$0xf] %vm5328_vm0, %v338_v31  ;;  %v346_v34 = vsel %vm339_vm1, %v3685_v25, %v336_v32  ;;  %v347_v36 = vsel %vm339_vm1, %v336_v32, %v338_v31  ;;  %v767_v37 = vld [vmem:[#allocation2 + $0x100] sm:$0xff]  ;;  %v766_v39 = vld [vmem:[#allocation2 + $0xf8] sm:$0xff] }
  0xfe   : > { %363 = vst [vmem:[#allocation2 + $0x78] sm:$0xf] %v346_v34  ;;  %364 = vst [vmem:[#allocation2 + $0x80] sm:$0xf] %v347_v36  ;;  %v3095_v21 = vpack.c.bf16 %v767_v37, %v758_v33  ;;  %v3097_v40 = vpack.c.bf16 %v766_v39, %v757_v38  ;;  %v3340_v36 = vmov 0.0|0.0  }
 0x100   : > { %v398_v42 = vpop.permute.xlu1 %397  ;;  %v396_v43 = vpop.permute.xlu0 %395  ;;  %3096 = vmatprep.subr.bf16.mxu0 %v3095_v21  ;;  %v743_v32 = vld [vmem:[#allocation2 + $0x40] sm:$0xff] }
 0x101   : > { %425 = vst.msk [vmem:[#allocation2 + $0x88] sm:$0xf0] %vm305_vm11, %v398_v42  ;;  %v406_v44 = vsel %vm399_vm2, %v3690_v35, %v396_v43  ;;  %v407_v41 = vsel %vm399_vm2, %v396_v43, %v398_v42  ;;  %3098 = vmatpush1.bf16.msra.mxu0 %v3097_v40  ;;  %v742_v60 = vld [vmem:[#allocation2 + $0x38] sm:$0xff]  ;;  %v741_v61 = vld [vmem:[#allocation2 + $0x30] sm:$0xff] }
 0x102   : > { %423 = vst [vmem:[#allocation2 + $0x78] sm:$0xf0] %v406_v44  ;;  %424 = vst [vmem:[#allocation2 + $0x80] sm:$0xf0] %v407_v41  ;;  %v1166_v44 = vlaneseq }
 0x104   : > { %v695_v25 = vpop.permute.xlu1 %694  ;;  %v693_v46 = vpop.permute.xlu0 %692  ;;  %v3799_v41 = vand.u32 127, %v1166_v44 }
 0x105   : > { %v709_v47 = vsel %vm706_vm8, %v3706_v55, %v693_v46  ;;  %v710_v48 = vsel %vm706_vm8, %v693_v46, %v695_v25 }
 0x106   : > { %727 = vst [vmem:[#allocation2 + $0x130] sm:$0xf] %v709_v47  ;;  %728 = vst [vmem:[#allocation2 + $0x138] sm:$0xf] %v710_v48  ;;  %v3803_v46 = vmul.u32.u64.low 4042322161, %v3799_v41  ;;  %v3804_v47 = vmul.u32.u64.high 4042322161, %v3799_v41, %v3803_v46 }
 0x108   : > { %v457_v49 = vpop.permute.xlu1 %456  ;;  %v455_v45 = vpop.permute.xlu0 %454  ;;  %v752_v27 = vld [vmem:[#allocation2 + $0x88] sm:$0xff] }
 0x109   : > { %484 = vst.msk [vmem:[#allocation2 + $0xd0] sm:$0xf] %vm5328_vm0, %v457_v49  ;;  %v465_v35 = vsel %vm458_vm4, %v3711_v54, %v455_v45  ;;  %v466_v50 = vsel %vm458_vm4, %v455_v45, %v457_v49  ;;  %v751_v52 = vld [vmem:[#allocation2 + $0x80] sm:$0xff]  ;;  %v750_v56 = vld [vmem:[#allocation2 + $0x78] sm:$0xff]  ;;  %v3108_v33 = vpack.c.bf16 %v752_v27, %v743_v32  ;;  %v1182_v45 = vshrl.u32 %v3804_v47, 5 }
 0x10a   : > { %482 = vst [vmem:[#allocation2 + $0xc0] sm:$0xf] %v465_v35  ;;  %483 = vst [vmem:[#allocation2 + $0xc8] sm:$0xf] %v466_v50  ;;  %v3099_v54 = vpack.c.bf16 %v751_v52, %v742_v60  ;;  %v3101_v62 = vpack.c.bf16 %v750_v56, %v741_v61  ;;  %v1174_v32 = vadd.s32 896, %v3799_v41 }
 0x10b   : > { %v1183_v50 = vmul.u32 34, %v1182_v45 }
 0x10c   : > { %v517_v53 = vpop.permute.xlu1 %516  ;;  %v515_v51 = vpop.permute.xlu0 %514 }
 0x10d   : > { %544 = vst.msk [vmem:[#allocation2 + $0xd0] sm:$0xf0] %vm305_vm11, %v517_v53  ;;  %v525_v55 = vsel %vm518_vm5, %v3716_v4, %v515_v51  ;;  %v526_v57 = vsel %vm518_vm5, %v515_v51, %v517_v53  ;;  %v774_v58 = vld [vmem:[#allocation2 + $0x138] sm:$0xf]  ;;  %v773_v59 = vld [vmem:[#allocation2 + $0x130] sm:$0xf] }
 0x10e   : > { %542 = vst [vmem:[#allocation2 + $0xc0] sm:$0xf0] %v525_v55  ;;  %543 = vst [vmem:[#allocation2 + $0xc8] sm:$0xf0] %v526_v57  ;;  %3030 = vmatprep.subr.msk.mxu1 %vm784_vm9, %v774_v58  ;;  %v1169_v58 = vadd.s32 256, %v3799_v41 }
 0x10f   : > { %3031 = vmatpush1.msk.msra.mxu1 %vm784_vm9, %v773_v59  ;;  %v1170_v59 = vadd.s32 384, %v3799_v41 }
 0x110   : > { %v577_v63 = vpop.permute.xlu1 %576  ;;  %v575_v0 = vpop.permute.xlu0 %574  ;;  %3100 = vmatprep.subr.bf16.mxu1 %v3099_v54  ;;  %3032 = vmatmul.mubr.msk.f32.vlgmr.msra.gmra.mrb[0].mxu1 %vm780_vm10, %v3721_v6  ;;  %v3815_v54 = vmul.u32.u64.low 4042322161, %v1169_v58  ;;  %v3816_v61 = vmul.u32.u64.high 4042322161, %v1169_v58, %v3815_v54 }
 0x111   : > { %v587_v1 = vsel %vm580_vm6, %v3728_v18, %v575_v0  ;;  %v588_v2 = vsel %vm580_vm6, %v575_v0, %v577_v63  ;;  %3102 = vmatpush1.bf16.msra.mxu1 %v3101_v62  ;;  %1089 = vmatprep.mubr.f32.mxu1 %v3339_v12 }
 0x112   : > { %605 = vst [vmem:[#allocation2 + $0x108] sm:$0xf] %v587_v1  ;;  %606 = vst [vmem:[#allocation2 + $0x110] sm:$0xf] %v588_v2 }
 0x114   : > { %v640_v3 = vpop.permute.xlu1 %639  ;;  %v638_v4 = vpop.permute.xlu0 %637  ;;  %v761_v38 = vld [vmem:[#allocation2 + $0xd0] sm:$0xff] }
 0x115   : > { %v650_v5 = vsel %vm643_vm7, %v3736_v22, %v638_v4  ;;  %v651_v7 = vsel %vm643_vm7, %v638_v4, %v640_v3  ;;  %v760_v15 = vld [vmem:[#allocation2 + $0xc8] sm:$0xff]  ;;  %v759_v19 = vld [vmem:[#allocation2 + $0xc0] sm:$0xff] }
 0x116   : > { %668 = vst [vmem:[#allocation2 + $0x108] sm:$0xf0] %v650_v5  ;;  %669 = vst [vmem:[#allocation2 + $0x110] sm:$0xf0] %v651_v7 }
 0x118   : > { %v699_v8 = vpop.permute.xlu1 %698  ;;  %v697_v9 = vpop.permute.xlu0 %696 }
 0x119   : > { %v711_v10 = vsel %vm706_vm8, %v695_v25, %v697_v9  ;;  %v712_v11 = vsel %vm706_vm8, %v697_v9, %v699_v8  ;;  %v1168_v25 = vadd.s32 128, %v3799_v41 }
 0x11a   : > { %729 = vst [vmem:[#allocation2 + $0x140] sm:$0xf] %v711_v10  ;;  %730 = vst [vmem:[#allocation2 + $0x148] sm:$0xf] %v712_v11 }
 0x11b   : > { %v3806_v48 = vmul.u32.u64.low 4042322161, %v1168_v25  ;;  %v3807_v49 = vmul.u32.u64.high 4042322161, %v1168_v25, %v3806_v48 }
 0x11c   : > { %v642_v13 = vpop.permute.xlu1 %641  ;;  %v579_v14 = vpop.permute.xlu0 %578 }
 0x11d   : > { %v652_v16 = vsel %vm643_vm7, %v640_v3, %v642_v13  ;;  %v589_v18 = vsel %vm580_vm6, %v577_v63, %v579_v14  ;;  %v769_v17 = vld [vmem:[#allocation2 + $0x110] sm:$0xff]  ;;  %v768_v20 = vld [vmem:[#allocation2 + $0x108] sm:$0xff]  ;;  %v1193_v35 = vshrl.u32 %v3807_v49, 5  ;;  %v1204_v14 = vshrl.u32 %v3816_v61, 5 }
 0x11e   : > { %670 = vst.msk [vmem:[#allocation2 + $0x118] sm:$0xf0] %vm305_vm11, %v652_v16  ;;  %v3103_v22 = vpack.c.bf16 %v769_v17, %v760_v15  ;;  %v3105_v23 = vpack.c.bf16 %v768_v20, %v759_v19  ;;  %v3819_v63 = vmul.u32.u64.low 4042322161, %v1170_v59  ;;  %v3820_v0 = vmul.u32.u64.high 4042322161, %v1170_v59, %v3819_v63 }
 0x11f   : > { %607 = vst.msk [vmem:[#allocation2 + $0x118] sm:$0xf] %vm5328_vm0, %v589_v18  ;;  %v1194_v52 = vmul.u32 34, %v1193_v35  ;;  %v1205_v18 = vmul.u32 34, %v1204_v14  ;;  %v1171_v19 = vadd.s32 512, %v3799_v41 }
 0x120   : > { %v703_v24 = vpop.permute.xlu1 %702  ;;  %v701_v26 = vpop.permute.xlu0 %700  ;;  %3104 = vmatprep.subr.bf16.mxu1 %v3103_v22  ;;  %v1215_v16 = vshrl.u32 %v3820_v0, 5 }
 0x121   : > { %v713_v28 = vsel %vm706_vm8, %v699_v8, %v701_v26  ;;  %v714_v29 = vsel %vm706_vm8, %v701_v26, %v703_v24  ;;  %3106 = vmatpush1.bf16.msra.mxu1 %v3105_v23  ;;  %v776_v30 = vld [vmem:[#allocation2 + $0x148] sm:$0xf]  ;;  %v775_v31 = vld [vmem:[#allocation2 + $0x140] sm:$0xf]  ;;  %v1195_v53 = vsub.s32 %v1168_v25, %v1194_v52  ;;  %v1206_v20 = vsub.s32 %v1169_v58, %v1205_v18 }
 0x122   : > { %731 = vst [vmem:[#allocation2 + $0x150] sm:$0xf] %v713_v28  ;;  %732 = vst [vmem:[#allocation2 + $0x158] sm:$0xf] %v714_v29  ;;  %3033 = vmatprep.subr.msk.mxu0 %vm784_vm9, %v776_v30  ;;  %v1216_v17 = vmul.u32 34, %v1215_v16  ;;  %v1172_v23 = vadd.s32 640, %v3799_v41 }
 0x123   : > { %3034 = vmatpush1.msk.msra.mxu0 %vm784_vm9, %v775_v31  ;;  %vm1276_vm15 = vcmp.ne.s32.totalorder %v1195_v53, 0  ;;  %vm1285_vm1 = vcmp.lt.s32.totalorder %v1195_v53, 0  ;;  %v1303_v56 = vadd.s32 34, %v1195_v53  ;;  %vm1277_vm6 = vcmp.ne.s32.totalorder %v1206_v20, 0 }
 0x124   : > { %v705_v34 = vpop.permute.xlu0 %704  ;;  %3035 = vmatmul.mubr.msk.f32.vlgmr.msra.gmra.mrb[2].mxu0 %vm780_vm10, %v3721_v6  ;;  %3107 = vmatprep.subr.bf16.mxu0 %v3340_v36  ;;  %vm1294_vm3 = vmand %vm1285_vm1, %vm1276_vm15  ;;  %v1217_v22 = vsub.s32 %v1170_v59, %v1216_v17  ;;  %vm1286_vm7 = vcmp.lt.s32.totalorder %v1206_v20, 0  ;;  %v3841_v27 = vmul.u32.u64.low 4042322161, %v1172_v23  ;;  %v3842_v28 = vmul.u32.u64.high 4042322161, %v1172_v23, %v3841_v27 }
 0x125   : > { %v715_v37 = vsel %vm706_vm8, %v703_v24, %v705_v34  ;;  %3109 = vmatpush3.bf16.msra.mxu0 %v3108_v33  ;;  %3072 = vmatprep.mubr.msk.f32.mxu0 %vm3341_vm12, %v3339_v12  ;;  %v1312_v57 = vsel %vm1294_vm3, %v1303_v56, %v1195_v53  ;;  %v3838_v24 = vmul.u32.u64.low 4042322161, %v1171_v19  ;;  %v3839_v26 = vmul.u32.u64.high 4042322161, %v1171_v19, %v3838_v24  ;;  %vm1295_vm11 = vmand %vm1286_vm7, %vm1277_vm6 }
 0x126   : > { %v770_v39 = vld [vmem:[#allocation2 + $0x118] sm:$0xff]  ;;  %733 = vst.msk [vmem:[#allocation2 + $0x160] sm:$0xf] %vm5328_vm0, %v715_v37  ;;  %3110 = vmatprep.subr.bf16.mxu0 %v3340_v36  ;;  %vm1321_vm5 = vcmp.lt.s32.totalorder %v1312_v57, 32  ;;  %vm1278_vm8 = vcmp.ne.s32.totalorder %v1217_v22, 0  ;;  %v1304_v29 = vadd.s32 34, %v1206_v20 }
 0x127   : > { %v3111_v21 = vpack.c.bf16 %v770_v39, %v761_v38  ;;  %v3042_v62 = vsel %vm1321_vm5, 1.0, %v3339_v12  ;;  %v1305_v30 = vadd.s32 34, %v1217_v22  ;;  %v1173_v31 = vadd.s32 768, %v3799_v41 }
 0x128   : > { %v1313_v33 = vsel %vm1295_vm11, %v1304_v29, %v1206_v20  ;;  %v1226_v34 = vshrl.u32 %v3839_v26, 5  ;;  %v1175_v39 = vadd.s32 1024, %v3799_v41 }
 0x129   : > { %3112 = vmatpush3.bf16.msra.mxu0 %v3111_v21  ;;  %v778_v40 = vld [vmem:[#allocation2 + $0x158] sm:$0xf]  ;;  %v777_v42 = vld [vmem:[#allocation2 + $0x150] sm:$0xf]  ;;  %v3847_v37 = vmul.u32.u64.low 4042322161, %v1173_v31  ;;  %v3848_v38 = vmul.u32.u64.high 4042322161, %v1173_v31, %v3847_v37 }
 0x12a   : > { %3036 = vmatprep.subr.msk.mxu1 %vm784_vm9, %v778_v40  ;;  %3070 = vmatprep.subr.mxu0 %v3339_v12  ;;  %v1237_v21 = vshrl.u32 %v3842_v28, 5  ;;  %v3855_v25 = vmul.u32.u64.low 4042322161, %v1175_v39  ;;  %v3856_v46 = vmul.u32.u64.high 4042322161, %v1175_v39, %v3855_v25 }
 0x12b   : > { %3037 = vmatpush1.msk.msra.mxu1 %vm784_vm9, %v777_v42  ;;  %v3852_v40 = vmul.u32.u64.low 4042322161, %v1174_v32  ;;  %v3853_v42 = vmul.u32.u64.high 4042322161, %v1174_v32, %v3852_v40  ;;  %v1248_v52 = vshrl.u32 %v3848_v38, 5 }
 0x12c   : > { %3038 = vmatmul.mubr.msk.f32.vlgmr.msra.gmra.mrb[2].mxu1 %vm780_vm10, %v3721_v6  ;;  %v1238_v49 = vmul.u32 34, %v1237_v21  ;;  %v1270_v61 = vshrl.u32 %v3856_v46, 5 }
 0x12d   : > { %v779_v43 = vld [vmem:[#allocation2 + $0x160] sm:$0xf]  ;;  %v1249_v54 = vmul.u32 34, %v1248_v52 }
 0x12e   : > { %3071 = vmatpush3.msk.msra.mxu0 %vm784_vm9, %v779_v43  ;;  %v1227_v43 = vmul.u32 34, %v1226_v34  ;;  %v1239_v56 = vsub.s32 %v1172_v23, %v1238_v49 }
 0x12f   : > { %3073 = vmatmul.mubr.msk.f32.vlgmr.msra.gmra.mrb[4].mxu0 %vm780_vm10, %v3721_v6  ;;  %v1184_v6 = vsub.s32 %v3799_v41, %v1183_v50  ;;  %vm1287_vm10 = vcmp.lt.s32.totalorder %v1217_v22, 0 }
 0x130   : > { %vm1296_vm12 = vmand %vm1287_vm10, %vm1278_vm8  ;;  %v1228_v50 = vsub.s32 %v1171_v19, %v1227_v43  ;;  %vm1289_vm3 = vcmp.lt.s32.totalorder %v1239_v56, 0 }
 0x131   : > { %vm1275_vm13 = vcmp.ne.s32.totalorder %v1184_v6, 0  ;;  %vm1284_vm14 = vcmp.lt.s32.totalorder %v1184_v6, 0  ;;  %v1302_v51 = vadd.s32 34, %v1184_v6  ;;  %v1314_v36 = vsel %vm1296_vm12, %v1305_v30, %v1217_v22 }
 0x132   : > { %vm1293_vm2 = vmand %vm1284_vm14, %vm1275_vm13  ;;  %vm1322_vm13 = vcmp.lt.s32.totalorder %v1313_v33, 32  ;;  %vm1323_vm14 = vcmp.lt.s32.totalorder %v1314_v36, 32  ;;  %vm1279_vm15 = vcmp.ne.s32.totalorder %v1228_v50, 0  ;;  %vm1288_vm1 = vcmp.lt.s32.totalorder %v1228_v50, 0 }
 0x133   : > { %v1311_v55 = vsel %vm1293_vm2, %v1302_v51, %v1184_v6  ;;  %v3043_v47 = vsel %vm1322_vm13, 1.0, %v3339_v12  ;;  %v3044_v48 = vsel %vm1323_vm14, 1.0, %v3339_v12  ;;  %vm1280_vm2 = vcmp.ne.s32.totalorder %v1239_v56, 0 }
 0x134   : > { %vm1320_vm4 = vcmp.lt.s32.totalorder %v1311_v55, 32  ;;  %v1259_v55 = vshrl.u32 %v3853_v42, 5  ;;  %vm1298_vm5 = vmand %vm1289_vm3, %vm1280_vm2 }
 0x135   : > { %v3041_v60 = vsel %vm1320_vm4, 1.0, %v3339_v12  ;;  %vm1297_vm4 = vmand %vm1288_vm1, %vm1279_vm15 }
 0x1c3   : > { %v3822_v1 = vpop.f32.mrb[0].mxu0 }
 0x1c4   : > { %v1347_v2 = vmul.f32 %v3041_v60, %v3822_v1  ;;  %v3825_v3 = vpop.f32.mrb[1].mxu0 }
 0x1c5   : > { %v1348_v4 = vmul.f32 %v3042_v62, %v3825_v3 }
 0x1c6   : > { %v1356_v5 = vsel %vm784_vm9, %v1347_v2, 0.0  ;;  %v1375_v7 = vmul.f32 %v1347_v2, %v3822_v1  ;;  %v1260_v2 = vmul.u32 34, %v1259_v55 }
 0x1c7   : > { %v1357_v8 = vsel %vm784_vm9, %v1348_v4, 0.0  ;;  %v1376_v9 = vmul.f32 %v1348_v4, %v3825_v3 }
 0x1c8   : > { %v1384_v10 = vsel %vm784_vm9, %v1375_v7, 0.0  ;;  %v1358_v11 = vadd.f32 %v1357_v8, %v1356_v5  ;;  %v1306_v5 = vadd.s32 34, %v1228_v50  ;;  %v1307_v7 = vadd.s32 34, %v1239_v56 }
 0x1c9   : > { %v1385_v13 = vsel %vm784_vm9, %v1376_v9, 0.0  ;;  %v1250_v8 = vsub.s32 %v1173_v31, %v1249_v54  ;;  %v1271_v9 = vmul.u32 34, %v1270_v61 }
 0x1ca   : > { %v1386_v15 = vadd.f32 %v1385_v13, %v1384_v10  ;;  %v1261_v10 = vsub.s32 %v1174_v32, %v1260_v2  ;;  %v1316_v13 = vsel %vm1298_vm5, %v1307_v7, %v1239_v56  ;;  %v3342_v2 = vmov 0  }
 0x1cb   : > { %vm1281_vm6 = vcmp.ne.s32.totalorder %v1250_v8, 0  ;;  %vm1290_vm7 = vcmp.lt.s32.totalorder %v1250_v8, 0  ;;  %v1272_v14 = vsub.s32 %v1175_v39, %v1271_v9  ;;  %vm1325_vm12 = vcmp.lt.s32.totalorder %v1316_v13, 32  ;;  %3233 = vset.pattern.permute.xlu1 %v3342_v2 }
 0x1cc   : > { %vm1282_vm10 = vcmp.ne.s32.totalorder %v1261_v10, 0  ;;  %vm1291_vm11 = vcmp.lt.s32.totalorder %v1261_v10, 0  ;;  %vm1299_vm13 = vmand %vm1290_vm7, %vm1281_vm6  ;;  %v1309_v16 = vadd.s32 34, %v1261_v10  ;;  %v3046_v19 = vsel %vm1325_vm12, 1.0, %v3339_v12 }
 0x1cd   : > { %vm1283_vm14 = vcmp.ne.s32.totalorder %v1272_v14, 0  ;;  %vm1292_vm0 = vcmp.lt.s32.totalorder %v1272_v14, 0  ;;  %vm3876_vm15 = vmand %vm1291_vm11, %vm1282_vm10  ;;  %v1310_v22 = vadd.s32 34, %v1272_v14  ;;  %vm1592_vm6 = vcmask 211968  }
 0x1ce   : > { %vm3883_vm1 = vmand %vm1292_vm0, %vm1283_vm14  ;;  %v1318_v28 = vsel %vm3876_vm15, %v1309_v16, %v1261_v10  ;;  %vm1771_vm7 = vcmask 146432   ;;  %vm2129_vm10 = vcmask 15360   ;;  %vm2292_vm11 = vcmask 228352  }
 0x1cf   : > { %v1319_v32 = vsel %vm3883_vm1, %v1310_v22, %v1272_v14  ;;  %vm1327_vm0 = vcmp.lt.s32.totalorder %v1318_v28, 32  ;;  %v3343_v14 = vmov 1   ;;  %v3345_v22 = vmov 1966171168  }
 0x1d0   : > { %vm1328_vm3 = vcmp.lt.s32.totalorder %v1319_v32, 32  ;;  %v3048_v42 = vsel %vm1327_vm0, 1.0, %v3339_v12  ;;  %3235 = vset.pattern.permute.xlu0 %v3343_v14  ;;  %v1434_v24 = vunpack.c.l.s4 %v3345_v22  ;;  %v1437_v28 = vshrl.u32 %v1166_v44, 7 }
 0x1d1   : > { %vm2471_vm12 = vcmask 162816   ;;  %vm2829_vm14 = vcmask 31744  }
 0x1e3   : > { %v3860_v45 = vpop.f32.mrb[0].mxu1 }
 0x1e4   : > { %v1349_v41 = vmul.f32 %v3043_v47, %v3860_v45  ;;  %v3863_v35 = vpop.f32.mrb[1].mxu1 }
 0x1e5   : > { %v1350_v6 = vmul.f32 %v3044_v48, %v3863_v35  ;;  %v3049_v48 = vsel %vm1328_vm3, 1.0, %v3339_v12 }
 0x1e6   : > { %v1359_v53 = vsel %vm784_vm9, %v1349_v41, 0.0  ;;  %v1377_v51 = vmul.f32 %v1349_v41, %v3860_v45 }
 0x1e7   : > { %v1360_v57 = vadd.f32 %v1359_v53, %v1358_v11  ;;  %v1361_v58 = vsel %vm784_vm9, %v1350_v6, 0.0  ;;  %v1378_v59 = vmul.f32 %v1350_v6, %v3863_v35  ;;  %v1315_v11 = vsel %vm1297_vm4, %v1306_v5, %v1228_v50 }
 0x1e8   : > { %v1387_v60 = vsel %vm784_vm9, %v1377_v51, 0.0  ;;  %vm1324_vm8 = vcmp.lt.s32.totalorder %v1315_v11, 32  ;;  %vm5396_vm4 = vcmask 519168  }
 0x1e9   : > { %v1388_v62 = vadd.f32 %v1387_v60, %v1386_v15  ;;  %v1362_v63 = vadd.f32 %v1361_v58, %v1360_v57  ;;  %v1389_v0 = vsel %vm784_vm9, %v1378_v59, 0.0  ;;  %v1308_v15 = vadd.s32 34, %v1250_v8  ;;  %vm5397_vm5 = vmmov %vm5396_vm4 }
 0x1ea   : > { %v3045_v18 = vsel %vm1324_vm8, 1.0, %v3339_v12  ;;  %vm1950_vm8 = vcmask 80896  }
 0x1eb   : > { %v1390_v4 = vadd.f32 %v1389_v0, %v1388_v62  ;;  %v1317_v20 = vsel %vm1299_vm13, %v1308_v15, %v1250_v8  ;;  %v1408_v15 = vld [vmem:[%s5325_s2] sm:$0xf]  ;;  %vm2650_vm13 = vcmask 97280  }
 0x1ec   : > { %vm1326_vm2 = vcmp.lt.s32.totalorder %v1317_v20, 32 }
 0x1ed   : > { %v3047_v38 = vsel %vm1326_vm2, 1.0, %v3339_v12 }
 0x1f7   : > { %v3881_v23 = vpop.f32.mrb[2].mxu0 }
 0x1f8   : > { %v1351_v26 = vmul.f32 %v3045_v18, %v3881_v23  ;;  %v3888_v27 = vpop.f32.mrb[3].mxu0 }
 0x1f9   : > { %v1352_v29 = vmul.f32 %v3046_v19, %v3888_v27 }
 0x1fa   : > { %v1363_v30 = vsel %vm784_vm9, %v1351_v26, 0.0  ;;  %v1379_v31 = vmul.f32 %v1351_v26, %v3881_v23 }
 0x1fb   : > { %v1364_v33 = vadd.f32 %v1363_v30, %v1362_v63  ;;  %v1365_v34 = vsel %vm784_vm9, %v1352_v29, 0.0  ;;  %v1380_v36 = vmul.f32 %v1352_v29, %v3888_v27  ;;  %v1435_v29 = vunpack.c.0.s8 %v1434_v24 }
 0x1fc   : > { %v1391_v37 = vsel %vm784_vm9, %v1379_v31, 0.0  ;;  %v3922_v30 = vsub.s32 0, %v1437_v28  ;;  %v3924_v31 = vsub.s32 1, %v1437_v28 }
 0x1fd   : > { %v1392_v39 = vadd.f32 %v1391_v37, %v1390_v4  ;;  %v1366_v21 = vadd.f32 %v1365_v34, %v1364_v33  ;;  %v1393_v40 = vsel %vm784_vm9, %v1380_v36, 0.0 }
 0x1ff   : > { %v1394_v43 = vadd.f32 %v1393_v40, %v1392_v39  ;;  %v3903_v25 = vpop.f32.mrb[2].mxu1 }
 0x200   : > { %v1353_v46 = vmul.f32 %v3047_v38, %v3903_v25  ;;  %v3906_v47 = vpop.f32.mrb[3].mxu1 }
 0x201   : > { %v1354_v49 = vmul.f32 %v3048_v42, %v3906_v47 }
 0x202   : > { %v1367_v41 = vsel %vm784_vm9, %v1353_v46, 0.0  ;;  %v1381_v50 = vmul.f32 %v1353_v46, %v3903_v25  ;;  %v1162_v52 = vpop.f32.mrb[4].mxu0 }
 0x203   : > { %v1369_v6 = vsel %vm784_vm9, %v1354_v49, 0.0  ;;  %v1382_v53 = vmul.f32 %v1354_v49, %v3906_v47  ;;  %v1355_v51 = vmul.f32 %v3049_v48, %v1162_v52  ;;  %v3074_v56 = vpop.f32.mrb[5].mxu0  ;;  %v1368_v55 = vadd.f32 %v1367_v41, %v1366_v21 }
 0x204   : > { %v1395_v57 = vsel %vm784_vm9, %v1381_v50, 0.0  ;;  %v3939_v48 = vsub.s32 %v1435_v29, %v1437_v28 }
 0x205   : > { %v1397_v58 = vsel %vm784_vm9, %v1382_v53, 0.0  ;;  %v1383_v59 = vmul.f32 %v1355_v51, %v1162_v52  ;;  %v1370_v12 = vadd.f32 %v1369_v6, %v1368_v55  ;;  %v1371_v60 = vsel %vm5396_vm4, %v1355_v51, 0.0 }
 0x206   : > { %v1396_v54 = vadd.f32 %v1395_v57, %v1394_v43  ;;  %vm1461_vm9 = vcmask 253952  }
 0x207   : > { %v1372_v61 = vadd.f32 %v1371_v60, %v1370_v12  ;;  %v1399_v62 = vsel %vm5397_vm5, %v1383_v59, 0.0 }
 0x208   : > { %v1398_v63 = vadd.f32 %v1397_v58, %v1396_v54 }
 0x209   : > { %1373 = vadd.xlane.f32.xlu1 %v1372_v61 }
 0x20a   : > { %v1400_v0 = vadd.f32 %v1399_v62, %v1398_v63 }
 0x20c   : > { %1401 = vadd.xlane.f32.xlu0 %v1400_v0 }
 0x296   : > { %v1374_v4 = vpop.xlane.xlu1 %1373 }
 0x297   : > { %v1403_v5 = vmul.f32 0.0009765625, %v1374_v4 }
 0x299   : > { %v1405_v7 = vmul.f32 %v1403_v5, %v1403_v5  ;;  %v1402_v8 = vpop.xlane.xlu0 %1401 }
 0x29a   : > { %v1404_v9 = vmul.f32 0.0009765625, %v1402_v8 }
 0x29c   : > { %v1406_v10 = vsub.f32 %v1404_v9, %v1405_v7 }
 0x29e   : > { %v1407_v11 = vmax.f32 %v1406_v10, 0.0 }
 0x2a0   : > { %v1409_v13 = vadd.f32 1e-05, %v1407_v11 }
 0x2a2   : > { %3249 = vrsqrt.f32 %v1409_v13 }
 0x2ac   : > { %v3250_v16 = vpop.eup %3249 }
 0x2ad   : > { %v1411_v18 = vmul.f32 %v3250_v16, %v1408_v15 }
 0x2af   : > { %1420 = vperm.xlu1 %3233, %v1411_v18   ;;  %v1412_v17 = vmul.f32 %v1411_v18, %v1403_v5 }
 0x2b1   : > { %1414 = vrot.lane.b32.xlu0 %v1412_v17, %s3344_s28  ;;  %s5343_s28 = smov 10  }
 0x2b3   : > { %3234 = vset.pattern.permute.xlu1 %v3343_v14 }
 0x323   : > { %v1415_v19 = vpop.permute.xlu0 %1414 }
 0x324   : > { %v1417_v20 = vsub.f32 %v1408_v15, %v1415_v19 }
 0x326   : > { %1425 = vperm.xlu1 %3234, %v1417_v20  }
 0x32e   : > { %v1421_v26 = vpop.permute.xlu1 %1420 }
 0x32f   : > { %v1428_v32 = vmul.f32 %v1421_v26, %v3822_v1  ;;  %v1514_v33 = vmul.f32 %v1421_v26, %v3825_v3  ;;  %v1693_v34 = vmul.f32 %v1421_v26, %v3860_v45  ;;  %v1872_v36 = vmul.f32 %v1421_v26, %v3863_v35 }
 0x330   : > { %v2051_v37 = vmul.f32 %v1421_v26, %v3881_v23  ;;  %v2214_v44 = vmul.f32 %v1421_v26, %v3888_v27  ;;  %v2393_v39 = vmul.f32 %v1421_v26, %v3903_v25  ;;  %v2572_v21 = vmul.f32 %v1421_v26, %v3906_v47 }
 0x331   : > { %v2751_v40 = vmul.f32 %v1421_v26, %v1162_v52 }
 0x3a5   : > { %v1426_v38 = vpop.permute.xlu1 %1425 }
 0x3a6   : > { %v1429_v42 = vadd.f32 %v1428_v32, %v1426_v38  ;;  %v1515_v43 = vadd.f32 %v1514_v33, %v1426_v38  ;;  %v1694_v1 = vadd.f32 %v1693_v34, %v1426_v38  ;;  %v1873_v3 = vadd.f32 %v1872_v36, %v1426_v38 }
 0x3a7   : > { %v2052_v45 = vadd.f32 %v2051_v37, %v1426_v38  ;;  %v2215_v46 = vadd.f32 %v2214_v44, %v1426_v38  ;;  %v3935_v35 = vadd.f32 %v2393_v39, %v1426_v38  ;;  %v3937_v23 = vadd.f32 %v2572_v21, %v1426_v38 }
 0x3a8   : > { %v1430_v27 = vmul.f32 0.01, %v1429_v42  ;;  %v1516_v49 = vmul.f32 0.01, %v1515_v43  ;;  %v1695_v25 = vmul.f32 0.01, %v1694_v1  ;;  %v3941_v52 = vadd.f32 %v2751_v40, %v1426_v38 }
 0x3a9   : > { %v1874_v41 = vmul.f32 0.01, %v1873_v3  ;;  %v2053_v47 = vmul.f32 0.01, %v2052_v45  ;;  %v2216_v50 = vmul.f32 0.01, %v2215_v46 }
 0x3aa   : > { %v1431_v6 = vmax.f32 %v1429_v42, %v1430_v27  ;;  %v1517_v53 = vmax.f32 %v1515_v43, %v1516_v49  ;;  %v1696_v51 = vmax.f32 %v1694_v1, %v1695_v25  ;;  %v2395_v56 = vmul.f32 0.01, %v3935_v35 }
 0x3ab   : > { %v3946_v55 = vmax.f32 %v1873_v3, %v1874_v41  ;;  %v3948_v57 = vmax.f32 %v2052_v45, %v2053_v47  ;;  %v3950_v58 = vmax.f32 %v2215_v46, %v2216_v50  ;;  %v3953_v59 = vmul.f32 0.01, %v3937_v23 }
 0x3ac   : > { %v1439_v12 = vrot.slane %v1431_v6, %v3939_v48  ;;  %v1611_v60 = vrot.slane %v1517_v53, %v3939_v48  ;;  %v1519_v54 = vcombine.low %v1431_v6, %v1517_v53  ;;  %v1790_v61 = vrot.slane %v1696_v51, %v3939_v48 }
 0x3ad   : > { %v1698_v62 = vcombine.low %v1517_v53, %v1696_v51  ;;  %v1969_v63 = vrot.slane %v3946_v55, %v3939_v48  ;;  %v1877_v0 = vcombine.low %v1696_v51, %v3946_v55  ;;  %v2148_v2 = vrot.slane %v3948_v57, %v3939_v48 }
 0x3ae   : > { %v3964_v4 = vrot.slane %v1439_v12, %v3939_v48  ;;  %v1440_v5 = vcombine.high %v1439_v12, %v1439_v12  ;;  %v3967_v7 = vrot.slane %v1611_v60, %v3939_v48  ;;  %v3970_v8 = vrot.slane %v1519_v54, %v3939_v48 }
 0x3af   : > { %v1612_v9 = vcombine.high %v1611_v60, %v1611_v60  ;;  %v3973_v10 = vrot.slane %v1790_v61, %v3939_v48  ;;  %v3976_v11 = vrot.slane %v1698_v62, %v3939_v48  ;;  %v1791_v13 = vcombine.high %v1790_v61, %v1790_v61 }
 0x3b0   : > { %v1469_v14 = vrot.slane %v3964_v4, %v3922_v30  ;;  %1462 = vst.msk [vmem:[%s3980_s5] sm:$0x1] %vm1461_vm9, %v3964_v4  ;;  %v3986_v15 = vrot.slane %v1440_v5, %v3939_v48  ;;  %v1627_v16 = vcombine.high %v3967_v7, %v3967_v7  ;;  %v3992_v18 = vrot.slane %v3967_v7, %v3922_v30 }
 0x3b1   : > { %v1527_v17 = vcombine.high %v3970_v8, %v3970_v8  ;;  %v3998_v19 = vrot.slane %v3970_v8, %v3939_v48  ;;  %v4001_v20 = vrot.slane %v1612_v9, %v3939_v48  ;;  %v1806_v22 = vcombine.high %v3973_v10, %v3973_v10 }
 0x3b2   : > { %1482 = vrot.lane.b32.xlu0 %v1469_v14, %s3333_s9  ;;  %v1473_v24 = vrot.slane %v3986_v15, %v3922_v30  ;;  %1463 = vst.msk [vmem:[%s3980_s5 + $0x20] sm:$0x1] %vm1461_vm9, %v3986_v15  ;;  %v4013_v26 = vrot.slane %v3973_v10, %v3922_v30  ;;  %v1706_v28 = vcombine.high %v3976_v11, %v3976_v11 }
 0x3b3   : > { %v4019_v29 = vrot.slane %v3976_v11, %v3939_v48  ;;  %v1551_v32 = vrot.slane %v3998_v19, %v3924_v31  ;;  %v1628_v33 = vcombine.high %v4001_v20, %v4001_v20  ;;  %v4027_v34 = vrot.slane %v4001_v20, %v3922_v30 }
 0x3b4   : > { %v4030_v36 = vrot.slane %v1791_v13, %v3939_v48  ;;  %1484 = vrot.lane.b32.xlu1 %v1473_v24, %s3333_s9  ;;  %v1970_v38 = vcombine.high %v1969_v63, %v1969_v63  ;;  %v4036_v44 = vrot.slane %v1969_v63, %v3939_v48  ;;  %v4039_v39 = vrot.slane %v1877_v0, %v3939_v48 }
 0x3b5   : > { %v1730_v37 = vrot.slane %v4019_v29, %v3924_v31  ;;  %v4048_v42 = vrot.slane %v2148_v2, %v3939_v48  ;;  %v2311_v43 = vrot.slane %v3950_v58, %v3939_v48  ;;  %v2056_v25 = vcombine.low %v3946_v55, %v3948_v57 }
 0x3b6   : > { %v1807_v21 = vcombine.high %v4030_v36, %v4030_v36  ;;  %v4045_v40 = vrot.slane %v4030_v36, %v3922_v30  ;;  %1498 = vrot.lane.b32.xlu0 %v1469_v14, %s3336_s12  ;;  %v1985_v1 = vcombine.high %v4036_v44, %v4036_v44  ;;  %v4057_v3 = vrot.slane %v4036_v44, %v3922_v30 }
 0x3b7   : > { %v4061_v45 = vrot.slane %v4039_v39, %v3939_v48  ;;  %v4064_v46 = vrot.slane %v1970_v38, %v3939_v48  ;;  %v4068_v27 = vrot.slane %v4048_v42, %v3922_v30  ;;  %v4071_v49 = vrot.slane %v2311_v43, %v3939_v48 }
 0x3b8   : > { %v2149_v41 = vcombine.high %v2148_v2, %v2148_v2  ;;  %1500 = vrot.lane.b32.xlu1 %v1473_v24, %s3336_s12  ;;  %v2396_v6 = vmax.f32 %v3935_v35, %v2395_v56  ;;  %v2219_v53 = vcombine.low %v3948_v57, %v3950_v58  ;;  %v4090_v55 = vrot.slane %v2056_v25, %v3939_v48 }
 0x3b9   : > { %v1909_v47 = vrot.slane %v4061_v45, %v3924_v31  ;;  %v4080_v50 = vrot.slane %v4064_v46, %v3922_v30  ;;  %v4087_v51 = vrot.slane %v4071_v49, %v3922_v30  ;;  %v2312_v60 = vcombine.high %v2311_v43, %v2311_v43 }
 0x3ba   : > { %v4093_v12 = vrot.slane %v2149_v41, %v3939_v48  ;;  %1645 = vrot.lane.b32.xlu0 %v3992_v18, %s3346_s6  ;;  %v2490_v35 = vrot.slane %v2396_v6, %v3939_v48  ;;  %v4099_v56 = vrot.slane %v2219_v53, %v3939_v48  ;;  %v2575_v57 = vmax.f32 %v3937_v23, %v3953_v59 }
 0x3bb   : > { %v2398_v54 = vcombine.low %v3950_v58, %v2396_v6  ;;  %v4106_v61 = vrot.slane %v4090_v55, %v3939_v48  ;;  %v4113_v63 = vrot.slane %v2312_v60, %v3939_v48  ;;  %v2753_v0 = vmul.f32 0.01, %v3941_v52 }
 0x3bc   : > { %v4110_v62 = vrot.slane %v4093_v12, %v3922_v30  ;;  %1578 = vrot.lane.b32.xlu1 %v1551_v32, %s5383_s7  ;;  %v4118_v23 = vrot.slane %v2490_v35, %v3939_v48  ;;  %v4122_v58 = vrot.slane %v4099_v56, %v3939_v48  ;;  %v2669_v59 = vrot.slane %v2575_v57, %v3939_v48 }
 0x3bd   : > { %v4126_v2 = vrot.slane %v2398_v54, %v3939_v48  ;;  %v4132_v9 = vrot.slane %v4113_v63, %v3922_v30  ;;  %v2754_v13 = vmax.f32 %v3941_v52, %v2753_v0  ;;  %v2491_v14 = vcombine.high %v2490_v35, %v2490_v35 }
 0x3be   : > { %1661 = vrot.lane.b32.xlu0 %v3992_v18, %s3348_s8  ;;  %v4139_v24 = vrot.slane %v4118_v23, %v3922_v30  ;;  %v4144_v38 = vrot.slane %v2669_v59, %v3939_v48  ;;  %v1455_v53 = vcombine.high %v3964_v4, %v3964_v4  ;;  %v2577_v0 = vcombine.low %v2396_v6, %v2575_v57 }
 0x3bf   : > { %v4148_v43 = vrot.slane %v4126_v2, %v3939_v48  ;;  %v2756_v52 = vcombine.low %v2575_v57, %v2754_v13  ;;  %v2848_v25 = vrot.slane %v2754_v13, %v3939_v48  ;;  %v4152_v41 = vrot.slane %v2491_v14, %v3939_v48 }
 0x3c0   : > { %1647 = vrot.lane.b32.xlu1 %v4027_v34, %s3346_s6  ;;  %v4160_v60 = vrot.slane %v4144_v38, %v3922_v30  ;;  %v4174_v14 = vrot.slane %v1455_v53, %v3922_v30  ;;  %1464 = vst.msk [vmem:[%s3980_s5 + $0x40] sm:$0x1] %vm1461_vm9, %v1455_v53  ;;  %v4182_v35 = vrot.slane %v1627_v16, %v3922_v30 }
 0x3c1   : > { %v4167_v13 = vrot.slane %v2848_v25, %v3939_v48  ;;  %v4171_v4 = vrot.slane %v4152_v41, %v3922_v30  ;;  %v4187_v6 = vrot.slane %v2577_v0, %v3939_v48  ;;  %v4190_v57 = vrot.slane %v2756_v52, %v3939_v48 }
 0x3c2   : > { %1677 = vrot.lane.b32.xlu0 %v3992_v18, %s3349_s10  ;;  %v2670_v54 = vcombine.high %v2669_v59, %v2669_v59  ;;  %v4200_v16 = vrot.slane %v1806_v22, %v3922_v30  ;;  %v2849_v18 = vcombine.high %v2848_v25, %v2848_v25  ;;  %v1456_v0 = vcombine.high %v3986_v15, %v3986_v15 }
 0x3c3   : > { %v4208_v59 = vrot.slane %v4187_v6, %v3939_v48  ;;  %v4212_v52 = vrot.slane %v4190_v57, %v3939_v48  ;;  %v4231_v25 = vrot.slane %v1527_v17, %v3939_v48  ;;  %v4251_v17 = vcombine.high %v3998_v19, %v3998_v19 }
 0x3c4   : > { %1663 = vrot.lane.b32.xlu1 %v4027_v34, %s3348_s8  ;;  %v4215_v53 = vrot.slane %v2670_v54, %v3939_v48  ;;  %v4220_v22 = vrot.slane %v2849_v18, %v3939_v48  ;;  %v4223_v15 = vrot.slane %v1456_v0, %v3922_v30  ;;  %1465 = vst.msk [vmem:[%s3980_s5 + $0x60] sm:$0x1] %vm1461_vm9, %v1456_v0 }
 0x3c5   : > { %v4237_v54 = vrot.slane %v1985_v1, %v3922_v30  ;;  %v4261_v10 = vrot.slane %v1628_v33, %v3922_v30  ;;  %v2164_v44 = vcombine.high %v4048_v42, %v4048_v42  ;;  %v4275_v1 = vrot.slane %v1706_v28, %v3939_v48 }
 0x3c6   : > { %1824 = vrot.lane.b32.xlu0 %v4013_v26, %s5353_s11  ;;  %v4247_v8 = vrot.slane %v4215_v53, %v3922_v30  ;;  %v4279_v20 = vcombine.high %v4019_v29, %v4019_v29  ;;  %v2327_v42 = vcombine.high %v4071_v49, %v4071_v49  ;;  %v1885_v11 = vcombine.high %v4039_v39, %v4039_v39 }
 0x3c7   : > { %v4296_v28 = vrot.slane %v2164_v44, %v3922_v30  ;;  %v4312_v0 = vcombine.high %v4061_v45, %v4061_v45  ;;  %v2506_v44 = vcombine.high %v4118_v23, %v4118_v23  ;;  %v2227_v23 = vcombine.high %v4099_v56, %v4099_v56 }
 0x3c8   : > { %1679 = vrot.lane.b32.xlu1 %v4027_v34, %s3349_s10  ;;  %v4287_v34 = vrot.slane %v1807_v21, %v3922_v30  ;;  %v4305_v49 = vrot.slane %v2327_v42, %v3922_v30  ;;  %v4308_v39 = vrot.slane %v1885_v11, %v3939_v48  ;;  %v1986_v42 = vcombine.high %v4064_v46, %v4064_v46 }
 0x3c9   : > { %v2064_v21 = vcombine.high %v4090_v55, %v4090_v55  ;;  %v4337_v46 = vcombine.high %v4106_v61, %v4106_v61  ;;  %v2685_v11 = vcombine.high %v4144_v38, %v4144_v38  ;;  %v2328_v18 = vcombine.high %v4113_v63, %v4113_v63 }
 0x3ca   : > { %1840 = vrot.lane.b32.xlu0 %v4013_v26, %s5347_s13  ;;  %v4342_v55 = vrot.slane %v1986_v42, %v3922_v30  ;;  %v4359_v42 = vcombine.high %v4122_v58, %v4122_v58  ;;  %v4399_v33 = vcombine.high %v4148_v43, %v4148_v43  ;;  %v2507_v56 = vcombine.high %v4152_v41, %v4152_v41 }
 0x3cb   : > { %v4345_v36 = vrot.slane %v2064_v21, %v3939_v48  ;;  %v4395_v38 = vrot.slane %v2328_v18, %v3922_v30  ;;  %v2585_v7 = vcombine.high %v4187_v6, %v4187_v6  ;;  %v2764_v32 = vcombine.high %v4190_v57, %v4190_v57 }
 0x3cc   : > { %1757 = vrot.lane.b32.xlu1 %v1730_v37, %s5363_s14  ;;  %v4333_v37 = vrot.slane %v2506_v44, %v3922_v30  ;;  %v2165_v44 = vcombine.high %v4093_v12, %v4093_v12  ;;  %v4366_v12 = vrot.slane %v2685_v11, %v3922_v30  ;;  %v4444_v41 = vcombine.high %v4212_v52, %v4212_v52  ;;  %s5387_s14 = smov 20  }
 0x3cd   : > { %v4436_v18 = vrot.slane %v2585_v7, %v3939_v48  ;;  %v2686_v7 = vcombine.high %v4215_v53, %v4215_v53  ;;  %v4454_v6 = vcombine.high %v4231_v25, %v4231_v25  ;;  %v4458_v57 = vcombine.high %v4275_v1, %v4275_v1 }
 0x3ce   : > { %1856 = vrot.lane.b32.xlu0 %v4013_v26, %s5345_s3  ;;  %v4369_v21 = vrot.slane %v2165_v44, %v3922_v30  ;;  %v4374_v26 = vrot.slane %v2227_v23, %v3939_v48  ;;  %v2406_v44 = vcombine.high %v4126_v2, %v4126_v2  ;;  %v4429_v23 = vrot.slane %v2507_v56, %v3922_v30 }
 0x3cf   : > { %5399 = vst [vmem:[#allocation7_spill] sm:$0xff] %v4444_v41  ;;  %5400 = vst [vmem:[#allocation8_spill] sm:$0xff] %v4454_v6  ;;  %v4463_v11 = vrot.slane %v2764_v32, %v3939_v48  ;;  %v4472_v56 = vrot.slane %v2686_v7, %v3922_v30  ;;  %v4494_v32 = vcombine.high %v4308_v39, %v4308_v39 }
 0x3d0   : > { %1826 = vrot.lane.b32.xlu1 %v4045_v40, %s5353_s11  ;;  %v4406_v2 = vrot.slane %v2406_v44, %v3939_v48  ;;  %v4422_v44 = vcombine.high %v4208_v59, %v4208_v59  ;;  %5401 = vst [vmem:[#allocation9_spill] sm:$0xff] %v4458_v57  ;;  %v4498_v48 = vcombine.high %v4345_v36, %v4345_v36  ;;  %s5361_s11 = smov 28  }
 0x3d1   : > { %5402 = vst [vmem:[#allocation10_spill] sm:$0xff] %v4463_v11  ;;  %5403 = vst [vmem:[#allocation11_spill] sm:$0xff] %v4472_v56  ;;  %v4510_v5 = vcombine.high %v4436_v18, %v4436_v18  ;;  %v2864_v53 = vcombine.high %v4167_v13, %v4167_v13  ;;  %v1933_v57 = vrot.slane %v4494_v32, %v3924_v31 }
 0x3d2   : > { %2003 = vrot.lane.b32.xlu0 %v4057_v3, %s5341_s21  ;;  %5398 = vst [vmem:[#allocation6_spill] sm:$0xff] %v4422_v44  ;;  %v4506_v7 = vcombine.high %v4406_v2, %v4406_v2 }
 0x3d3   : > { %v2629_v6 = vrot.slane %v4510_v5, %v3922_v30  ;;  %v2633_v56 = vrot.slane %v4510_v5, %v3924_v31  ;;  %v4549_v44 = vrot.slane %v2864_v53, %v3922_v30 }
 0x3d4   : > { %1842 = vrot.lane.b32.xlu1 %v4045_v40, %s5347_s13  ;;  %s5389_s13 = smov 54  }
 0x3d6   : > { %2019 = vrot.lane.b32.xlu0 %v4057_v3, %s5349_s23 }
 0x3d8   : > { %1858 = vrot.lane.b32.xlu1 %v4045_v40, %s5345_s3  ;;  %v2865_v40 = vcombine.high %v4220_v22, %v4220_v22  ;;  %s5355_s3 = smov 2  }
 0x3da   : > { %2035 = vrot.lane.b32.xlu0 %v4057_v3, %s5351_s25  ;;  %v4502_v3 = vcombine.high %v4374_v26, %v4374_v26  ;;  %v4552_v63 = vrot.slane %v2865_v40, %v3922_v30  ;;  %v5404_v40 = vrot.slane %v4106_v61, %v3924_v31 }
 0x3dc   : > { %1936 = vrot.lane.b32.xlu1 %v1909_v47, %s5343_s28  ;;  %v4514_v47 = vcombine.high %v4463_v11, %v4463_v11  ;;  %s3361_s28 = smov 88  }
 0x3de   : > { %2182 = vrot.lane.b32.xlu0 %v4068_v27, %s5357_s30  ;;  %v2808_v41 = vrot.slane %v4514_v47, %v3922_v30  ;;  %v2812_v11 = vrot.slane %v4514_v47, %v3924_v31 }
 0x3e0   : > { %2005 = vrot.lane.b32.xlu1 %v4080_v50, %s5341_s21  ;;  %s5365_s21 = smov 122  }
 0x3e2   : > { %2198 = vrot.lane.b32.xlu0 %v4068_v27, %s5359_s29  ;;  %v5405_v27 = vrot.slane %v4122_v58, %v3924_v31 }
 0x3e4   : > { %2021 = vrot.lane.b32.xlu1 %v4080_v50, %s5349_s23  ;;  %s5367_s23 = smov 114  }
 0x3e6   : > { %2345 = vrot.lane.b32.xlu0 %v4087_v51, %s5365_s21 }
 0x3e8   : > { %2037 = vrot.lane.b32.xlu1 %v4080_v50, %s5351_s25  ;;  %s5369_s25 = smov 80   ;;  %v5406_v50 = vrot.slane %v4148_v43, %v3924_v31 }
 0x3ea   : > { %2361 = vrot.lane.b32.xlu0 %v4087_v51, %s3361_s28 }
 0x3ec   : > { %2115 = vrot.lane.b32.xlu1 %v5404_v40, %s5355_s3  ;;  %s5385_s3 = smov 46  }
 0x3ee   : > { %2377 = vrot.lane.b32.xlu0 %v4087_v51, %s5389_s13  ;;  %v5407_v51 = vrot.slane %v4167_v13, %v3922_v30 }
 0x3f0   : > { %2184 = vrot.lane.b32.xlu1 %v4110_v62, %s5357_s30  ;;  %s5373_s30 = smov 106  }
 0x3f2   : > { %2524 = vrot.lane.b32.xlu0 %v4139_v24, %s5367_s23 }
 0x3f4   : > { %2200 = vrot.lane.b32.xlu1 %v4110_v62, %s5359_s29  ;;  %s5375_s29 = smov 72   ;;  %v5408_v62 = vrot.slane %v3998_v19, %v3922_v30 }
 0x3f6   : > { %2540 = vrot.lane.b32.xlu0 %v4139_v24, %s5369_s25 }
 0x3f8   : > { %2278 = vrot.lane.b32.xlu1 %v5405_v27, %s5361_s11  ;;  %s5377_s11 = smov 38   ;;  %v5418_v27 = vrot.slane %v4061_v45, %v3922_v30 }
 0x3fa   : > { %2556 = vrot.lane.b32.xlu0 %v4139_v24, %s5385_s3  ;;  %v5410_v24 = vrot.slane %v4212_v52, %v3924_v31 }
 0x3fc   : > { %2347 = vrot.lane.b32.xlu1 %v4132_v9, %s5365_s21  ;;  %s5379_s21 = smov 98  }
 0x3fe   : > { %2703 = vrot.lane.b32.xlu0 %v4160_v60, %s5373_s30 }
 0x400   : > { %2363 = vrot.lane.b32.xlu1 %v4132_v9, %s3361_s28 }
 0x402   : > { %2719 = vrot.lane.b32.xlu0 %v4160_v60, %s5375_s29 }
 0x404   : > { %2379 = vrot.lane.b32.xlu1 %v4132_v9, %s5389_s13  ;;  %v5409_v9 = vrot.slane %v4208_v59, %v3924_v31 }
 0x406   : > { %2735 = vrot.lane.b32.xlu0 %v4160_v60, %s5377_s11  ;;  %v5412_v60 = vrot.slane %v4019_v29, %v3922_v30 }
 0x408   : > { %2457 = vrot.lane.b32.xlu1 %v5406_v50, %s5387_s14 }
 0x40a   : > { %2882 = vrot.lane.b32.xlu0 %v5407_v51, %s5379_s21  ;;  %v5419_v51 = vrot.slane %v4231_v25, %v3924_v31 }
 0x40c   : > { %2526 = vrot.lane.b32.xlu1 %v4171_v4, %s5367_s23  ;;  %s5371_s23 = smov 12  }
 0x40e   : > { %1486 = vrot.lane.b32.xlu0 %v4174_v14, %s3333_s9 }
 0x410   : > { %2542 = vrot.lane.b32.xlu1 %v4171_v4, %s5369_s25  ;;  %s5381_s25 = smov 4  }
 0x412   : > { %1502 = vrot.lane.b32.xlu0 %v4174_v14, %s3336_s12  ;;  %v5414_v14 = vrot.slane %v4220_v22, %v3922_v30 }
 0x414   : > { %2558 = vrot.lane.b32.xlu1 %v4171_v4, %s5385_s3  ;;  %s5432_s3 = smov 122  }
 0x416   : > { %1576 = vrot.lane.b32.xlu0 %v5408_v62, %s5383_s7  ;;  %v5421_v62 = vrot.slane %v4251_v17, %v3924_v31 }
 0x418   : > { %2636 = vrot.lane.b32.xlu1 %v5409_v9, %s5371_s23  ;;  %s5411_s23 = smov 18  }
 0x41a   : > { %1649 = vrot.lane.b32.xlu0 %v4182_v35, %s3346_s6 }
 0x41c   : > { %2815 = vrot.lane.b32.xlu1 %v5410_v24, %s5381_s25  ;;  %s5423_s25 = smov 36  }
 0x41e   : > { %1665 = vrot.lane.b32.xlu0 %v4182_v35, %s3348_s8 }
 0x420   : > { %2705 = vrot.lane.b32.xlu1 %v4247_v8, %s5373_s30  ;;  %s5413_s30 = smov 112  }
 0x422   : > { %1681 = vrot.lane.b32.xlu0 %v4182_v35, %s3349_s10 }
 0x424   : > { %v1483_v19 = vpop.permute.xlu0 %1482  ;;  %2721 = vrot.lane.b32.xlu1 %v4247_v8, %s5375_s29  ;;  %s5415_s29 = smov 78  }
 0x425   : > { %1494 = vst.msk [vmem:[%s3980_s5 + $0x1] sm:$0x1] %vm1461_vm9, %v1483_v19 }
 0x426   : > { %1755 = vrot.lane.b32.xlu0 %v5412_v60, %s5411_s23  ;;  %v1485_v13 = vpop.permute.xlu1 %1484 }
 0x427   : > { %1495 = vst.msk [vmem:[%s3980_s5 + $0x21] sm:$0x1] %vm1461_vm9, %v1485_v13  ;;  %v5425_v13 = vrot.slane %v4106_v61, %v3922_v30 }
 0x428   : > { %v1499_v4 = vpop.permute.xlu0 %1498  ;;  %2737 = vrot.lane.b32.xlu1 %v4247_v8, %s5377_s11  ;;  %s5416_s11 = smov 44  }
 0x429   : > { %1510 = vst.msk [vmem:[%s3980_s5 + $0x2] sm:$0x1] %vm1461_vm9, %v1499_v4 }
 0x42a   : > { %1828 = vrot.lane.b32.xlu0 %v4200_v16, %s5413_s30  ;;  %v1501_v35 = vpop.permute.xlu1 %1500 }
 0x42b   : > { %1511 = vst.msk [vmem:[%s3980_s5 + $0x22] sm:$0x1] %vm1461_vm9, %v1501_v35 }
 0x42c   : > { %v1646_v29 = vpop.permute.xlu0 %1645  ;;  %2884 = vrot.lane.b32.xlu1 %v5414_v14, %s5379_s21  ;;  %s5417_s21 = smov 10  }
 0x42d   : > { %1657 = vst.msk [vmem:[%s3980_s5 + $0x4] sm:$0x1] %vm1461_vm9, %v1646_v29  ;;  %v5427_v29 = vrot.slane %v4275_v1, %v3924_v31 }
 0x42e   : > { %1844 = vrot.lane.b32.xlu0 %v4200_v16, %s5415_s29  ;;  %v4660_v8 = vpop.permute.xlu1 %1578 }
 0x430   : > { %v1662_v53 = vpop.permute.xlu0 %1661  ;;  %1488 = vrot.lane.b32.xlu1 %v4223_v15, %s3333_s9  ;;  %s5420_s9 = smov 104  }
 0x431   : > { %1673 = vst.msk [vmem:[%s3980_s5 + $0x5] sm:$0x1] %vm1461_vm9, %v1662_v53  ;;  %v5429_v53 = vrot.slane %v4279_v20, %v3924_v31 }
 0x432   : > { %1860 = vrot.lane.b32.xlu0 %v4200_v16, %s5416_s11  ;;  %v1648_v22 = vpop.permute.xlu1 %1647 }
 0x433   : > { %1658 = vst.msk [vmem:[%s3980_s5 + $0x24] sm:$0x1] %vm1461_vm9, %v1648_v22  ;;  %v5431_v22 = vrot.slane %v4122_v58, %v3922_v30 }
 0x434   : > { %v1678_v40 = vpop.permute.xlu0 %1677  ;;  %1504 = vrot.lane.b32.xlu1 %v4223_v15, %s3336_s12  ;;  %s5422_s12 = smov 70  }
 0x435   : > { %1689 = vst.msk [vmem:[%s3980_s5 + $0x6] sm:$0x1] %vm1461_vm9, %v1678_v40 }
 0x436   : > { %1934 = vrot.lane.b32.xlu0 %v5418_v27, %s5417_s21  ;;  %v1664_v50 = vpop.permute.xlu1 %1663 }
 0x437   : > { %1674 = vst.msk [vmem:[%s3980_s5 + $0x25] sm:$0x1] %vm1461_vm9, %v1664_v50 }
 0x438   : > { %v1825_v16 = vpop.permute.xlu0 %1824  ;;  %1582 = vrot.lane.b32.xlu1 %v5419_v51, %s5383_s7 }
 0x439   : > { %1836 = vst.msk [vmem:[%s3980_s5 + $0x8] sm:$0x1] %vm1461_vm9, %v1825_v16 }
 0x43a   : > { %2007 = vrot.lane.b32.xlu0 %v4237_v54, %s5420_s9  ;;  %v1680_v15 = vpop.permute.xlu1 %1679 }
 0x43b   : > { %1690 = vst.msk [vmem:[%s3980_s5 + $0x26] sm:$0x1] %vm1461_vm9, %v1680_v15 }
 0x43c   : > { %v1841_v45 = vpop.permute.xlu0 %1840  ;;  %1586 = vrot.lane.b32.xlu1 %v5421_v62, %s5383_s7  ;;  %s5424_s7 = smov 2  }
 0x43d   : > { %1852 = vst.msk [vmem:[%s3980_s5 + $0x9] sm:$0x1] %vm1461_vm9, %v1841_v45  ;;  %v5433_v45 = vrot.slane %v4308_v39, %v3924_v31 }
 0x43e   : > { %2023 = vrot.lane.b32.xlu0 %v4237_v54, %s5422_s12  ;;  %v4698_v9 = vpop.permute.xlu1 %1757 }
 0x440   : > { %v1857_v24 = vpop.permute.xlu0 %1856  ;;  %1651 = vrot.lane.b32.xlu1 %v4261_v10, %s3346_s6  ;;  %s5426_s6 = smov 96  }
 0x441   : > { %1868 = vst.msk [vmem:[%s3980_s5 + $0xa] sm:$0x1] %vm1461_vm9, %v1857_v24  ;;  %v5435_v24 = vrot.slane %v4312_v0, %v3924_v31 }
 0x442   : > { %2039 = vrot.lane.b32.xlu0 %v4237_v54, %s5423_s25  ;;  %v1827_v19 = vpop.permute.xlu1 %1826 }
 0x443   : > { %1837 = vst.msk [vmem:[%s3980_s5 + $0x28] sm:$0x1] %vm1461_vm9, %v1827_v19 }
 0x444   : > { %v2004_v60 = vpop.permute.xlu0 %2003  ;;  %1667 = vrot.lane.b32.xlu1 %v4261_v10, %s3348_s8  ;;  %s5428_s8 = smov 62  }
 0x445   : > { %2015 = vst.msk [vmem:[%s3980_s5 + $0xc] sm:$0x1] %vm1461_vm9, %v2004_v60 }
 0x446   : > { %2113 = vrot.lane.b32.xlu0 %v5425_v13, %s5424_s7  ;;  %v1843_v4 = vpop.permute.xlu1 %1842 }
 0x447   : > { %1853 = vst.msk [vmem:[%s3980_s5 + $0x29] sm:$0x1] %vm1461_vm9, %v1843_v4 }
 0x448   : > { %v2020_v54 = vpop.permute.xlu0 %2019  ;;  %1683 = vrot.lane.b32.xlu1 %v4261_v10, %s3349_s10  ;;  %s5430_s10 = smov 28  }
 0x449   : > { %2031 = vst.msk [vmem:[%s3980_s5 + $0xd] sm:$0x1] %vm1461_vm9, %v2020_v54 }
 0x44a   : > { %2186 = vrot.lane.b32.xlu0 %v4296_v28, %s5426_s6  ;;  %v1859_v35 = vpop.permute.xlu1 %1858 }
 0x44b   : > { %1869 = vst.msk [vmem:[%s3980_s5 + $0x2a] sm:$0x1] %vm1461_vm9, %v1859_v35  ;;  %v5440_v35 = vrot.slane %v4208_v59, %v3922_v30 }
 0x44c   : > { %v2036_v61 = vpop.permute.xlu0 %2035  ;;  %1761 = vrot.lane.b32.xlu1 %v5427_v29, %s5411_s23  ;;  %v5441_v29 = vrot.slane %v4345_v36, %v3924_v31 }
 0x44d   : > { %2047 = vst.msk [vmem:[%s3980_s5 + $0xe] sm:$0x1] %vm1461_vm9, %v2036_v61 }
 0x44e   : > { %2202 = vrot.lane.b32.xlu0 %v4296_v28, %s5428_s8  ;;  %v4734_v10 = vpop.permute.xlu1 %1936 }
 0x450   : > { %v2183_v14 = vpop.permute.xlu0 %2182  ;;  %1765 = vrot.lane.b32.xlu1 %v5429_v53, %s5411_s23  ;;  %v5444_v53 = vrot.slane %v4337_v46, %v3924_v31 }
 0x451   : > { %2194 = vst.msk [vmem:[%s3980_s5 + $0x10] sm:$0x1] %vm1461_vm9, %v2183_v14 }
 0x452   : > { %2276 = vrot.lane.b32.xlu0 %v5431_v22, %s5430_s10  ;;  %v2006_v40 = vpop.permute.xlu1 %2005 }
 0x453   : > { %2016 = vst.msk [vmem:[%s3980_s5 + $0x2c] sm:$0x1] %vm1461_vm9, %v2006_v40 }
 0x454   : > { %v2199_v28 = vpop.permute.xlu0 %2198  ;;  %1830 = vrot.lane.b32.xlu1 %v4287_v34, %s5413_s30  ;;  %s5438_s30 = smov 46  }
 0x455   : > { %2210 = vst.msk [vmem:[%s3980_s5 + $0x11] sm:$0x1] %vm1461_vm9, %v2199_v28 }
 0x456   : > { %2349 = vrot.lane.b32.xlu0 %v4305_v49, %s5432_s3  ;;  %v2022_v27 = vpop.permute.xlu1 %2021 }
 0x457   : > { %2032 = vst.msk [vmem:[%s3980_s5 + $0x2d] sm:$0x1] %vm1461_vm9, %v2022_v27 }
 0x458   : > { %v2346_v50 = vpop.permute.xlu0 %2345  ;;  %1846 = vrot.lane.b32.xlu1 %v4287_v34, %s5415_s29  ;;  %s5436_s29 = smov 114  }
 0x459   : > { %2357 = vst.msk [vmem:[%s3980_s5 + $0x13] sm:$0x1] %vm1461_vm9, %v2346_v50 }
 0x45a   : > { %2365 = vrot.lane.b32.xlu0 %v4305_v49, %s3361_s28  ;;  %v2038_v58 = vpop.permute.xlu1 %2037 }
 0x45b   : > { %2048 = vst.msk [vmem:[%s3980_s5 + $0x2e] sm:$0x1] %vm1461_vm9, %v2038_v58  ;;  %v5448_v58 = vrot.slane %v4374_v26, %v3924_v31 }
 0x45c   : > { %v2362_v16 = vpop.permute.xlu0 %2361  ;;  %1862 = vrot.lane.b32.xlu1 %v4287_v34, %s5416_s11  ;;  %v5434_v34 = vrot.slane %v4148_v43, %v3922_v30  ;;  %s5437_s11 = smov 80  }
 0x45d   : > { %2373 = vst.msk [vmem:[%s3980_s5 + $0x14] sm:$0x1] %vm1461_vm9, %v2362_v16 }
 0x45e   : > { %2381 = vrot.lane.b32.xlu0 %v4305_v49, %s5389_s13  ;;  %v4770_v51 = vpop.permute.xlu1 %2115  ;;  %s5447_s13 = smov 38  }
 0x460   : > { %v2378_v15 = vpop.permute.xlu0 %2377  ;;  %1940 = vrot.lane.b32.xlu1 %v5433_v45, %s5417_s21 }
 0x461   : > { %2389 = vst.msk [vmem:[%s3980_s5 + $0x15] sm:$0x1] %vm1461_vm9, %v2378_v15  ;;  %v5451_v15 = vrot.slane %v4359_v42, %v3924_v31 }
 0x462   : > { %2455 = vrot.lane.b32.xlu0 %v5434_v34, %s5387_s14  ;;  %v2185_v62 = vpop.permute.xlu1 %2184  ;;  %s5446_s14 = smov 72  }
 0x463   : > { %2195 = vst.msk [vmem:[%s3980_s5 + $0x30] sm:$0x1] %vm1461_vm9, %v2185_v62 }
 0x464   : > { %v2525_v49 = vpop.permute.xlu0 %2524  ;;  %1944 = vrot.lane.b32.xlu1 %v5435_v24, %s5417_s21 }
 0x465   : > { %2536 = vst.msk [vmem:[%s3980_s5 + $0x17] sm:$0x1] %vm1461_vm9, %v2525_v49 }
 0x466   : > { %2528 = vrot.lane.b32.xlu0 %v4333_v37, %s5436_s29  ;;  %v2201_v19 = vpop.permute.xlu1 %2200 }
 0x467   : > { %2211 = vst.msk [vmem:[%s3980_s5 + $0x31] sm:$0x1] %vm1461_vm9, %v2201_v19 }
 0x468   : > { %v2541_v43 = vpop.permute.xlu0 %2540  ;;  %2009 = vrot.lane.b32.xlu1 %v4342_v55, %s5420_s9  ;;  %s5439_s9 = smov 12  }
 0x469   : > { %2552 = vst.msk [vmem:[%s3980_s5 + $0x18] sm:$0x1] %vm1461_vm9, %v2541_v43  ;;  %v5456_v43 = vrot.slane %v4308_v39, %v3922_v30  ;;  %v5459_v39 = vrot.slane %v4312_v0, %v3922_v30 }
 0x46a   : > { %2544 = vrot.lane.b32.xlu0 %v4333_v37, %s5437_s11  ;;  %v4800_v60 = vpop.permute.xlu1 %2278 }
 0x46c   : > { %v2557_v13 = vpop.permute.xlu0 %2556  ;;  %2025 = vrot.lane.b32.xlu1 %v4342_v55, %s5422_s12  ;;  %s5445_s12 = smov 106  }
 0x46d   : > { %2568 = vst.msk [vmem:[%s3980_s5 + $0x19] sm:$0x1] %vm1461_vm9, %v2557_v13 }
 0x46e   : > { %2560 = vrot.lane.b32.xlu0 %v4333_v37, %s5438_s30  ;;  %v2348_v4 = vpop.permute.xlu1 %2347 }
 0x46f   : > { %2358 = vst.msk [vmem:[%s3980_s5 + $0x33] sm:$0x1] %vm1461_vm9, %v2348_v4  ;;  %v5458_v4 = vrot.slane %v4406_v2, %v3924_v31 }
 0x470   : > { %v2704_v54 = vpop.permute.xlu0 %2703  ;;  %2041 = vrot.lane.b32.xlu1 %v4342_v55, %s5423_s25  ;;  %s5442_s25 = smov 4   ;;  %v5443_v55 = vrot.slane %v4212_v52, %v3922_v30 }
 0x471   : > { %2715 = vst.msk [vmem:[%s3980_s5 + $0x1b] sm:$0x1] %vm1461_vm9, %v2704_v54 }
 0x472   : > { %2634 = vrot.lane.b32.xlu0 %v5440_v35, %s5439_s9  ;;  %v2364_v61 = vpop.permute.xlu1 %2363 }
 0x473   : > { %2374 = vst.msk [vmem:[%s3980_s5 + $0x34] sm:$0x1] %vm1461_vm9, %v2364_v61  ;;  %v5460_v61 = vrot.slane %v4399_v33, %v3924_v31 }
 0x474   : > { %v2720_v37 = vpop.permute.xlu0 %2719  ;;  %2119 = vrot.lane.b32.xlu1 %v5441_v29, %s5424_s7  ;;  %v5462_v29 = vrot.slane %v4337_v46, %v3922_v30 }
 0x475   : > { %2731 = vst.msk [vmem:[%s3980_s5 + $0x1c] sm:$0x1] %vm1461_vm9, %v2720_v37 }
 0x476   : > { %2813 = vrot.lane.b32.xlu0 %v5443_v55, %s5442_s25  ;;  %v2380_v59 = vpop.permute.xlu1 %2379 }
 0x477   : > { %2390 = vst.msk [vmem:[%s3980_s5 + $0x35] sm:$0x1] %vm1461_vm9, %v2380_v59  ;;  %v5463_v59 = vrot.slane %v4374_v26, %v3922_v30  ;;  %v5464_v26 = vrot.slane %v4359_v42, %v3922_v30 }
 0x478   : > { %v2736_v14 = vpop.permute.xlu0 %2735  ;;  %2123 = vrot.lane.b32.xlu1 %v5444_v53, %s5424_s7 }
 0x479   : > { %2747 = vst.msk [vmem:[%s3980_s5 + $0x1d] sm:$0x1] %vm1461_vm9, %v2736_v14 }
 0x47a   : > { %2707 = vrot.lane.b32.xlu0 %v4366_v12, %s5445_s12  ;;  %v4840_v22 = vpop.permute.xlu1 %2457 }
 0x47c   : > { %v2883_v52 = vpop.permute.xlu0 %2882  ;;  %2188 = vrot.lane.b32.xlu1 %v4369_v21, %s5426_s6  ;;  %s5449_s6 = smov 26  }
 0x47d   : > { %2894 = vst.msk [vmem:[%s3980_s5 + $0x1f] sm:$0x1] %vm1461_vm9, %v2883_v52 }
 0x47e   : > { %2723 = vrot.lane.b32.xlu0 %v4366_v12, %s5446_s14  ;;  %v2527_v40 = vpop.permute.xlu1 %2526 }
 0x47f   : > { %2537 = vst.msk [vmem:[%s3980_s5 + $0x37] sm:$0x1] %vm1461_vm9, %v2527_v40 }
 0x480   : > { %v1487_v28 = vpop.permute.xlu0 %1486  ;;  %2204 = vrot.lane.b32.xlu1 %v4369_v21, %s5428_s8  ;;  %v5450_v21 = vrot.slane %v4231_v25, %v3922_v30  ;;  %v5452_v25 = vrot.slane %v4251_v17, %v3922_v30  ;;  %v5454_v17 = vrot.slane %v4279_v20, %v3922_v30 }
 0x481   : > { %1496 = vst.msk [vmem:[%s3980_s5 + $0x41] sm:$0x1] %vm1461_vm9, %v1487_v28  ;;  %v5465_v28 = vrot.slane %v4436_v18, %v3924_v31 }
 0x482   : > { %2739 = vrot.lane.b32.xlu0 %v4366_v12, %s5447_s13  ;;  %v2543_v27 = vpop.permute.xlu1 %2542 }
 0x483   : > { %2553 = vst.msk [vmem:[%s3980_s5 + $0x38] sm:$0x1] %vm1461_vm9, %v2543_v27  ;;  %v5467_v27 = vld [vmem:[#allocation6_spill] sm:$0xff] }
 0x484   : > { %v1503_v50 = vpop.permute.xlu0 %1502  ;;  %2282 = vrot.lane.b32.xlu1 %v5448_v58, %s5430_s10  ;;  %v5469_v58 = vrot.slane %v4399_v33, %v3922_v30 }
 0x485   : > { %1512 = vst.msk [vmem:[%s3980_s5 + $0x42] sm:$0x1] %vm1461_vm9, %v1503_v50  ;;  %v5468_v50 = vrot.slane %v5467_v27, %v3924_v31 }
 0x486   : > { %1580 = vrot.lane.b32.xlu0 %v5450_v21, %s5449_s6  ;;  %v2559_v16 = vpop.permute.xlu1 %2558 }
 0x487   : > { %2569 = vst.msk [vmem:[%s3980_s5 + $0x39] sm:$0x1] %vm1461_vm9, %v2559_v16  ;;  %v5470_v16 = vld [vmem:[#allocation10_spill] sm:$0xff] }
 0x488   : > { %v1577_v12 = vpop.permute.xlu0 %1576  ;;  %2286 = vrot.lane.b32.xlu1 %v5451_v15, %s5430_s10  ;;  %v5472_v15 = vrot.slane %v4436_v18, %v3922_v30  ;;  %v5475_v18 = vrot.slane %v5467_v27, %v3922_v30 }
 0x489   : > { %v1593_v45 = vsel %vm1592_vm6, %v1577_v12, %v4660_v8  ;;  %v5453_v8 = vrot.slane %v4275_v1, %v3922_v30  ;;  %v5471_v12 = vrot.slane %v5470_v16, %v3924_v31 }
 0x48a   : > { %1601 = vst.msk [vmem:[%s3980_s5 + $0x3] sm:$0x1] %vm1461_vm9, %v1593_v45  ;;  %1584 = vrot.lane.b32.xlu0 %v5452_v25, %s5449_s6  ;;  %v4882_v34 = vpop.permute.xlu1 %2636  ;;  %v5473_v25 = vld [vmem:[#allocation7_spill] sm:$0xff] }
 0x48c   : > { %v1650_v62 = vpop.permute.xlu0 %1649  ;;  %2351 = vrot.lane.b32.xlu1 %v4395_v38, %s5432_s3  ;;  %s5455_s3 = smov 54  }
 0x48d   : > { %1659 = vst.msk [vmem:[%s3980_s5 + $0x44] sm:$0x1] %vm1461_vm9, %v1650_v62  ;;  %v5474_v62 = vrot.slane %v5473_v25, %v3924_v31 }
 0x48e   : > { %1759 = vrot.lane.b32.xlu0 %v5453_v8, %s5411_s23  ;;  %v4892_v49 = vpop.permute.xlu1 %2815 }
 0x490   : > { %v1666_v24 = vpop.permute.xlu0 %1665  ;;  %2367 = vrot.lane.b32.xlu1 %v4395_v38, %s3361_s28  ;;  %s5457_s28 = smov 20  }
 0x491   : > { %1675 = vst.msk [vmem:[%s3980_s5 + $0x45] sm:$0x1] %vm1461_vm9, %v1666_v24 }
 0x492   : > { %1763 = vrot.lane.b32.xlu0 %v5454_v17, %s5411_s23  ;;  %v2706_v19 = vpop.permute.xlu1 %2705 }
 0x493   : > { %2716 = vst.msk [vmem:[%s3980_s5 + $0x3b] sm:$0x1] %vm1461_vm9, %v2706_v19  ;;  %v5476_v19 = vld [vmem:[#allocation11_spill] sm:$0xff] }
 0x494   : > { %v1682_v1 = vpop.permute.xlu0 %1681  ;;  %2383 = vrot.lane.b32.xlu1 %v4395_v38, %s5455_s3 }
 0x495   : > { %1691 = vst.msk [vmem:[%s3980_s5 + $0x46] sm:$0x1] %vm1461_vm9, %v1682_v1 }
 0x496   : > { %1938 = vrot.lane.b32.xlu0 %v5456_v43, %s5417_s21  ;;  %v2722_v13 = vpop.permute.xlu1 %2721 }
 0x497   : > { %2732 = vst.msk [vmem:[%s3980_s5 + $0x3c] sm:$0x1] %vm1461_vm9, %v2722_v13  ;;  %v5478_v13 = vrot.slane %v5473_v25, %v3922_v30 }
 0x498   : > { %v1756_v20 = vpop.permute.xlu0 %1755  ;;  %2461 = vrot.lane.b32.xlu1 %v5458_v4, %s5457_s28 }
 0x499   : > { %v1772_v38 = vsel %vm1771_vm7, %v1756_v20, %v4698_v9  ;;  %v5461_v9 = vrot.slane %v4345_v36, %v3922_v30 }
 0x49a   : > { %1780 = vst.msk [vmem:[%s3980_s5 + $0x7] sm:$0x1] %vm1461_vm9, %v1772_v38  ;;  %1942 = vrot.lane.b32.xlu0 %v5459_v39, %s5417_s21  ;;  %v2738_v54 = vpop.permute.xlu1 %2737  ;;  %v5479_v39 = vld [vmem:[#allocation8_spill] sm:$0xff] }
 0x49b   : > { %2748 = vst.msk [vmem:[%s3980_s5 + $0x3d] sm:$0x1] %vm1461_vm9, %v2738_v54  ;;  %v5480_v54 = vrot.slane %v5479_v39, %v3922_v30 }
 0x49c   : > { %v1829_v35 = vpop.permute.xlu0 %1828  ;;  %2465 = vrot.lane.b32.xlu1 %v5460_v61, %s5457_s28 }
 0x49d   : > { %1838 = vst.msk [vmem:[%s3980_s5 + $0x48] sm:$0x1] %vm1461_vm9, %v1829_v35 }
 0x49e   : > { %2117 = vrot.lane.b32.xlu0 %v5461_v9, %s5424_s7  ;;  %v2885_v0 = vpop.permute.xlu1 %2884  ;;  %v5481_v9 = vrot.slane %v5479_v39, %v3924_v31 }
 0x49f   : > { %2895 = vst.msk [vmem:[%s3980_s5 + $0x3f] sm:$0x1] %vm1461_vm9, %v2885_v0 }
 0x4a0   : > { %v1845_v37 = vpop.permute.xlu0 %1844  ;;  %2530 = vrot.lane.b32.xlu1 %v4429_v23, %s5436_s29 }
 0x4a1   : > { %1854 = vst.msk [vmem:[%s3980_s5 + $0x49] sm:$0x1] %vm1461_vm9, %v1845_v37 }
 0x4a2   : > { %2121 = vrot.lane.b32.xlu0 %v5462_v29, %s5424_s7  ;;  %v1489_v55 = vpop.permute.xlu1 %1488 }
 0x4a3   : > { %1497 = vst.msk [vmem:[%s3980_s5 + $0x61] sm:$0x1] %vm1461_vm9, %v1489_v55 }
 0x4a4   : > { %v1861_v36 = vpop.permute.xlu0 %1860  ;;  %2546 = vrot.lane.b32.xlu1 %v4429_v23, %s5437_s11  ;;  %s3375_s11 = smov [#allocation3]  }
 0x4a5   : > { %1870 = vst.msk [vmem:[%s3980_s5 + $0x4a] sm:$0x1] %vm1461_vm9, %v1861_v36  ;;  %v5485_v36 = vrot.slane %v4494_v32, %v3922_v30  ;;  %v5488_v32 = vrot.slane %v4502_v3, %v3922_v30 }
 0x4a6   : > { %2280 = vrot.lane.b32.xlu0 %v5463_v59, %s5430_s10  ;;  %v1505_v14 = vpop.permute.xlu1 %1504 }
 0x4a7   : > { %1513 = vst.msk [vmem:[%s3980_s5 + $0x62] sm:$0x1] %vm1461_vm9, %v1505_v14 }
 0x4a8   : > { %v1935_v46 = vpop.permute.xlu0 %1934  ;;  %2562 = vrot.lane.b32.xlu1 %v4429_v23, %s5438_s30  ;;  %v5466_v23 = vrot.slane %v4406_v2, %v3922_v30  ;;  %s3255_s30 = sshll.u32 %s3375_s11, 4  ;;  %s3256_s30 = int_to_ptr.vmem [resolvable:$false] %s3255_s30 }
 0x4a9   : > { %v1951_v53 = vsel %vm1950_vm8, %v1935_v46, %v4734_v10  ;;  %v5486_v46 = vrot.slane %v4498_v48, %v3922_v30 }
 0x4aa   : > { %1959 = vst.msk [vmem:[%s3980_s5 + $0xb] sm:$0x1] %vm1461_vm9, %v1951_v53  ;;  %2284 = vrot.lane.b32.xlu0 %v5464_v26, %s5430_s10  ;;  %v4970_v52 = vpop.permute.xlu1 %1582 }
 0x4ac   : > { %v2008_v40 = vpop.permute.xlu0 %2007  ;;  %2640 = vrot.lane.b32.xlu1 %v5465_v28, %s5439_s9 }
 0x4ad   : > { %2017 = vst.msk [vmem:[%s3980_s5 + $0x4c] sm:$0x1] %vm1461_vm9, %v2008_v40  ;;  %v5487_v40 = vrot.slane %v4498_v48, %v3924_v31  ;;  %v5489_v48 = vrot.slane %v4502_v3, %v3924_v31 }
 0x4ae   : > { %2459 = vrot.lane.b32.xlu0 %v5466_v23, %s5457_s28  ;;  %v4982_v10 = vpop.permute.xlu1 %1586 }
 0x4b0   : > { %v2024_v42 = vpop.permute.xlu0 %2023  ;;  %2644 = vrot.lane.b32.xlu1 %v5468_v50, %s5439_s9  ;;  %v5491_v50 = vrot.slane %v4506_v7, %v3924_v31 }
 0x4b1   : > { %2033 = vst.msk [vmem:[%s3980_s5 + $0x4d] sm:$0x1] %vm1461_vm9, %v2024_v42 }
 0x4b2   : > { %2463 = vrot.lane.b32.xlu0 %v5469_v58, %s5457_s28  ;;  %v1652_v21 = vpop.permute.xlu1 %1651 }
 0x4b3   : > { %1660 = vst.msk [vmem:[%s3980_s5 + $0x64] sm:$0x1] %vm1461_vm9, %v1652_v21 }
 0x4b4   : > { %v2040_v2 = vpop.permute.xlu0 %2039  ;;  %2819 = vrot.lane.b32.xlu1 %v5471_v12, %s5442_s25 }
 0x4b5   : > { %2049 = vst.msk [vmem:[%s3980_s5 + $0x4e] sm:$0x1] %vm1461_vm9, %v2040_v2 }
 0x4b6   : > { %2638 = vrot.lane.b32.xlu0 %v5472_v15, %s5439_s9  ;;  %v1668_v33 = vpop.permute.xlu1 %1667 }
 0x4b7   : > { %1676 = vst.msk [vmem:[%s3980_s5 + $0x65] sm:$0x1] %vm1461_vm9, %v1668_v33 }
 0x4b8   : > { %v2114_v45 = vpop.permute.xlu0 %2113  ;;  %2823 = vrot.lane.b32.xlu1 %v5474_v62, %s5442_s25 }
 0x4b9   : > { %v2130_v8 = vsel %vm2129_vm10, %v2114_v45, %v4770_v51  ;;  %v5477_v51 = vrot.slane %v5470_v16, %v3922_v30 }
 0x4ba   : > { %2138 = vst.msk [vmem:[%s3980_s5 + $0xf] sm:$0x1] %vm1461_vm9, %v2130_v8  ;;  %2642 = vrot.lane.b32.xlu0 %v5475_v18, %s5439_s9  ;;  %v1684_v24 = vpop.permute.xlu1 %1683 }
 0x4bb   : > { %1692 = vst.msk [vmem:[%s3980_s5 + $0x66] sm:$0x1] %vm1461_vm9, %v1684_v24 }
 0x4bc   : > { %v2187_v17 = vpop.permute.xlu0 %2186  ;;  %2709 = vrot.lane.b32.xlu1 %v5476_v19, %s5445_s12 }
 0x4bd   : > { %2196 = vst.msk [vmem:[%s3980_s5 + $0x50] sm:$0x1] %vm1461_vm9, %v2187_v17 }
 0x4be   : > { %2817 = vrot.lane.b32.xlu0 %v5477_v51, %s5442_s25  ;;  %v5030_v1 = vpop.permute.xlu1 %1761 }
 0x4c0   : > { %v2203_v43 = vpop.permute.xlu0 %2202  ;;  %2725 = vrot.lane.b32.xlu1 %v5476_v19, %s5446_s14  ;;  %s2915_s14 = sshll.u32 %s3980_s5, 4  ;;  %s5269_s14 = int_to_ptr.vmem [resolvable:$true] %s2915_s14 }
 0x4c1   : > { %2212 = vst.msk [vmem:[%s3980_s5 + $0x51] sm:$0x1] %vm1461_vm9, %v2203_v43  ;;  %s3251_s29 = scalar_lea.vmem %s5269_s14, 2048  ;;  %p3258_p1 = scmp.lt.s32.totalorder %s5269_s14, %s3256_s30 }
 0x4c2   : > { %2821 = vrot.lane.b32.xlu0 %v5478_v13, %s5442_s25  ;;  %v5040_v20 = vpop.permute.xlu1 %1765  ;;  %p3252_p12 = scmp.ne.s32.totalorder %s5269_s14, %s3251_s29 }
 0x4c4   : > { %v2277_v4 = vpop.permute.xlu0 %2276  ;;  %2741 = vrot.lane.b32.xlu1 %v5476_v19, %s5447_s13  ;;  %s3055_s13 = sshll.u32 %s3321_s18, 12  ;;  %s5493_s18 = sand.u32 1, %s3313_s16  }
 0x4c5   : > { %v2293_v38 = vsel %vm2292_vm11, %v2277_v4, %v4800_v60  ;;  %v5482_v60 = vld [vmem:[#allocation9_spill] sm:$0xff]  ;;  %s5267_s8 = scalar_lea.hbm %s5327_s4, %s3055_s13  ;;  %p3253_p13 = pnand %p3252_p12, %p3443_p4 }
 0x4c6   : > { %2301 = vst.msk [vmem:[%s3980_s5 + $0x12] sm:$0x1] %vm1461_vm9, %v2293_v38  ;;  %1588 = vrot.lane.b32.xlu0 %v5480_v54, %s5449_s6  ;;  %v1831_v35 = vpop.permute.xlu1 %1830  ;;  %v5483_v0 = vrot.slane %v5482_v60, %v3922_v30  ;;  %v5484_v55 = vrot.slane %v5482_v60, %v3924_v31 }
 0x4c7   : > { %1839 = vst.msk [vmem:[%s3980_s5 + $0x68] sm:$0x1] %vm1461_vm9, %v1831_v35  ;;  %p3254_p0 = pneg %p3253_p13 }
 0x4c8   : > { %v2350_v61 = vpop.permute.xlu0 %2349  ;;  %1590 = vrot.lane.b32.xlu1 %v5481_v9, %s5449_s6 }
 0x4c9   : > { %2359 = vst.msk [vmem:[%s3980_s5 + $0x53] sm:$0x1] %vm1461_vm9, %v2350_v61 }
 0x4ca   : > { %1767 = vrot.lane.b32.xlu0 %v5483_v0, %s5411_s23  ;;  %v1847_v37 = vpop.permute.xlu1 %1846 }
 0x4cb   : > { %1855 = vst.msk [vmem:[%s3980_s5 + $0x69] sm:$0x1] %vm1461_vm9, %v1847_v37 }
 0x4cc   : > { %v2366_v29 = vpop.permute.xlu0 %2365  ;;  %1769 = vrot.lane.b32.xlu1 %v5484_v55, %s5411_s23 }
 0x4cd   : > { %2375 = vst.msk [vmem:[%s3980_s5 + $0x54] sm:$0x1] %vm1461_vm9, %v2366_v29 }
 0x4ce   : > { %1946 = vrot.lane.b32.xlu0 %v5485_v36, %s5417_s21  ;;  %v1863_v59 = vpop.permute.xlu1 %1862 }
 0x4cf   : > { %1871 = vst.msk [vmem:[%s3980_s5 + $0x6a] sm:$0x1] %vm1461_vm9, %v1863_v59 }
 0x4d0   : > { %v2382_v14 = vpop.permute.xlu0 %2381  ;;  %1948 = vrot.lane.b32.xlu1 %v1933_v57, %s5417_s21 }
 0x4d1   : > { %2391 = vst.msk [vmem:[%s3980_s5 + $0x55] sm:$0x1] %vm1461_vm9, %v2382_v14 }
 0x4d2   : > { %2125 = vrot.lane.b32.xlu0 %v5486_v46, %s5424_s7  ;;  %v5088_v53 = vpop.permute.xlu1 %1940 }
 0x4d4   : > { %v2456_v26 = vpop.permute.xlu0 %2455  ;;  %2127 = vrot.lane.b32.xlu1 %v5487_v40, %s5424_s7  ;;  %s5492_s7 = smov 98  }
 0x4d5   : > { %v2472_v57 = vsel %vm2471_vm12, %v2456_v26, %v4840_v22  ;;  %v5490_v22 = vrot.slane %v4506_v7, %v3922_v30 }
 0x4d6   : > { %2480 = vst.msk [vmem:[%s3980_s5 + $0x16] sm:$0x1] %vm1461_vm9, %v2472_v57  ;;  %2288 = vrot.lane.b32.xlu0 %v5488_v32, %s5430_s10  ;;  %v5102_v28 = vpop.permute.xlu1 %1944 }
 0x4d8   : > { %v2529_v23 = vpop.permute.xlu0 %2528  ;;  %2290 = vrot.lane.b32.xlu1 %v5489_v48, %s5430_s10  ;;  %s5277_s10 = scalar_lea.sflag [#allocation4], %s5493_s18 }
 0x4d9   : > { %2538 = vst.msk [vmem:[%s3980_s5 + $0x57] sm:$0x1] %vm1461_vm9, %v2529_v23 }
 0x4da   : > { %2467 = vrot.lane.b32.xlu0 %v5490_v22, %s5457_s28  ;;  %v2010_v42 = vpop.permute.xlu1 %2009 }
 0x4db   : > { %2018 = vst.msk [vmem:[%s3980_s5 + $0x6c] sm:$0x1] %vm1461_vm9, %v2010_v42 }
 0x4dc   : > { %v2545_v27 = vpop.permute.xlu0 %2544  ;;  %2469 = vrot.lane.b32.xlu1 %v5491_v50, %s5457_s28 }
 0x4dd   : > { %2554 = vst.msk [vmem:[%s3980_s5 + $0x58] sm:$0x1] %vm1461_vm9, %v2545_v27 }
 0x4de   : > { %2646 = vrot.lane.b32.xlu0 %v2629_v6, %s5439_s9  ;;  %v2026_v3 = vpop.permute.xlu1 %2025 }
 0x4df   : > { %2034 = vst.msk [vmem:[%s3980_s5 + $0x6d] sm:$0x1] %vm1461_vm9, %v2026_v3 }
 0x4e0   : > { %v2561_v58 = vpop.permute.xlu0 %2560  ;;  %2648 = vrot.lane.b32.xlu1 %v2633_v56, %s5439_s9  ;;  %s3257_s9 = scalar_lea.vmem %s3256_s30, 4096 }
 0x4e1   : > { %2570 = vst.msk [vmem:[%s3980_s5 + $0x59] sm:$0x1] %vm1461_vm9, %v2561_v58  ;;  %p3259_p2 = scmp.lt.s32.totalorder %s3257_s9, %s3251_s29 }
 0x4e2   : > { %2825 = vrot.lane.b32.xlu0 %v2808_v41, %s5442_s25  ;;  %v2042_v7 = vpop.permute.xlu1 %2041 }
 0x4e3   : > { %2050 = vst.msk [vmem:[%s3980_s5 + $0x6e] sm:$0x1] %vm1461_vm9, %v2042_v7  ;;  %p3260_p3 = por %p3259_p2, %p3258_p1 }
 0x4e4   : > { %v2635_v6 = vpop.permute.xlu0 %2634  ;;  %2827 = vrot.lane.b32.xlu1 %v2812_v11, %s5442_s25 }
 0x4e5   : > { %v2651_v5 = vsel %vm2650_vm13, %v2635_v6, %v4882_v34  ;;  %p3261_p5 = pnand %p3260_p3, %p3254_p0 }
 0x4e6   : > { %2659 = vst.msk [vmem:[%s3980_s5 + $0x1a] sm:$0x1] %vm1461_vm9, %v2651_v5  ;;  %2886 = vrot.lane.b32.xlu0 %v4549_v44, %s5492_s7  ;;  %v2120_v30 = vpop.permute.xlu1 %2119 }
 0x4e8   : > { %v2814_v41 = vpop.permute.xlu0 %2813  ;;  %2888 = vrot.lane.b32.xlu1 %v4552_v63, %s5492_s7 }
 0x4e9   : > { %v2830_v31 = vsel %vm2829_vm14, %v2814_v41, %v4892_v49 }
 0x4ea   : > { %2838 = vst.msk [vmem:[%s3980_s5 + $0x1e] sm:$0x1] %vm1461_vm9, %v2830_v31  ;;  %v2124_v11 = vpop.permute.xlu1 %2123 }
 0x4ec   : > { %v2708_v56 = vpop.permute.xlu0 %2707 }
 0x4ed   : > { %2717 = vst.msk [vmem:[%s3980_s5 + $0x5b] sm:$0x1] %vm1461_vm9, %v2708_v56 }
 0x4ee   : > { %v2189_v47 = vpop.permute.xlu1 %2188 }
 0x4ef   : > { %2197 = vst.msk [vmem:[%s3980_s5 + $0x70] sm:$0x1] %vm1461_vm9, %v2189_v47 }
 0x4f0   : > { %v2724_v44 = vpop.permute.xlu0 %2723 }
 0x4f1   : > { %2733 = vst.msk [vmem:[%s3980_s5 + $0x5c] sm:$0x1] %vm1461_vm9, %v2724_v44 }
 0x4f2   : > { %v2205_v34 = vpop.permute.xlu1 %2204 }
 0x4f3   : > { %2213 = vst.msk [vmem:[%s3980_s5 + $0x71] sm:$0x1] %vm1461_vm9, %v2205_v34 }
 0x4f4   : > { %v2740_v63 = vpop.permute.xlu0 %2739 }
 0x4f5   : > { %2749 = vst.msk [vmem:[%s3980_s5 + $0x5d] sm:$0x1] %vm1461_vm9, %v2740_v63 }
 0x4f6   : > { %v2283_v49 = vpop.permute.xlu1 %2282 }
 0x4f8   : > { %v1581_v21 = vpop.permute.xlu0 %1580 }
 0x4f9   : > { %v1594_v2 = vsel %vm1592_vm6, %v1581_v21, %v4970_v52 }
 0x4fa   : > { %1602 = vst.msk [vmem:[%s3980_s5 + $0x23] sm:$0x1] %vm1461_vm9, %v1594_v2  ;;  %v2287_v16 = vpop.permute.xlu1 %2286 }
 0x4fc   : > { %v1585_v12 = vpop.permute.xlu0 %1584 }
 0x4fd   : > { %v1595_v15 = vsel %vm1592_vm6, %v1585_v12, %v4982_v10 }
 0x4fe   : > { %1603 = vst.msk [vmem:[%s3980_s5 + $0x43] sm:$0x1] %vm1461_vm9, %v1595_v15  ;;  %v2352_v33 = vpop.permute.xlu1 %2351 }
 0x4ff   : > { %2360 = vst.msk [vmem:[%s3980_s5 + $0x73] sm:$0x1] %vm1461_vm9, %v2352_v33 }
 0x500   : > { %v1760_v45 = vpop.permute.xlu0 %1759 }
 0x501   : > { %v1773_v25 = vsel %vm1771_vm7, %v1760_v45, %v5030_v1 }
 0x502   : > { %1781 = vst.msk [vmem:[%s3980_s5 + $0x27] sm:$0x1] %vm1461_vm9, %v1773_v25  ;;  %v2368_v52 = vpop.permute.xlu1 %2367 }
 0x503   : > { %2376 = vst.msk [vmem:[%s3980_s5 + $0x74] sm:$0x1] %vm1461_vm9, %v2368_v52 }
 0x504   : > { %v1764_v62 = vpop.permute.xlu0 %1763 }
 0x505   : > { %v1774_v10 = vsel %vm1771_vm7, %v1764_v62, %v5040_v20 }
 0x506   : > { %1782 = vst.msk [vmem:[%s3980_s5 + $0x47] sm:$0x1] %vm1461_vm9, %v1774_v10  ;;  %v2384_v8 = vpop.permute.xlu1 %2383 }
 0x507   : > { %2392 = vst.msk [vmem:[%s3980_s5 + $0x75] sm:$0x1] %vm1461_vm9, %v2384_v8 }
 0x508   : > { %v1939_v18 = vpop.permute.xlu0 %1938 }
 0x509   : > { %v1952_v24 = vsel %vm1950_vm8, %v1939_v18, %v5088_v53 }
 0x50a   : > { %1960 = vst.msk [vmem:[%s3980_s5 + $0x2b] sm:$0x1] %vm1461_vm9, %v1952_v24  ;;  %v2462_v17 = vpop.permute.xlu1 %2461 }
 0x50c   : > { %v1943_v19 = vpop.permute.xlu0 %1942 }
 0x50d   : > { %v1953_v51 = vsel %vm1950_vm8, %v1943_v19, %v5102_v28 }
 0x50e   : > { %1961 = vst.msk [vmem:[%s3980_s5 + $0x4b] sm:$0x1] %vm1461_vm9, %v1953_v51  ;;  %v2466_v1 = vpop.permute.xlu1 %2465 }
 0x510   : > { %v2118_v43 = vpop.permute.xlu0 %2117 }
 0x511   : > { %v2131_v13 = vsel %vm2129_vm10, %v2118_v43, %v2120_v30 }
 0x512   : > { %2139 = vst.msk [vmem:[%s3980_s5 + $0x2f] sm:$0x1] %vm1461_vm9, %v2131_v13  ;;  %v2531_v20 = vpop.permute.xlu1 %2530 }
 0x513   : > { %2539 = vst.msk [vmem:[%s3980_s5 + $0x77] sm:$0x1] %vm1461_vm9, %v2531_v20 }
 0x514   : > { %v2122_v4 = vpop.permute.xlu0 %2121 }
 0x515   : > { %v2132_v38 = vsel %vm2129_vm10, %v2122_v4, %v2124_v11 }
 0x516   : > { %2140 = vst.msk [vmem:[%s3980_s5 + $0x4f] sm:$0x1] %vm1461_vm9, %v2132_v38  ;;  %v2547_v39 = vpop.permute.xlu1 %2546 }
 0x517   : > { %2555 = vst.msk [vmem:[%s3980_s5 + $0x78] sm:$0x1] %vm1461_vm9, %v2547_v39 }
 0x518   : > { %v2281_v54 = vpop.permute.xlu0 %2280 }
 0x519   : > { %v2294_v35 = vsel %vm2292_vm11, %v2281_v54, %v2283_v49 }
 0x51a   : > { %2302 = vst.msk [vmem:[%s3980_s5 + $0x32] sm:$0x1] %vm1461_vm9, %v2294_v35  ;;  %v2563_v61 = vpop.permute.xlu1 %2562 }
 0x51b   : > { %2571 = vst.msk [vmem:[%s3980_s5 + $0x79] sm:$0x1] %vm1461_vm9, %v2563_v61 }
 0x51c   : > { %v2285_v9 = vpop.permute.xlu0 %2284 }
 0x51d   : > { %v2295_v60 = vsel %vm2292_vm11, %v2285_v9, %v2287_v16 }
 0x51e   : > { %2303 = vst.msk [vmem:[%s3980_s5 + $0x52] sm:$0x1] %vm1461_vm9, %v2295_v60  ;;  %v2641_v0 = vpop.permute.xlu1 %2640 }
 0x520   : > { %v2460_v37 = vpop.permute.xlu0 %2459 }
 0x521   : > { %v2473_v29 = vsel %vm2471_vm12, %v2460_v37, %v2462_v17 }
 0x522   : > { %2481 = vst.msk [vmem:[%s3980_s5 + $0x36] sm:$0x1] %vm1461_vm9, %v2473_v29  ;;  %v2645_v55 = vpop.permute.xlu1 %2644 }
 0x524   : > { %v2464_v36 = vpop.permute.xlu0 %2463 }
 0x525   : > { %v2474_v59 = vsel %vm2471_vm12, %v2464_v36, %v2466_v1 }
 0x526   : > { %2482 = vst.msk [vmem:[%s3980_s5 + $0x56] sm:$0x1] %vm1461_vm9, %v2474_v59  ;;  %v2820_v14 = vpop.permute.xlu1 %2819 }
 0x528   : > { %v2639_v46 = vpop.permute.xlu0 %2638 }
 0x529   : > { %v2652_v53 = vsel %vm2650_vm13, %v2639_v46, %v2641_v0 }
 0x52a   : > { %2660 = vst.msk [vmem:[%s3980_s5 + $0x3a] sm:$0x1] %vm1461_vm9, %v2652_v53  ;;  %v2824_v26 = vpop.permute.xlu1 %2823 }
 0x52c   : > { %v2643_v40 = vpop.permute.xlu0 %2642 }
 0x52d   : > { %v2653_v57 = vsel %vm2650_vm13, %v2643_v40, %v2645_v55 }
 0x52e   : > { %2661 = vst.msk [vmem:[%s3980_s5 + $0x5a] sm:$0x1] %vm1461_vm9, %v2653_v57  ;;  %v2710_v32 = vpop.permute.xlu1 %2709 }
 0x52f   : > { %2718 = vst.msk [vmem:[%s3980_s5 + $0x7b] sm:$0x1] %vm1461_vm9, %v2710_v32 }
 0x530   : > { %v2818_v28 = vpop.permute.xlu0 %2817 }
 0x531   : > { %v2831_v23 = vsel %vm2829_vm14, %v2818_v28, %v2820_v14 }
 0x532   : > { %2839 = vst.msk [vmem:[%s3980_s5 + $0x3e] sm:$0x1] %vm1461_vm9, %v2831_v23  ;;  %v2726_v48 = vpop.permute.xlu1 %2725 }
 0x533   : > { %2734 = vst.msk [vmem:[%s3980_s5 + $0x7c] sm:$0x1] %vm1461_vm9, %v2726_v48 }
 0x534   : > { %v2822_v22 = vpop.permute.xlu0 %2821 }
 0x535   : > { %v2832_v42 = vsel %vm2829_vm14, %v2822_v22, %v2824_v26 }
 0x536   : > { %2840 = vst.msk [vmem:[%s3980_s5 + $0x5e] sm:$0x1] %vm1461_vm9, %v2832_v42  ;;  %v2742_v27 = vpop.permute.xlu1 %2741 }
 0x537   : > { %2750 = vst.msk [vmem:[%s3980_s5 + $0x7d] sm:$0x1] %vm1461_vm9, %v2742_v27 }
 0x538   : > { %v1589_v50 = vpop.permute.xlu0 %1588 }
 0x53a   : > { %v1591_v3 = vpop.permute.xlu1 %1590 }
 0x53b   : > { %v1596_v58 = vsel %vm1592_vm6, %v1589_v50, %v1591_v3 }
 0x53c   : > { %1604 = vst.msk [vmem:[%s3980_s5 + $0x63] sm:$0x1] %vm1461_vm9, %v1596_v58  ;;  %v1768_v7 = vpop.permute.xlu0 %1767 }
 0x53e   : > { %v1770_v6 = vpop.permute.xlu1 %1769 }
 0x53f   : > { %v1775_v5 = vsel %vm1771_vm7, %v1768_v7, %v1770_v6 }
 0x540   : > { %1783 = vst.msk [vmem:[%s3980_s5 + $0x67] sm:$0x1] %vm1461_vm9, %v1775_v5  ;;  %v1947_v30 = vpop.permute.xlu0 %1946 }
 0x542   : > { %v1949_v41 = vpop.permute.xlu1 %1948 }
 0x543   : > { %v1954_v31 = vsel %vm1950_vm8, %v1947_v30, %v1949_v41 }
 0x544   : > { %1962 = vst.msk [vmem:[%s3980_s5 + $0x6b] sm:$0x1] %vm1461_vm9, %v1954_v31  ;;  %v2126_v11 = vpop.permute.xlu0 %2125 }
 0x546   : > { %v2128_v56 = vpop.permute.xlu1 %2127 }
 0x547   : > { %v2133_v47 = vsel %vm2129_vm10, %v2126_v11, %v2128_v56 }
 0x548   : > { %2141 = vst.msk [vmem:[%s3980_s5 + $0x6f] sm:$0x1] %vm1461_vm9, %v2133_v47  ;;  %v2289_v44 = vpop.permute.xlu0 %2288 }
 0x54a   : > { %v2291_v34 = vpop.permute.xlu1 %2290 }
 0x54b   : > { %v2296_v63 = vsel %vm2292_vm11, %v2289_v44, %v2291_v34 }
 0x54c   : > { %2304 = vst.msk [vmem:[%s3980_s5 + $0x72] sm:$0x1] %vm1461_vm9, %v2296_v63  ;;  %v2468_v49 = vpop.permute.xlu0 %2467 }
 0x54e   : > { %v2470_v21 = vpop.permute.xlu1 %2469 }
 0x54f   : > { %v2475_v2 = vsel %vm2471_vm12, %v2468_v49, %v2470_v21 }
 0x550   : > { %2483 = vst.msk [vmem:[%s3980_s5 + $0x76] sm:$0x1] %vm1461_vm9, %v2475_v2  ;;  %v2647_v16 = vpop.permute.xlu0 %2646 }
 0x552   : > { %v2649_v12 = vpop.permute.xlu1 %2648 }
 0x553   : > { %v2654_v15 = vsel %vm2650_vm13, %v2647_v16, %v2649_v12 }
 0x554   : > { %2662 = vst.msk [vmem:[%s3980_s5 + $0x7a] sm:$0x1] %vm1461_vm9, %v2654_v15  ;;  %v2826_v33 = vpop.permute.xlu0 %2825 }
 0x556   : > { %v2828_v45 = vpop.permute.xlu1 %2827 }
 0x557   : > { %v2833_v25 = vsel %vm2829_vm14, %v2826_v33, %v2828_v45 }
 0x558   : > { %2841 = vst.msk [vmem:[%s3980_s5 + $0x7e] sm:$0x1] %vm1461_vm9, %v2833_v25  ;;  %v2887_v52 = vpop.permute.xlu0 %2886 }
 0x559   : > { %2896 = vst.msk [vmem:[%s3980_s5 + $0x5f] sm:$0x1] %vm1461_vm9, %v2887_v52 }
 0x55a   : > { %v2889_v62 = vpop.permute.xlu1 %2888 }
 0x55b   : > { %2897 = vst.msk [vmem:[%s3980_s5 + $0x7f] sm:$0x1] %vm1461_vm9, %v2889_v62 }
 0x55c   : > { %3264 = shalt.err (!%p3261_p5)
}
 0x55d   : > { %s3265_s5 = scalar_lea.hbm %s5267_s8, 2048  ;;  %s3269_s6 = scalar_lea.hbm %s5327_s4, 8192 }
 0x55e   : > { %p3266_p6 = scmp.ne.s32.totalorder %s5267_s8, %s3265_s5  ;;  %p3270_p10 = scmp.lt.u32.totalorder %s5267_s8, %s5327_s4 }
 0x55f   : > { %p3271_p11 = scmp.lt.u32.totalorder %s3269_s6, %s3265_s5  ;;  %p3273_p13 = scmp.lt.u32.totalorder %s3265_s5, %s5267_s8 }
 0x560   : > { %p3267_p7 = pnand %p3266_p6, %p3443_p4 }
 0x561   : > { %p3272_p12 = por %p3271_p11, %p3270_p10 }
 0x562   : > { %p3268_p9 = pneg %p3267_p7 }
 0x563   : > { %p3274_p0 = por %p3273_p13, %p3272_p12 }
 0x565   : > { %p3275_p1 = pnand %p3274_p0, %p3268_p9 }
 0x567   : > { %3278 = shalt.err (!%p3275_p1)
}
 0x568   : > { %s3376_s7 = smov 128   ;;  %s3377_s13 = smov 8  }
 0x569   : > { %3132 = dma.vmem_to_hbm [thread:$0]  (%p3443_p4), %s5269_s14, 2048, %s5267_s8, %s5277_s10, %s3376_s7, %s3376_s7, %s3377_s13  }
 0x56a PF: > { %p3138_p2 = scmp.ge.s32.totalorder %s3329_s20, 2  ;;  %s2930_s21 = sand.u32 1, %s3309_s15  }
 0x56b   : > { %s2931_s23 = scalar_lea.sflag [#allocation4], %s2930_s21 }
 0x56c   : > { %p3135_p3 = pnand %p3138_p2, %p3450_p8 }
 0x56e   : > { %3304 = dma.done.wait (!%p3135_p3), %s2931_s23, 2048  }
 0x56f   : > { %3306 = vsyncadd (!%p3135_p3), %s2931_s23, 4294965248  ;;  %s17_s20 = sadd.s32 1, %s3329_s20   ;;  %s5494_s15 = smov %s3313_s16 }
 0x570   : > { %p14_p5 = scmp.ge.s32.totalorder %s17_s20, 4   ;;  %s5495_s16 = smov %s3317_s17 }
 0x571   : > { %s5496_s17 = smov %s3456_s27  ;;  %s5497_s18 = smov %s3325_s19 }
 0x572   : > { %s5498_s19 = smov %s5500_s22  ;;  %16 = sbr.rel (!%p14_p5) target bundleno = 4 (0x4), region = 73 }
 0x579   :  { %2936 = vsyncpa [#allocation4], 1 }
 0x57a   :  { %2938 = vsyncpa [#allocation4 + $0x1], 1 }

</bundles_post_ra>
